<compile_context>
chip_gen: v6e
topology: v6e:2x2x1
jax: 0.10.0
libtpu: 0.0.40
codegen_flags: <defaults>
</compile_context>

<pallas_src>
import functools

import numpy as np
import jax
import jax.numpy as jnp
from jax.experimental import pallas as pl
from jax.experimental.pallas import tpu as pltpu


def _round_up(x, m):
    return (x + m - 1) // m * m


# ---------------------------------------------------------------------------
# Pallas kernel: full TabNet step loop for one feature-major batch tile
# ---------------------------------------------------------------------------
def tabnet_kernel(x_ref, dl_scale_ref, dl_shift_ref,
                  sh0W_ref, sh0b_ref, sh1W_ref, sh1b_ref,
                  ftW_ref, ftb_ref, attW_ref, attb_ref,
                  stpW_ref, stpb_ref, finW_ref, finb_ref,
                  out_ref, *, nd, na, relax, S, n_bisect=10):
    F, TB = x_ref.shape
    H = nd + na
    scale = jnp.float32(np.sqrt(0.5))

    def sigmoid(v):
        # exp -> EUP, approx reciprocal -> EUP; keeps the divide off the VALU.
        return pl.reciprocal(1.0 + jnp.exp(-v), approx=True)

    def glu(act, Wt, b):
        # Fused GLU: one (2H, K) @ (K, TB) matmul, bf16 operands, f32 accum.
        # Value/gate split is an 8-aligned sublane slice (free in this layout).
        y = jnp.dot(Wt, act.astype(jnp.bfloat16),
                    preferred_element_type=jnp.float32) + b
        return y[:H] * sigmoid(y[H:])

    # Hoist weights reused every step; pre-broadcast the shared biases once
    # (JAX does not CSE broadcast_in_dim).
    sh0W = sh0W_ref[...]
    sh1W = sh1W_ref[...]
    sh0b = jnp.broadcast_to(sh0b_ref[...], (2 * H, TB))
    sh1b = jnp.broadcast_to(sh1b_ref[...], (2 * H, TB))

    def shared_ft(act):
        # FeatureTransformer(is_shared=True, nrof_glu=2): no residual on GLU0.
        y = glu(act, sh0W, sh0b)
        return (y + glu(y, sh1W, sh1b)) * scale

    def step_ft(act, W0, b0, W1, b1):
        # FeatureTransformer(is_shared=False, nrof_glu=2): residual on both.
        y = (act + glu(act, W0, b0)) * scale
        return (y + glu(y, W1, b1)) * scale

    def sparsemax(z):
        # Simplex projection along the feature (sublane) axis:
        #   tau solves sum_i max(z_i - tau, 0) = 1  (monotone in tau).
        # Short bisection pins the support set, then tau is exact:
        #   tau = (sum_{i in supp} z_i - 1) / |supp|.
        z_max = jnp.max(z, axis=0, keepdims=True)          # (1, TB)
        lo = z_max - 1.0                                   # f(lo) >= 0
        hi = z_max                                         # f(hi) <  0
        for _ in range(n_bisect):
            mid = 0.5 * (lo + hi)
            fsum = jnp.sum(jnp.maximum(z - mid, 0.0), axis=0, keepdims=True)
            go_up = fsum > 1.0
            lo = jnp.where(go_up, mid, lo)
            hi = jnp.where(go_up, hi, mid)
        mid = 0.5 * (lo + hi)
        supp = (z > mid).astype(jnp.float32)               # (F, TB)
        k = jnp.sum(supp, axis=0, keepdims=True)           # (1, TB), >= 1
        tau = (jnp.sum(z * supp, axis=0, keepdims=True) - 1.0) / k
        return jnp.maximum(z - tau, 0.0)

    x = x_ref[...]                                         # (F, TB)
    # DenseFeatureLayer BN (eval mode, folded to per-feature scale/shift).
    origin = x * dl_scale_ref[...] + dl_shift_ref[...]

    prior = jnp.ones((F, TB), jnp.float32)
    final = jnp.zeros((nd, TB), jnp.float32)

    out = shared_ft(origin)
    out = step_ft(out, ftW_ref[0], ftb_ref[0], ftW_ref[1], ftb_ref[1])
    att = out[na:]                                         # (na, TB)

    for s in range(S):                                     # S small -> unrolled
        # AttentiveTransformer: Linear (BN folded) -> * prior -> sparsemax
        a = jnp.dot(attW_ref[s], att.astype(jnp.bfloat16),
                    preferred_element_type=jnp.float32) + attb_ref[s]
        att_out = sparsemax(a * prior)

        prior = prior * (relax - att_out)
        mask = att_out * origin

        out = shared_ft(mask)
        out = step_ft(out, stpW_ref[s, 0], stpb_ref[s, 0],
                      stpW_ref[s, 1], stpb_ref[s, 1])

        final = final + jnp.maximum(out[:nd], 0.0)
        att = out[na:]

    # Fused final linear: (Tp, nd) @ (nd, TB) -> lane-dense, unmasked store.
    out_ref[...] = (jnp.dot(finW_ref[...], final,
                            preferred_element_type=jnp.float32)
                    + finb_ref[...])


# ---------------------------------------------------------------------------
# Parameter preparation: fold eval-mode BN into linears, transpose weights to
# feature-major (out, in), cast MXU weights to bf16.
# ---------------------------------------------------------------------------
def _prepare_params(params):
    def fold(W, b, bn):
        scl = bn[..., 0, :]
        sft = bn[..., 1, :]
        return W * scl[..., None, :], b * scl[..., None, :] + sft[..., None, :]

    def t(a):                           # swap the last two dims
        return jnp.swapaxes(a, -1, -2)

    out = {
        "dl_scale": params["dl_bn"][0][:, None],       # (F, 1)
        "dl_shift": params["dl_bn"][1][:, None],       # (F, 1)
    }
    for name in ("sh0", "sh1", "ft", "att", "stp"):
        Wf, bf = fold(params[name + "_W"], params[name + "_b"],
                      params[name + "_bn"])
        out[name + "_W"] = t(Wf).astype(jnp.bfloat16)  # (..., out, in) bf16
        out[name + "_b"] = t(bf)                       # (..., out, 1)  f32
    out["fin_W"] = params["fin_W"].T                   # (T, nd) f32
    out["fin_b"] = params["fin_b"].T                   # (T, 1)  f32
    return out


# ---------------------------------------------------------------------------
# Wrapper
# ---------------------------------------------------------------------------
def _resident_spec(shape):
    n = len(shape)
    return pl.BlockSpec(shape, lambda i, n=n: (0,) * n)


def tabnet_forward(x, params, *, nd, na, relax, nrof_steps, block_b=4096):
    """x: (B, F) dense features.  Returns (B, nrof_targets)."""
    assert nd == na, "split() assumes nd == na (module defaults)"
    B, F = x.shape
    S = nrof_steps
    T = params["fin_W"].shape[1]

    p = _prepare_params(params)

    # Feature-major layout: batch sits on the 128-wide lane axis, so the batch
    # tile must be a multiple of 128.  block_b ~2048-4096 keeps per-tile VMEM
    # at a few MiB while amortizing the ~0.35us per-grid-step overhead.
    TB = _round_up(min(block_b, _round_up(B, 128)), 128)
    Bp = _round_up(B, TB)
    xT = x.T                                             # (F, B)
    xp = xT if Bp == B else jnp.pad(xT, ((0, 0), (0, Bp - B)))

    # Pad targets to a full 8-row sublane tile: aligned matmul M and a fully
    # unmasked output store.
    Tp = _round_up(max(T, 8), 8)
    finW = jnp.pad(p["fin_W"], ((0, Tp - T), (0, 0)))
    finb = jnp.pad(p["fin_b"], ((0, Tp - T), (0, 0)))

    args = [xp, p["dl_scale"], p["dl_shift"],
            p["sh0_W"], p["sh0_b"], p["sh1_W"], p["sh1_b"],
            p["ft_W"], p["ft_b"], p["att_W"], p["att_b"],
            p["stp_W"], p["stp_b"], finW, finb]

    in_specs = ([pl.BlockSpec((F, TB), lambda i: (0, i))] +
                [_resident_spec(a.shape) for a in args[1:]])

    kernel = functools.partial(tabnet_kernel, nd=nd, na=na,
                               relax=float(relax), S=S)

    out = pl.pallas_call(
        kernel,
        out_shape=jax.ShapeDtypeStruct((Tp, Bp), jnp.float32),
        grid=(Bp // TB,),
        in_specs=in_specs,
        out_specs=pl.BlockSpec((Tp, TB), lambda i: (0, i)),
        compiler_params=pltpu.CompilerParams(
            dimension_semantics=("parallel",),
            # <= 48 MiB: ample for TB=4096 (a few MiB live) and leaves
            # headroom below v7x's 64 MiB physical VMEM.
            vmem_limit_bytes=48 * 1024 * 1024),
    )(*args)

    return out[:T, :B].T


# ---------------------------------------------------------------------------
# DenseFeatureLayer glue (embedding gather + concat in plain JAX)
# ---------------------------------------------------------------------------
def dense_feature_layer(input_data, emb_tables, numeric_columns, emb_columns):
    numeric = jnp.concatenate(
        [input_data[c] for c in input_data if c in numeric_columns], axis=1)
    embs = [jnp.take(emb_tables[c], input_data[c].astype(jnp.int32), axis=0)
            for c in emb_columns]
    emb_out = jnp.concatenate(embs, axis=1).reshape(numeric.shape[0], -1)
    return jnp.concatenate([numeric, emb_out], axis=1).astype(jnp.float32)


# ---------------------------------------------------------------------------
# Pure-JAX batch-major reference (folds BN itself, exact sigmoid, exact
# pairwise sparsemax -> independent check of the kernel's bisection+closed
# form; same bf16 MXU operand precision)
# ---------------------------------------------------------------------------
def tabnet_reference(x, params, *, nd, na, relax, nrof_steps):
    H = nd + na
    sc = np.float32(np.sqrt(0.5))

    def fold(W, b, bn):
        scl = bn[..., 0, :]
        sft = bn[..., 1, :]
        return W * scl[..., None, :], b * scl[..., None, :] + sft[..., None, :]

    def glu(xin, W, b):
        y = jnp.dot(xin.astype(jnp.bfloat16), W.astype(jnp.bfloat16),
                    preferred_element_type=jnp.float32) + b
        return y[:, :H] * (1.0 / (1.0 + jnp.exp(-y[:, H:])))

    sh0W, sh0b = fold(params["sh0_W"], params["sh0_b"], params["sh0_bn"])
    sh1W, sh1b = fold(params["sh1_W"], params["sh1_b"], params["sh1_bn"])
    ftW, ftb = fold(params["ft_W"], params["ft_b"], params["ft_bn"])
    attW, attb = fold(params["att_W"], params["att_b"], params["att_bn"])
    stpW, stpb = fold(params["stp_W"], params["stp_b"], params["stp_bn"])

    def shared(xin):
        y = glu(xin, sh0W, sh0b)
        return (y + glu(y, sh1W, sh1b)) * sc

    def ftapply(xin, W, b):
        y = xin
        for l in range(2):
            y = (y + glu(y, W[l], b[l])) * sc
        return y

    def sparsemax(z):
        ge = (z[:, None, :] >= z[:, :, None]).astype(jnp.float32)
        cnt = jnp.sum(ge, axis=-1)
        csum = jnp.sum(ge * z[:, None, :], axis=-1)
        supp = jnp.where(1.0 + cnt * z > csum, 1.0, 0.0)
        k = jnp.sum(supp, axis=-1, keepdims=True)
        tau = (jnp.sum(z * supp, axis=-1, keepdims=True) - 1.0) / k
        return jnp.maximum(z - tau, 0.0)

    origin = x * params["dl_bn"][0:1] + params["dl_bn"][1:2]
    B, F = origin.shape
    prior = jnp.ones((B, F), jnp.float32)
    final = jnp.zeros((B, nd), jnp.float32)

    out = shared(origin)
    out = ftapply(out, ftW, ftb)
    att = out[:, na:]
    for s in range(nrof_steps):
        a = jnp.dot(att.astype(jnp.bfloat16), attW[s].astype(jnp.bfloat16),
                    preferred_element_type=jnp.float32) + attb[s]
        att_out = sparsemax(a * prior)
        prior = prior * (relax - att_out)
        mask = att_out * origin
        out = shared(mask)
        out = ftapply(out, stpW[s], stpb[s])
        final = jnp.maximum(out[:, :nd], 0.0) + final
        att = out[:, na:]
    return final @ params["fin_W"] + params["fin_b"]


# ---------------------------------------------------------------------------
# Main
# ---------------------------------------------------------------------------
if __name__ == "__main__":
    B = 200                                   # not a 128-multiple -> padding
    emb_dim = 5
    numeric_columns = ["num0", "num1"]        # each (B, 3) -> 6 numeric feats
    emb_columns = ["cat0", "cat1"]
    nrof_cat = {"cat0": 7, "cat1": 5}
    nd = na = 16                              # nd_dim == na_dim
    nrof_steps = 3
    relax_factor = 1.5
    nrof_targets = 1

    F = 2 * 3 + len(emb_columns) * emb_dim    # input_size = 16
    H = nd + na
    H2 = 2 * H
    S = nrof_steps

    key = jax.random.PRNGKey(0)
    kit = iter(jax.random.split(key, 128))
    nk = lambda: next(kit)

    input_data = {
        "num0": jax.random.normal(nk(), (B, 3), jnp.float32),
        "num1": jax.random.normal(nk(), (B, 3), jnp.float32),
        "cat0": jax.random.randint(nk(), (B,), 0, nrof_cat["cat0"]),
        "cat1": jax.random.randint(nk(), (B,), 0, nrof_cat["cat1"]),
    }
    emb_tables = {c: 0.1 * jax.random.normal(nk(), (nrof_cat[c], emb_dim), jnp.float32)
                  for c in emb_columns}

    def xavier(k, fin, fout):
        lim = float(np.sqrt(6.0 / (fin + fout)))
        return jax.random.uniform(k, (fin, fout), jnp.float32, -lim, lim)

    def bn_ss(k, dim, eps=1e-5):
        # eval-mode BN folded to (scale, shift); randomized running stats so
        # the BN-folding path is actually exercised.
        k1, k2, k3, k4 = jax.random.split(k, 4)
        gamma = jax.random.uniform(k1, (dim,), jnp.float32, 0.5, 1.5)
        beta = 0.1 * jax.random.normal(k2, (dim,), jnp.float32)
        mean = 0.1 * jax.random.normal(k3, (dim,), jnp.float32)
        var = jax.random.uniform(k4, (dim,), jnp.float32, 0.5, 1.5)
        scl = gamma / jnp.sqrt(var + eps)
        sft = beta - mean * scl
        return jnp.stack([scl, sft], axis=0)   # (2, dim)

    params = {
        "dl_bn": bn_ss(nk(), F),
        "sh0_W": xavier(nk(), F, H2),
        "sh0_b": 0.01 * jax.random.normal(nk(), (1, H2), jnp.float32),
        "sh0_bn": bn_ss(nk(), H2),
        "sh1_W": xavier(nk(), H, H2),
        "sh1_b": 0.01 * jax.random.normal(nk(), (1, H2), jnp.float32),
        "sh1_bn": bn_ss(nk(), H2),
        "ft_W": jnp.stack([xavier(nk(), H, H2) for _ in range(2)]),
        "ft_b": 0.01 * jax.random.normal(nk(), (2, 1, H2), jnp.float32),
        "ft_bn": jnp.stack([bn_ss(nk(), H2) for _ in range(2)]),
        "att_W": jnp.stack([xavier(nk(), na, F) for _ in range(S)]),
        "att_b": 0.01 * jax.random.normal(nk(), (S, 1, F), jnp.float32),
        "att_bn": jnp.stack([bn_ss(nk(), F) for _ in range(S)]),
        "stp_W": jnp.stack([jnp.stack([xavier(nk(), H, H2) for _ in range(2)])
                            for _ in range(S)]),
        "stp_b": 0.01 * jax.random.normal(nk(), (S, 2, 1, H2), jnp.float32),
        "stp_bn": jnp.stack([jnp.stack([bn_ss(nk(), H2) for _ in range(2)])
                             for _ in range(S)]),
        "fin_W": xavier(nk(), nd, nrof_targets),
        "fin_b": jnp.zeros((1, nrof_targets), jnp.float32),
    }

    # DenseFeatureLayer glue (concat numeric + embeddings); BN happens in-kernel.
    x = dense_feature_layer(input_data, emb_tables, numeric_columns, emb_columns)
    assert x.shape == (B, F)

    # block_b=128 -> TB=128, Bp=256: exercises the multi-tile grid + the
    # batch-padding path at a small test size.
    out = tabnet_forward(x, params, nd=nd, na=na, relax=relax_factor,
                         nrof_steps=S, block_b=128)
    out = jax.block_until_ready(out)
    assert out.shape == (B, nrof_targets)

    ref = tabnet_reference(x, params, nd=nd, na=na,
                           relax=relax_factor, nrof_steps=S)
    if not np.allclose(np.asarray(out), np.asarray(ref), rtol=2e-2, atol=2e-2):
        raise AssertionError("Pallas TabNet kernel disagrees with JAX reference")

    print("KERNEL_OK")
</pallas_src>

<mosaic_0001>
module attributes {stable_mosaic.version = 11 : i64} {
  func.func @tabnet_kernel(%arg0: i32, %arg1: memref<16x128xf32, #tpu.memory_space<vmem>>, %arg2: memref<16x1xf32, #tpu.memory_space<vmem>>, %arg3: memref<16x1xf32, #tpu.memory_space<vmem>>, %arg4: memref<64x16xbf16, #tpu.memory_space<vmem>>, %arg5: memref<64x1xf32, #tpu.memory_space<vmem>>, %arg6: memref<64x32xbf16, #tpu.memory_space<vmem>>, %arg7: memref<64x1xf32, #tpu.memory_space<vmem>>, %arg8: memref<2x64x32xbf16, #tpu.memory_space<vmem>>, %arg9: memref<2x64x1xf32, #tpu.memory_space<vmem>>, %arg10: memref<3x16x16xbf16, #tpu.memory_space<vmem>>, %arg11: memref<3x16x1xf32, #tpu.memory_space<vmem>>, %arg12: memref<3x2x64x32xbf16, #tpu.memory_space<vmem>>, %arg13: memref<3x2x64x1xf32, #tpu.memory_space<vmem>>, %arg14: memref<8x16xf32, #tpu.memory_space<vmem>>, %arg15: memref<8x1xf32, #tpu.memory_space<vmem>>, %arg16: memref<8x128xf32, #tpu.memory_space<vmem>>) attributes {dimension_semantics = [#tpu.dimension_semantics<parallel>], iteration_bounds = array<i64: 2>, scalar_prefetch = 0 : i64, scratch_operands = 0 : i64, tpu.core_type = #tpu.core_type<tc>, window_params = [{transform_indices = @transform_0, window_bounds = array<i64: 16, 128>}, {pipeline_mode = #tpu.pipeline_mode<synchronous>, transform_indices = @transform_1, window_bounds = array<i64: 16, 1>}, {pipeline_mode = #tpu.pipeline_mode<synchronous>, transform_indices = @transform_2, window_bounds = array<i64: 16, 1>}, {pipeline_mode = #tpu.pipeline_mode<synchronous>, transform_indices = @transform_3, window_bounds = array<i64: 64, 16>}, {pipeline_mode = #tpu.pipeline_mode<synchronous>, transform_indices = @transform_4, window_bounds = array<i64: 64, 1>}, {pipeline_mode = #tpu.pipeline_mode<synchronous>, transform_indices = @transform_5, window_bounds = array<i64: 64, 32>}, {pipeline_mode = #tpu.pipeline_mode<synchronous>, transform_indices = @transform_6, window_bounds = array<i64: 64, 1>}, {pipeline_mode = #tpu.pipeline_mode<synchronous>, transform_indices = @transform_7, window_bounds = array<i64: 2, 64, 32>}, {pipeline_mode = #tpu.pipeline_mode<synchronous>, transform_indices = @transform_8, window_bounds = array<i64: 2, 64, 1>}, {pipeline_mode = #tpu.pipeline_mode<synchronous>, transform_indices = @transform_9, window_bounds = array<i64: 3, 16, 16>}, {pipeline_mode = #tpu.pipeline_mode<synchronous>, transform_indices = @transform_10, window_bounds = array<i64: 3, 16, 1>}, {pipeline_mode = #tpu.pipeline_mode<synchronous>, transform_indices = @transform_11, window_bounds = array<i64: 3, 2, 64, 32>}, {pipeline_mode = #tpu.pipeline_mode<synchronous>, transform_indices = @transform_12, window_bounds = array<i64: 3, 2, 64, 1>}, {pipeline_mode = #tpu.pipeline_mode<synchronous>, transform_indices = @transform_13, window_bounds = array<i64: 8, 16>}, {pipeline_mode = #tpu.pipeline_mode<synchronous>, transform_indices = @transform_14, window_bounds = array<i64: 8, 1>}, {transform_indices = @transform_15, window_bounds = array<i64: 8, 128>}]} {
    %c0 = arith.constant 0 : index
    %c0_0 = arith.constant 0 : index
    %0 = vector.load %arg4[%c0, %c0_0] : memref<64x16xbf16, #tpu.memory_space<vmem>>, vector<64x16xbf16>
    %c0_1 = arith.constant 0 : index
    %c0_2 = arith.constant 0 : index
    %1 = vector.load %arg6[%c0_1, %c0_2] : memref<64x32xbf16, #tpu.memory_space<vmem>>, vector<64x32xbf16>
    %c0_3 = arith.constant 0 : index
    %c0_4 = arith.constant 0 : index
    %2 = vector.load %arg5[%c0_3, %c0_4] : memref<64x1xf32, #tpu.memory_space<vmem>>, vector<64x1xf32>
    %3 = vector.shape_cast %2 : vector<64x1xf32> to vector<64x1xf32>
    %4 = vector.broadcast %3 : vector<64x1xf32> to vector<64x128xf32>
    %c0_5 = arith.constant 0 : index
    %c0_6 = arith.constant 0 : index
    %5 = vector.load %arg7[%c0_5, %c0_6] : memref<64x1xf32, #tpu.memory_space<vmem>>, vector<64x1xf32>
    %6 = vector.shape_cast %5 : vector<64x1xf32> to vector<64x1xf32>
    %7 = vector.broadcast %6 : vector<64x1xf32> to vector<64x128xf32>
    %c0_7 = arith.constant 0 : index
    %c0_8 = arith.constant 0 : index
    %8 = vector.load %arg1[%c0_7, %c0_8] : memref<16x128xf32, #tpu.memory_space<vmem>>, vector<16x128xf32>
    %c0_9 = arith.constant 0 : index
    %c0_10 = arith.constant 0 : index
    %9 = vector.load %arg2[%c0_9, %c0_10] : memref<16x1xf32, #tpu.memory_space<vmem>>, vector<16x1xf32>
    %10 = vector.broadcast %9 : vector<16x1xf32> to vector<16x128xf32>
    %11 = arith.mulf %8, %10 : vector<16x128xf32>
    %c0_11 = arith.constant 0 : index
    %c0_12 = arith.constant 0 : index
    %12 = vector.load %arg3[%c0_11, %c0_12] : memref<16x1xf32, #tpu.memory_space<vmem>>, vector<16x1xf32>
    %13 = vector.broadcast %12 : vector<16x1xf32> to vector<16x128xf32>
    %14 = arith.addf %11, %13 : vector<16x128xf32>
    %cst = arith.constant 1.000000e+00 : f32
    %15 = vector.broadcast %cst : f32 to vector<16x128xf32>
    %cst_13 = arith.constant 0.000000e+00 : f32
    %16 = vector.broadcast %cst_13 : f32 to vector<16x128xf32>
    %17 = arith.truncf %14 : vector<16x128xf32> to vector<16x128xbf16>
    %cst_14 = arith.constant dense<0.000000e+00> : vector<64x128xf32>
    %18 = tpu.matmul %0, %17, %cst_14 {dimension_numbers = #tpu.dot_dimension_numbers<[1], [0], [0], [1], [0, 0, 1, 1], [], []>} : vector<64x16xbf16>, vector<16x128xbf16>, vector<64x128xf32> -> vector<64x128xf32>
    %19 = arith.addf %18, %4 : vector<64x128xf32>
    %20 = vector.extract_strided_slice %19 {offsets = [0, 0], sizes = [32, 128], strides = [1, 1]} : vector<64x128xf32> to vector<32x128xf32>
    %21 = vector.extract_strided_slice %19 {offsets = [32, 0], sizes = [32, 128], strides = [1, 1]} : vector<64x128xf32> to vector<32x128xf32>
    %cst_15 = arith.constant 0.000000e+00 : f32
    %22 = vector.broadcast %cst_15 : f32 to vector<32x128xf32>
    %23 = arith.subf %22, %21 : vector<32x128xf32>
    %24 = math.exp %23 : vector<32x128xf32>
    %cst_16 = arith.constant 1.000000e+00 : f32
    %25 = vector.broadcast %cst_16 : f32 to vector<32x128xf32>
    %26 = arith.addf %25, %24 : vector<32x128xf32>
    %27 = tpu.reciprocal %26 {approx = true} : vector<32x128xf32> -> vector<32x128xf32>
    %28 = arith.mulf %20, %27 : vector<32x128xf32>
    %29 = arith.truncf %28 : vector<32x128xf32> to vector<32x128xbf16>
    %cst_17 = arith.constant dense<0.000000e+00> : vector<64x128xf32>
    %30 = tpu.matmul %1, %29, %cst_17 {dimension_numbers = #tpu.dot_dimension_numbers<[1], [0], [0], [1], [0, 0, 1, 1], [], []>} : vector<64x32xbf16>, vector<32x128xbf16>, vector<64x128xf32> -> vector<64x128xf32>
    %31 = arith.addf %30, %7 : vector<64x128xf32>
    %32 = vector.extract_strided_slice %31 {offsets = [0, 0], sizes = [32, 128], strides = [1, 1]} : vector<64x128xf32> to vector<32x128xf32>
    %33 = vector.extract_strided_slice %31 {offsets = [32, 0], sizes = [32, 128], strides = [1, 1]} : vector<64x128xf32> to vector<32x128xf32>
    %cst_18 = arith.constant 0.000000e+00 : f32
    %34 = vector.broadcast %cst_18 : f32 to vector<32x128xf32>
    %35 = arith.subf %34, %33 : vector<32x128xf32>
    %36 = math.exp %35 : vector<32x128xf32>
    %cst_19 = arith.constant 1.000000e+00 : f32
    %37 = vector.broadcast %cst_19 : f32 to vector<32x128xf32>
    %38 = arith.addf %37, %36 : vector<32x128xf32>
    %39 = tpu.reciprocal %38 {approx = true} : vector<32x128xf32> -> vector<32x128xf32>
    %40 = arith.mulf %32, %39 : vector<32x128xf32>
    %41 = arith.addf %28, %40 : vector<32x128xf32>
    %cst_20 = arith.constant 0.707106769 : f32
    %42 = vector.broadcast %cst_20 : f32 to vector<32x128xf32>
    %43 = arith.mulf %41, %42 : vector<32x128xf32>
    %c0_21 = arith.constant 0 : index
    %c0_22 = arith.constant 0 : index
    %c0_23 = arith.constant 0 : index
    %44 = vector.load %arg8[%c0_21, %c0_22, %c0_23] : memref<2x64x32xbf16, #tpu.memory_space<vmem>>, vector<1x64x32xbf16>
    %45 = vector.shape_cast %44 : vector<1x64x32xbf16> to vector<64x32xbf16>
    %c0_24 = arith.constant 0 : index
    %c0_25 = arith.constant 0 : index
    %c0_26 = arith.constant 0 : index
    %46 = vector.load %arg9[%c0_24, %c0_25, %c0_26] : memref<2x64x1xf32, #tpu.memory_space<vmem>>, vector<1x64x1xf32>
    %47 = vector.shape_cast %46 : vector<1x64x1xf32> to vector<64x1xf32>
    %c1 = arith.constant 1 : index
    %c0_27 = arith.constant 0 : index
    %c0_28 = arith.constant 0 : index
    %48 = vector.load %arg8[%c1, %c0_27, %c0_28] : memref<2x64x32xbf16, #tpu.memory_space<vmem>>, vector<1x64x32xbf16>
    %49 = vector.shape_cast %48 : vector<1x64x32xbf16> to vector<64x32xbf16>
    %c1_29 = arith.constant 1 : index
    %c0_30 = arith.constant 0 : index
    %c0_31 = arith.constant 0 : index
    %50 = vector.load %arg9[%c1_29, %c0_30, %c0_31] : memref<2x64x1xf32, #tpu.memory_space<vmem>>, vector<1x64x1xf32>
    %51 = vector.shape_cast %50 : vector<1x64x1xf32> to vector<64x1xf32>
    %52 = arith.truncf %43 : vector<32x128xf32> to vector<32x128xbf16>
    %cst_32 = arith.constant dense<0.000000e+00> : vector<64x128xf32>
    %53 = tpu.matmul %45, %52, %cst_32 {dimension_numbers = #tpu.dot_dimension_numbers<[1], [0], [0], [1], [0, 0, 1, 1], [], []>} : vector<64x32xbf16>, vector<32x128xbf16>, vector<64x128xf32> -> vector<64x128xf32>
    %54 = vector.broadcast %47 : vector<64x1xf32> to vector<64x128xf32>
    %55 = arith.addf %53, %54 : vector<64x128xf32>
    %56 = vector.extract_strided_slice %55 {offsets = [0, 0], sizes = [32, 128], strides = [1, 1]} : vector<64x128xf32> to vector<32x128xf32>
    %57 = vector.extract_strided_slice %55 {offsets = [32, 0], sizes = [32, 128], strides = [1, 1]} : vector<64x128xf32> to vector<32x128xf32>
    %cst_33 = arith.constant 0.000000e+00 : f32
    %58 = vector.broadcast %cst_33 : f32 to vector<32x128xf32>
    %59 = arith.subf %58, %57 : vector<32x128xf32>
    %60 = math.exp %59 : vector<32x128xf32>
    %cst_34 = arith.constant 1.000000e+00 : f32
    %61 = vector.broadcast %cst_34 : f32 to vector<32x128xf32>
    %62 = arith.addf %61, %60 : vector<32x128xf32>
    %63 = tpu.reciprocal %62 {approx = true} : vector<32x128xf32> -> vector<32x128xf32>
    %64 = arith.mulf %56, %63 : vector<32x128xf32>
    %65 = arith.addf %43, %64 : vector<32x128xf32>
    %cst_35 = arith.constant 0.707106769 : f32
    %66 = vector.broadcast %cst_35 : f32 to vector<32x128xf32>
    %67 = arith.mulf %65, %66 : vector<32x128xf32>
    %68 = arith.truncf %67 : vector<32x128xf32> to vector<32x128xbf16>
    %cst_36 = arith.constant dense<0.000000e+00> : vector<64x128xf32>
    %69 = tpu.matmul %49, %68, %cst_36 {dimension_numbers = #tpu.dot_dimension_numbers<[1], [0], [0], [1], [0, 0, 1, 1], [], []>} : vector<64x32xbf16>, vector<32x128xbf16>, vector<64x128xf32> -> vector<64x128xf32>
    %70 = vector.broadcast %51 : vector<64x1xf32> to vector<64x128xf32>
    %71 = arith.addf %69, %70 : vector<64x128xf32>
    %72 = vector.extract_strided_slice %71 {offsets = [0, 0], sizes = [32, 128], strides = [1, 1]} : vector<64x128xf32> to vector<32x128xf32>
    %73 = vector.extract_strided_slice %71 {offsets = [32, 0], sizes = [32, 128], strides = [1, 1]} : vector<64x128xf32> to vector<32x128xf32>
    %cst_37 = arith.constant 0.000000e+00 : f32
    %74 = vector.broadcast %cst_37 : f32 to vector<32x128xf32>
    %75 = arith.subf %74, %73 : vector<32x128xf32>
    %76 = math.exp %75 : vector<32x128xf32>
    %cst_38 = arith.constant 1.000000e+00 : f32
    %77 = vector.broadcast %cst_38 : f32 to vector<32x128xf32>
    %78 = arith.addf %77, %76 : vector<32x128xf32>
    %79 = tpu.reciprocal %78 {approx = true} : vector<32x128xf32> -> vector<32x128xf32>
    %80 = arith.mulf %72, %79 : vector<32x128xf32>
    %81 = arith.addf %67, %80 : vector<32x128xf32>
    %cst_39 = arith.constant 0.707106769 : f32
    %82 = vector.broadcast %cst_39 : f32 to vector<32x128xf32>
    %83 = arith.mulf %81, %82 : vector<32x128xf32>
    %84 = vector.extract_strided_slice %83 {offsets = [16, 0], sizes = [16, 128], strides = [1, 1]} : vector<32x128xf32> to vector<16x128xf32>
    %c0_40 = arith.constant 0 : index
    %c0_41 = arith.constant 0 : index
    %c0_42 = arith.constant 0 : index
    %85 = vector.load %arg10[%c0_40, %c0_41, %c0_42] : memref<3x16x16xbf16, #tpu.memory_space<vmem>>, vector<1x16x16xbf16>
    %86 = vector.shape_cast %85 : vector<1x16x16xbf16> to vector<16x16xbf16>
    %87 = arith.truncf %84 : vector<16x128xf32> to vector<16x128xbf16>
    %cst_43 = arith.constant dense<0.000000e+00> : vector<16x128xf32>
    %88 = tpu.matmul %86, %87, %cst_43 {dimension_numbers = #tpu.dot_dimension_numbers<[1], [0], [0], [1], [0, 0, 1, 1], [], []>} : vector<16x16xbf16>, vector<16x128xbf16>, vector<16x128xf32> -> vector<16x128xf32>
    %c0_44 = arith.constant 0 : index
    %c0_45 = arith.constant 0 : index
    %c0_46 = arith.constant 0 : index
    %89 = vector.load %arg11[%c0_44, %c0_45, %c0_46] : memref<3x16x1xf32, #tpu.memory_space<vmem>>, vector<1x16x1xf32>
    %90 = vector.shape_cast %89 : vector<1x16x1xf32> to vector<16x1xf32>
    %91 = vector.broadcast %90 : vector<16x1xf32> to vector<16x128xf32>
    %92 = arith.addf %88, %91 : vector<16x128xf32>
    %93 = arith.mulf %92, %15 : vector<16x128xf32>
    %cst_47 = arith.constant dense<0xFF800000> : vector<128xf32>
    %94 = vector.multi_reduction <maximumf>, %93, %cst_47 [0] : vector<16x128xf32> to vector<128xf32>
    %95 = vector.shape_cast %94 : vector<128xf32> to vector<1x128xf32>
    %cst_48 = arith.constant 1.000000e+00 : f32
    %96 = vector.broadcast %cst_48 : f32 to vector<1x128xf32>
    %97 = arith.subf %95, %96 : vector<1x128xf32>
    %98 = arith.addf %97, %95 : vector<1x128xf32>
    %cst_49 = arith.constant 5.000000e-01 : f32
    %99 = vector.broadcast %cst_49 : f32 to vector<1x128xf32>
    %100 = arith.mulf %99, %98 : vector<1x128xf32>
    %101 = vector.broadcast %100 : vector<1x128xf32> to vector<16x128xf32>
    %102 = arith.subf %93, %101 : vector<16x128xf32>
    %cst_50 = arith.constant 0.000000e+00 : f32
    %103 = vector.broadcast %cst_50 : f32 to vector<16x128xf32>
    %104 = arith.maximumf %102, %103 : vector<16x128xf32>
    %cst_51 = arith.constant dense<0.000000e+00> : vector<128xf32>
    %105 = vector.multi_reduction <add>, %104, %cst_51 [0] : vector<16x128xf32> to vector<128xf32>
    %106 = vector.shape_cast %105 : vector<128xf32> to vector<1x128xf32>
    %cst_52 = arith.constant 1.000000e+00 : f32
    %107 = vector.broadcast %cst_52 : f32 to vector<1x128xf32>
    %108 = arith.cmpf ogt, %106, %107 : vector<1x128xf32>
    %109 = arith.select %108, %100, %97 : vector<1x128xi1>, vector<1x128xf32>
    %110 = arith.select %108, %95, %100 : vector<1x128xi1>, vector<1x128xf32>
    %111 = arith.addf %109, %110 : vector<1x128xf32>
    %cst_53 = arith.constant 5.000000e-01 : f32
    %112 = vector.broadcast %cst_53 : f32 to vector<1x128xf32>
    %113 = arith.mulf %112, %111 : vector<1x128xf32>
    %114 = vector.broadcast %113 : vector<1x128xf32> to vector<16x128xf32>
    %115 = arith.subf %93, %114 : vector<16x128xf32>
    %cst_54 = arith.constant 0.000000e+00 : f32
    %116 = vector.broadcast %cst_54 : f32 to vector<16x128xf32>
    %117 = arith.maximumf %115, %116 : vector<16x128xf32>
    %cst_55 = arith.constant dense<0.000000e+00> : vector<128xf32>
    %118 = vector.multi_reduction <add>, %117, %cst_55 [0] : vector<16x128xf32> to vector<128xf32>
    %119 = vector.shape_cast %118 : vector<128xf32> to vector<1x128xf32>
    %cst_56 = arith.constant 1.000000e+00 : f32
    %120 = vector.broadcast %cst_56 : f32 to vector<1x128xf32>
    %121 = arith.cmpf ogt, %119, %120 : vector<1x128xf32>
    %122 = arith.select %121, %113, %109 : vector<1x128xi1>, vector<1x128xf32>
    %123 = arith.select %121, %110, %113 : vector<1x128xi1>, vector<1x128xf32>
    %124 = arith.addf %122, %123 : vector<1x128xf32>
    %cst_57 = arith.constant 5.000000e-01 : f32
    %125 = vector.broadcast %cst_57 : f32 to vector<1x128xf32>
    %126 = arith.mulf %125, %124 : vector<1x128xf32>
    %127 = vector.broadcast %126 : vector<1x128xf32> to vector<16x128xf32>
    %128 = arith.subf %93, %127 : vector<16x128xf32>
    %cst_58 = arith.constant 0.000000e+00 : f32
    %129 = vector.broadcast %cst_58 : f32 to vector<16x128xf32>
    %130 = arith.maximumf %128, %129 : vector<16x128xf32>
    %cst_59 = arith.constant dense<0.000000e+00> : vector<128xf32>
    %131 = vector.multi_reduction <add>, %130, %cst_59 [0] : vector<16x128xf32> to vector<128xf32>
    %132 = vector.shape_cast %131 : vector<128xf32> to vector<1x128xf32>
    %cst_60 = arith.constant 1.000000e+00 : f32
    %133 = vector.broadcast %cst_60 : f32 to vector<1x128xf32>
    %134 = arith.cmpf ogt, %132, %133 : vector<1x128xf32>
    %135 = arith.select %134, %126, %122 : vector<1x128xi1>, vector<1x128xf32>
    %136 = arith.select %134, %123, %126 : vector<1x128xi1>, vector<1x128xf32>
    %137 = arith.addf %135, %136 : vector<1x128xf32>
    %cst_61 = arith.constant 5.000000e-01 : f32
    %138 = vector.broadcast %cst_61 : f32 to vector<1x128xf32>
    %139 = arith.mulf %138, %137 : vector<1x128xf32>
    %140 = vector.broadcast %139 : vector<1x128xf32> to vector<16x128xf32>
    %141 = arith.subf %93, %140 : vector<16x128xf32>
    %cst_62 = arith.constant 0.000000e+00 : f32
    %142 = vector.broadcast %cst_62 : f32 to vector<16x128xf32>
    %143 = arith.maximumf %141, %142 : vector<16x128xf32>
    %cst_63 = arith.constant dense<0.000000e+00> : vector<128xf32>
    %144 = vector.multi_reduction <add>, %143, %cst_63 [0] : vector<16x128xf32> to vector<128xf32>
    %145 = vector.shape_cast %144 : vector<128xf32> to vector<1x128xf32>
    %cst_64 = arith.constant 1.000000e+00 : f32
    %146 = vector.broadcast %cst_64 : f32 to vector<1x128xf32>
    %147 = arith.cmpf ogt, %145, %146 : vector<1x128xf32>
    %148 = arith.select %147, %139, %135 : vector<1x128xi1>, vector<1x128xf32>
    %149 = arith.select %147, %136, %139 : vector<1x128xi1>, vector<1x128xf32>
    %150 = arith.addf %148, %149 : vector<1x128xf32>
    %cst_65 = arith.constant 5.000000e-01 : f32
    %151 = vector.broadcast %cst_65 : f32 to vector<1x128xf32>
    %152 = arith.mulf %151, %150 : vector<1x128xf32>
    %153 = vector.broadcast %152 : vector<1x128xf32> to vector<16x128xf32>
    %154 = arith.subf %93, %153 : vector<16x128xf32>
    %cst_66 = arith.constant 0.000000e+00 : f32
    %155 = vector.broadcast %cst_66 : f32 to vector<16x128xf32>
    %156 = arith.maximumf %154, %155 : vector<16x128xf32>
    %cst_67 = arith.constant dense<0.000000e+00> : vector<128xf32>
    %157 = vector.multi_reduction <add>, %156, %cst_67 [0] : vector<16x128xf32> to vector<128xf32>
    %158 = vector.shape_cast %157 : vector<128xf32> to vector<1x128xf32>
    %cst_68 = arith.constant 1.000000e+00 : f32
    %159 = vector.broadcast %cst_68 : f32 to vector<1x128xf32>
    %160 = arith.cmpf ogt, %158, %159 : vector<1x128xf32>
    %161 = arith.select %160, %152, %148 : vector<1x128xi1>, vector<1x128xf32>
    %162 = arith.select %160, %149, %152 : vector<1x128xi1>, vector<1x128xf32>
    %163 = arith.addf %161, %162 : vector<1x128xf32>
    %cst_69 = arith.constant 5.000000e-01 : f32
    %164 = vector.broadcast %cst_69 : f32 to vector<1x128xf32>
    %165 = arith.mulf %164, %163 : vector<1x128xf32>
    %166 = vector.broadcast %165 : vector<1x128xf32> to vector<16x128xf32>
    %167 = arith.subf %93, %166 : vector<16x128xf32>
    %cst_70 = arith.constant 0.000000e+00 : f32
    %168 = vector.broadcast %cst_70 : f32 to vector<16x128xf32>
    %169 = arith.maximumf %167, %168 : vector<16x128xf32>
    %cst_71 = arith.constant dense<0.000000e+00> : vector<128xf32>
    %170 = vector.multi_reduction <add>, %169, %cst_71 [0] : vector<16x128xf32> to vector<128xf32>
    %171 = vector.shape_cast %170 : vector<128xf32> to vector<1x128xf32>
    %cst_72 = arith.constant 1.000000e+00 : f32
    %172 = vector.broadcast %cst_72 : f32 to vector<1x128xf32>
    %173 = arith.cmpf ogt, %171, %172 : vector<1x128xf32>
    %174 = arith.select %173, %165, %161 : vector<1x128xi1>, vector<1x128xf32>
    %175 = arith.select %173, %162, %165 : vector<1x128xi1>, vector<1x128xf32>
    %176 = arith.addf %174, %175 : vector<1x128xf32>
    %cst_73 = arith.constant 5.000000e-01 : f32
    %177 = vector.broadcast %cst_73 : f32 to vector<1x128xf32>
    %178 = arith.mulf %177, %176 : vector<1x128xf32>
    %179 = vector.broadcast %178 : vector<1x128xf32> to vector<16x128xf32>
    %180 = arith.subf %93, %179 : vector<16x128xf32>
    %cst_74 = arith.constant 0.000000e+00 : f32
    %181 = vector.broadcast %cst_74 : f32 to vector<16x128xf32>
    %182 = arith.maximumf %180, %181 : vector<16x128xf32>
    %cst_75 = arith.constant dense<0.000000e+00> : vector<128xf32>
    %183 = vector.multi_reduction <add>, %182, %cst_75 [0] : vector<16x128xf32> to vector<128xf32>
    %184 = vector.shape_cast %183 : vector<128xf32> to vector<1x128xf32>
    %cst_76 = arith.constant 1.000000e+00 : f32
    %185 = vector.broadcast %cst_76 : f32 to vector<1x128xf32>
    %186 = arith.cmpf ogt, %184, %185 : vector<1x128xf32>
    %187 = arith.select %186, %178, %174 : vector<1x128xi1>, vector<1x128xf32>
    %188 = arith.select %186, %175, %178 : vector<1x128xi1>, vector<1x128xf32>
    %189 = arith.addf %187, %188 : vector<1x128xf32>
    %cst_77 = arith.constant 5.000000e-01 : f32
    %190 = vector.broadcast %cst_77 : f32 to vector<1x128xf32>
    %191 = arith.mulf %190, %189 : vector<1x128xf32>
    %192 = vector.broadcast %191 : vector<1x128xf32> to vector<16x128xf32>
    %193 = arith.subf %93, %192 : vector<16x128xf32>
    %cst_78 = arith.constant 0.000000e+00 : f32
    %194 = vector.broadcast %cst_78 : f32 to vector<16x128xf32>
    %195 = arith.maximumf %193, %194 : vector<16x128xf32>
    %cst_79 = arith.constant dense<0.000000e+00> : vector<128xf32>
    %196 = vector.multi_reduction <add>, %195, %cst_79 [0] : vector<16x128xf32> to vector<128xf32>
    %197 = vector.shape_cast %196 : vector<128xf32> to vector<1x128xf32>
    %cst_80 = arith.constant 1.000000e+00 : f32
    %198 = vector.broadcast %cst_80 : f32 to vector<1x128xf32>
    %199 = arith.cmpf ogt, %197, %198 : vector<1x128xf32>
    %200 = arith.select %199, %191, %187 : vector<1x128xi1>, vector<1x128xf32>
    %201 = arith.select %199, %188, %191 : vector<1x128xi1>, vector<1x128xf32>
    %202 = arith.addf %200, %201 : vector<1x128xf32>
    %cst_81 = arith.constant 5.000000e-01 : f32
    %203 = vector.broadcast %cst_81 : f32 to vector<1x128xf32>
    %204 = arith.mulf %203, %202 : vector<1x128xf32>
    %205 = vector.broadcast %204 : vector<1x128xf32> to vector<16x128xf32>
    %206 = arith.subf %93, %205 : vector<16x128xf32>
    %cst_82 = arith.constant 0.000000e+00 : f32
    %207 = vector.broadcast %cst_82 : f32 to vector<16x128xf32>
    %208 = arith.maximumf %206, %207 : vector<16x128xf32>
    %cst_83 = arith.constant dense<0.000000e+00> : vector<128xf32>
    %209 = vector.multi_reduction <add>, %208, %cst_83 [0] : vector<16x128xf32> to vector<128xf32>
    %210 = vector.shape_cast %209 : vector<128xf32> to vector<1x128xf32>
    %cst_84 = arith.constant 1.000000e+00 : f32
    %211 = vector.broadcast %cst_84 : f32 to vector<1x128xf32>
    %212 = arith.cmpf ogt, %210, %211 : vector<1x128xf32>
    %213 = arith.select %212, %204, %200 : vector<1x128xi1>, vector<1x128xf32>
    %214 = arith.select %212, %201, %204 : vector<1x128xi1>, vector<1x128xf32>
    %215 = arith.addf %213, %214 : vector<1x128xf32>
    %cst_85 = arith.constant 5.000000e-01 : f32
    %216 = vector.broadcast %cst_85 : f32 to vector<1x128xf32>
    %217 = arith.mulf %216, %215 : vector<1x128xf32>
    %218 = vector.broadcast %217 : vector<1x128xf32> to vector<16x128xf32>
    %219 = arith.subf %93, %218 : vector<16x128xf32>
    %cst_86 = arith.constant 0.000000e+00 : f32
    %220 = vector.broadcast %cst_86 : f32 to vector<16x128xf32>
    %221 = arith.maximumf %219, %220 : vector<16x128xf32>
    %cst_87 = arith.constant dense<0.000000e+00> : vector<128xf32>
    %222 = vector.multi_reduction <add>, %221, %cst_87 [0] : vector<16x128xf32> to vector<128xf32>
    %223 = vector.shape_cast %222 : vector<128xf32> to vector<1x128xf32>
    %cst_88 = arith.constant 1.000000e+00 : f32
    %224 = vector.broadcast %cst_88 : f32 to vector<1x128xf32>
    %225 = arith.cmpf ogt, %223, %224 : vector<1x128xf32>
    %226 = arith.select %225, %217, %213 : vector<1x128xi1>, vector<1x128xf32>
    %227 = arith.select %225, %214, %217 : vector<1x128xi1>, vector<1x128xf32>
    %228 = arith.addf %226, %227 : vector<1x128xf32>
    %cst_89 = arith.constant 5.000000e-01 : f32
    %229 = vector.broadcast %cst_89 : f32 to vector<1x128xf32>
    %230 = arith.mulf %229, %228 : vector<1x128xf32>
    %231 = vector.broadcast %230 : vector<1x128xf32> to vector<16x128xf32>
    %232 = arith.cmpf ogt, %93, %231 : vector<16x128xf32>
    %233 = arith.extui %232 : vector<16x128xi1> to vector<16x128xi32>
    %234 = arith.sitofp %233 : vector<16x128xi32> to vector<16x128xf32>
    %cst_90 = arith.constant dense<0.000000e+00> : vector<128xf32>
    %235 = vector.multi_reduction <add>, %234, %cst_90 [0] : vector<16x128xf32> to vector<128xf32>
    %236 = vector.shape_cast %235 : vector<128xf32> to vector<1x128xf32>
    %237 = arith.mulf %93, %234 : vector<16x128xf32>
    %cst_91 = arith.constant dense<0.000000e+00> : vector<128xf32>
    %238 = vector.multi_reduction <add>, %237, %cst_91 [0] : vector<16x128xf32> to vector<128xf32>
    %239 = vector.shape_cast %238 : vector<128xf32> to vector<1x128xf32>
    %cst_92 = arith.constant 1.000000e+00 : f32
    %240 = vector.broadcast %cst_92 : f32 to vector<1x128xf32>
    %241 = arith.subf %239, %240 : vector<1x128xf32>
    %242 = arith.divf %241, %236 : vector<1x128xf32>
    %243 = vector.broadcast %242 : vector<1x128xf32> to vector<16x128xf32>
    %244 = arith.subf %93, %243 : vector<16x128xf32>
    %cst_93 = arith.constant 0.000000e+00 : f32
    %245 = vector.broadcast %cst_93 : f32 to vector<16x128xf32>
    %246 = arith.maximumf %244, %245 : vector<16x128xf32>
    %cst_94 = arith.constant 1.500000e+00 : f32
    %247 = vector.broadcast %cst_94 : f32 to vector<16x128xf32>
    %248 = arith.subf %247, %246 : vector<16x128xf32>
    %249 = arith.mulf %15, %248 : vector<16x128xf32>
    %250 = arith.mulf %246, %14 : vector<16x128xf32>
    %251 = arith.truncf %250 : vector<16x128xf32> to vector<16x128xbf16>
    %cst_95 = arith.constant dense<0.000000e+00> : vector<64x128xf32>
    %252 = tpu.matmul %0, %251, %cst_95 {dimension_numbers = #tpu.dot_dimension_numbers<[1], [0], [0], [1], [0, 0, 1, 1], [], []>} : vector<64x16xbf16>, vector<16x128xbf16>, vector<64x128xf32> -> vector<64x128xf32>
    %253 = arith.addf %252, %4 : vector<64x128xf32>
    %254 = vector.extract_strided_slice %253 {offsets = [0, 0], sizes = [32, 128], strides = [1, 1]} : vector<64x128xf32> to vector<32x128xf32>
    %255 = vector.extract_strided_slice %253 {offsets = [32, 0], sizes = [32, 128], strides = [1, 1]} : vector<64x128xf32> to vector<32x128xf32>
    %cst_96 = arith.constant 0.000000e+00 : f32
    %256 = vector.broadcast %cst_96 : f32 to vector<32x128xf32>
    %257 = arith.subf %256, %255 : vector<32x128xf32>
    %258 = math.exp %257 : vector<32x128xf32>
    %cst_97 = arith.constant 1.000000e+00 : f32
    %259 = vector.broadcast %cst_97 : f32 to vector<32x128xf32>
    %260 = arith.addf %259, %258 : vector<32x128xf32>
    %261 = tpu.reciprocal %260 {approx = true} : vector<32x128xf32> -> vector<32x128xf32>
    %262 = arith.mulf %254, %261 : vector<32x128xf32>
    %263 = arith.truncf %262 : vector<32x128xf32> to vector<32x128xbf16>
    %cst_98 = arith.constant dense<0.000000e+00> : vector<64x128xf32>
    %264 = tpu.matmul %1, %263, %cst_98 {dimension_numbers = #tpu.dot_dimension_numbers<[1], [0], [0], [1], [0, 0, 1, 1], [], []>} : vector<64x32xbf16>, vector<32x128xbf16>, vector<64x128xf32> -> vector<64x128xf32>
    %265 = arith.addf %264, %7 : vector<64x128xf32>
    %266 = vector.extract_strided_slice %265 {offsets = [0, 0], sizes = [32, 128], strides = [1, 1]} : vector<64x128xf32> to vector<32x128xf32>
    %267 = vector.extract_strided_slice %265 {offsets = [32, 0], sizes = [32, 128], strides = [1, 1]} : vector<64x128xf32> to vector<32x128xf32>
    %cst_99 = arith.constant 0.000000e+00 : f32
    %268 = vector.broadcast %cst_99 : f32 to vector<32x128xf32>
    %269 = arith.subf %268, %267 : vector<32x128xf32>
    %270 = math.exp %269 : vector<32x128xf32>
    %cst_100 = arith.constant 1.000000e+00 : f32
    %271 = vector.broadcast %cst_100 : f32 to vector<32x128xf32>
    %272 = arith.addf %271, %270 : vector<32x128xf32>
    %273 = tpu.reciprocal %272 {approx = true} : vector<32x128xf32> -> vector<32x128xf32>
    %274 = arith.mulf %266, %273 : vector<32x128xf32>
    %275 = arith.addf %262, %274 : vector<32x128xf32>
    %cst_101 = arith.constant 0.707106769 : f32
    %276 = vector.broadcast %cst_101 : f32 to vector<32x128xf32>
    %277 = arith.mulf %275, %276 : vector<32x128xf32>
    %c0_102 = arith.constant 0 : index
    %c0_103 = arith.constant 0 : index
    %c0_104 = arith.constant 0 : index
    %c0_105 = arith.constant 0 : index
    %278 = vector.load %arg12[%c0_102, %c0_103, %c0_104, %c0_105] : memref<3x2x64x32xbf16, #tpu.memory_space<vmem>>, vector<1x1x64x32xbf16>
    %279 = vector.shape_cast %278 : vector<1x1x64x32xbf16> to vector<64x32xbf16>
    %c0_106 = arith.constant 0 : index
    %c0_107 = arith.constant 0 : index
    %c0_108 = arith.constant 0 : index
    %c0_109 = arith.constant 0 : index
    %280 = vector.load %arg13[%c0_106, %c0_107, %c0_108, %c0_109] : memref<3x2x64x1xf32, #tpu.memory_space<vmem>>, vector<1x1x64x1xf32>
    %281 = vector.shape_cast %280 : vector<1x1x64x1xf32> to vector<64x1xf32>
    %c0_110 = arith.constant 0 : index
    %c1_111 = arith.constant 1 : index
    %c0_112 = arith.constant 0 : index
    %c0_113 = arith.constant 0 : index
    %282 = vector.load %arg12[%c0_110, %c1_111, %c0_112, %c0_113] : memref<3x2x64x32xbf16, #tpu.memory_space<vmem>>, vector<1x1x64x32xbf16>
    %283 = vector.shape_cast %282 : vector<1x1x64x32xbf16> to vector<64x32xbf16>
    %c0_114 = arith.constant 0 : index
    %c1_115 = arith.constant 1 : index
    %c0_116 = arith.constant 0 : index
    %c0_117 = arith.constant 0 : index
    %284 = vector.load %arg13[%c0_114, %c1_115, %c0_116, %c0_117] : memref<3x2x64x1xf32, #tpu.memory_space<vmem>>, vector<1x1x64x1xf32>
    %285 = vector.shape_cast %284 : vector<1x1x64x1xf32> to vector<64x1xf32>
    %286 = arith.truncf %277 : vector<32x128xf32> to vector<32x128xbf16>
    %cst_118 = arith.constant dense<0.000000e+00> : vector<64x128xf32>
    %287 = tpu.matmul %279, %286, %cst_118 {dimension_numbers = #tpu.dot_dimension_numbers<[1], [0], [0], [1], [0, 0, 1, 1], [], []>} : vector<64x32xbf16>, vector<32x128xbf16>, vector<64x128xf32> -> vector<64x128xf32>
    %288 = vector.broadcast %281 : vector<64x1xf32> to vector<64x128xf32>
    %289 = arith.addf %287, %288 : vector<64x128xf32>
    %290 = vector.extract_strided_slice %289 {offsets = [0, 0], sizes = [32, 128], strides = [1, 1]} : vector<64x128xf32> to vector<32x128xf32>
    %291 = vector.extract_strided_slice %289 {offsets = [32, 0], sizes = [32, 128], strides = [1, 1]} : vector<64x128xf32> to vector<32x128xf32>
    %cst_119 = arith.constant 0.000000e+00 : f32
    %292 = vector.broadcast %cst_119 : f32 to vector<32x128xf32>
    %293 = arith.subf %292, %291 : vector<32x128xf32>
    %294 = math.exp %293 : vector<32x128xf32>
    %cst_120 = arith.constant 1.000000e+00 : f32
    %295 = vector.broadcast %cst_120 : f32 to vector<32x128xf32>
    %296 = arith.addf %295, %294 : vector<32x128xf32>
    %297 = tpu.reciprocal %296 {approx = true} : vector<32x128xf32> -> vector<32x128xf32>
    %298 = arith.mulf %290, %297 : vector<32x128xf32>
    %299 = arith.addf %277, %298 : vector<32x128xf32>
    %cst_121 = arith.constant 0.707106769 : f32
    %300 = vector.broadcast %cst_121 : f32 to vector<32x128xf32>
    %301 = arith.mulf %299, %300 : vector<32x128xf32>
    %302 = arith.truncf %301 : vector<32x128xf32> to vector<32x128xbf16>
    %cst_122 = arith.constant dense<0.000000e+00> : vector<64x128xf32>
    %303 = tpu.matmul %283, %302, %cst_122 {dimension_numbers = #tpu.dot_dimension_numbers<[1], [0], [0], [1], [0, 0, 1, 1], [], []>} : vector<64x32xbf16>, vector<32x128xbf16>, vector<64x128xf32> -> vector<64x128xf32>
    %304 = vector.broadcast %285 : vector<64x1xf32> to vector<64x128xf32>
    %305 = arith.addf %303, %304 : vector<64x128xf32>
    %306 = vector.extract_strided_slice %305 {offsets = [0, 0], sizes = [32, 128], strides = [1, 1]} : vector<64x128xf32> to vector<32x128xf32>
    %307 = vector.extract_strided_slice %305 {offsets = [32, 0], sizes = [32, 128], strides = [1, 1]} : vector<64x128xf32> to vector<32x128xf32>
    %cst_123 = arith.constant 0.000000e+00 : f32
    %308 = vector.broadcast %cst_123 : f32 to vector<32x128xf32>
    %309 = arith.subf %308, %307 : vector<32x128xf32>
    %310 = math.exp %309 : vector<32x128xf32>
    %cst_124 = arith.constant 1.000000e+00 : f32
    %311 = vector.broadcast %cst_124 : f32 to vector<32x128xf32>
    %312 = arith.addf %311, %310 : vector<32x128xf32>
    %313 = tpu.reciprocal %312 {approx = true} : vector<32x128xf32> -> vector<32x128xf32>
    %314 = arith.mulf %306, %313 : vector<32x128xf32>
    %315 = arith.addf %301, %314 : vector<32x128xf32>
    %cst_125 = arith.constant 0.707106769 : f32
    %316 = vector.broadcast %cst_125 : f32 to vector<32x128xf32>
    %317 = arith.mulf %315, %316 : vector<32x128xf32>
    %318 = vector.extract_strided_slice %317 {offsets = [0, 0], sizes = [16, 128], strides = [1, 1]} : vector<32x128xf32> to vector<16x128xf32>
    %cst_126 = arith.constant 0.000000e+00 : f32
    %319 = vector.broadcast %cst_126 : f32 to vector<16x128xf32>
    %320 = arith.maximumf %318, %319 : vector<16x128xf32>
    %321 = arith.addf %16, %320 : vector<16x128xf32>
    %322 = vector.extract_strided_slice %317 {offsets = [16, 0], sizes = [16, 128], strides = [1, 1]} : vector<32x128xf32> to vector<16x128xf32>
    %c1_127 = arith.constant 1 : index
    %c0_128 = arith.constant 0 : index
    %c0_129 = arith.constant 0 : index
    %323 = vector.load %arg10[%c1_127, %c0_128, %c0_129] : memref<3x16x16xbf16, #tpu.memory_space<vmem>>, vector<1x16x16xbf16>
    %324 = vector.shape_cast %323 : vector<1x16x16xbf16> to vector<16x16xbf16>
    %325 = arith.truncf %322 : vector<16x128xf32> to vector<16x128xbf16>
    %cst_130 = arith.constant dense<0.000000e+00> : vector<16x128xf32>
    %326 = tpu.matmul %324, %325, %cst_130 {dimension_numbers = #tpu.dot_dimension_numbers<[1], [0], [0], [1], [0, 0, 1, 1], [], []>} : vector<16x16xbf16>, vector<16x128xbf16>, vector<16x128xf32> -> vector<16x128xf32>
    %c1_131 = arith.constant 1 : index
    %c0_132 = arith.constant 0 : index
    %c0_133 = arith.constant 0 : index
    %327 = vector.load %arg11[%c1_131, %c0_132, %c0_133] : memref<3x16x1xf32, #tpu.memory_space<vmem>>, vector<1x16x1xf32>
    %328 = vector.shape_cast %327 : vector<1x16x1xf32> to vector<16x1xf32>
    %329 = vector.broadcast %328 : vector<16x1xf32> to vector<16x128xf32>
    %330 = arith.addf %326, %329 : vector<16x128xf32>
    %331 = arith.mulf %330, %249 : vector<16x128xf32>
    %cst_134 = arith.constant dense<0xFF800000> : vector<128xf32>
    %332 = vector.multi_reduction <maximumf>, %331, %cst_134 [0] : vector<16x128xf32> to vector<128xf32>
    %333 = vector.shape_cast %332 : vector<128xf32> to vector<1x128xf32>
    %cst_135 = arith.constant 1.000000e+00 : f32
    %334 = vector.broadcast %cst_135 : f32 to vector<1x128xf32>
    %335 = arith.subf %333, %334 : vector<1x128xf32>
    %336 = arith.addf %335, %333 : vector<1x128xf32>
    %cst_136 = arith.constant 5.000000e-01 : f32
    %337 = vector.broadcast %cst_136 : f32 to vector<1x128xf32>
    %338 = arith.mulf %337, %336 : vector<1x128xf32>
    %339 = vector.broadcast %338 : vector<1x128xf32> to vector<16x128xf32>
    %340 = arith.subf %331, %339 : vector<16x128xf32>
    %cst_137 = arith.constant 0.000000e+00 : f32
    %341 = vector.broadcast %cst_137 : f32 to vector<16x128xf32>
    %342 = arith.maximumf %340, %341 : vector<16x128xf32>
    %cst_138 = arith.constant dense<0.000000e+00> : vector<128xf32>
    %343 = vector.multi_reduction <add>, %342, %cst_138 [0] : vector<16x128xf32> to vector<128xf32>
    %344 = vector.shape_cast %343 : vector<128xf32> to vector<1x128xf32>
    %cst_139 = arith.constant 1.000000e+00 : f32
    %345 = vector.broadcast %cst_139 : f32 to vector<1x128xf32>
    %346 = arith.cmpf ogt, %344, %345 : vector<1x128xf32>
    %347 = arith.select %346, %338, %335 : vector<1x128xi1>, vector<1x128xf32>
    %348 = arith.select %346, %333, %338 : vector<1x128xi1>, vector<1x128xf32>
    %349 = arith.addf %347, %348 : vector<1x128xf32>
    %cst_140 = arith.constant 5.000000e-01 : f32
    %350 = vector.broadcast %cst_140 : f32 to vector<1x128xf32>
    %351 = arith.mulf %350, %349 : vector<1x128xf32>
    %352 = vector.broadcast %351 : vector<1x128xf32> to vector<16x128xf32>
    %353 = arith.subf %331, %352 : vector<16x128xf32>
    %cst_141 = arith.constant 0.000000e+00 : f32
    %354 = vector.broadcast %cst_141 : f32 to vector<16x128xf32>
    %355 = arith.maximumf %353, %354 : vector<16x128xf32>
    %cst_142 = arith.constant dense<0.000000e+00> : vector<128xf32>
    %356 = vector.multi_reduction <add>, %355, %cst_142 [0] : vector<16x128xf32> to vector<128xf32>
    %357 = vector.shape_cast %356 : vector<128xf32> to vector<1x128xf32>
    %cst_143 = arith.constant 1.000000e+00 : f32
    %358 = vector.broadcast %cst_143 : f32 to vector<1x128xf32>
    %359 = arith.cmpf ogt, %357, %358 : vector<1x128xf32>
    %360 = arith.select %359, %351, %347 : vector<1x128xi1>, vector<1x128xf32>
    %361 = arith.select %359, %348, %351 : vector<1x128xi1>, vector<1x128xf32>
    %362 = arith.addf %360, %361 : vector<1x128xf32>
    %cst_144 = arith.constant 5.000000e-01 : f32
    %363 = vector.broadcast %cst_144 : f32 to vector<1x128xf32>
    %364 = arith.mulf %363, %362 : vector<1x128xf32>
    %365 = vector.broadcast %364 : vector<1x128xf32> to vector<16x128xf32>
    %366 = arith.subf %331, %365 : vector<16x128xf32>
    %cst_145 = arith.constant 0.000000e+00 : f32
    %367 = vector.broadcast %cst_145 : f32 to vector<16x128xf32>
    %368 = arith.maximumf %366, %367 : vector<16x128xf32>
    %cst_146 = arith.constant dense<0.000000e+00> : vector<128xf32>
    %369 = vector.multi_reduction <add>, %368, %cst_146 [0] : vector<16x128xf32> to vector<128xf32>
    %370 = vector.shape_cast %369 : vector<128xf32> to vector<1x128xf32>
    %cst_147 = arith.constant 1.000000e+00 : f32
    %371 = vector.broadcast %cst_147 : f32 to vector<1x128xf32>
    %372 = arith.cmpf ogt, %370, %371 : vector<1x128xf32>
    %373 = arith.select %372, %364, %360 : vector<1x128xi1>, vector<1x128xf32>
    %374 = arith.select %372, %361, %364 : vector<1x128xi1>, vector<1x128xf32>
    %375 = arith.addf %373, %374 : vector<1x128xf32>
    %cst_148 = arith.constant 5.000000e-01 : f32
    %376 = vector.broadcast %cst_148 : f32 to vector<1x128xf32>
    %377 = arith.mulf %376, %375 : vector<1x128xf32>
    %378 = vector.broadcast %377 : vector<1x128xf32> to vector<16x128xf32>
    %379 = arith.subf %331, %378 : vector<16x128xf32>
    %cst_149 = arith.constant 0.000000e+00 : f32
    %380 = vector.broadcast %cst_149 : f32 to vector<16x128xf32>
    %381 = arith.maximumf %379, %380 : vector<16x128xf32>
    %cst_150 = arith.constant dense<0.000000e+00> : vector<128xf32>
    %382 = vector.multi_reduction <add>, %381, %cst_150 [0] : vector<16x128xf32> to vector<128xf32>
    %383 = vector.shape_cast %382 : vector<128xf32> to vector<1x128xf32>
    %cst_151 = arith.constant 1.000000e+00 : f32
    %384 = vector.broadcast %cst_151 : f32 to vector<1x128xf32>
    %385 = arith.cmpf ogt, %383, %384 : vector<1x128xf32>
    %386 = arith.select %385, %377, %373 : vector<1x128xi1>, vector<1x128xf32>
    %387 = arith.select %385, %374, %377 : vector<1x128xi1>, vector<1x128xf32>
    %388 = arith.addf %386, %387 : vector<1x128xf32>
    %cst_152 = arith.constant 5.000000e-01 : f32
    %389 = vector.broadcast %cst_152 : f32 to vector<1x128xf32>
    %390 = arith.mulf %389, %388 : vector<1x128xf32>
    %391 = vector.broadcast %390 : vector<1x128xf32> to vector<16x128xf32>
    %392 = arith.subf %331, %391 : vector<16x128xf32>
    %cst_153 = arith.constant 0.000000e+00 : f32
    %393 = vector.broadcast %cst_153 : f32 to vector<16x128xf32>
    %394 = arith.maximumf %392, %393 : vector<16x128xf32>
    %cst_154 = arith.constant dense<0.000000e+00> : vector<128xf32>
    %395 = vector.multi_reduction <add>, %394, %cst_154 [0] : vector<16x128xf32> to vector<128xf32>
    %396 = vector.shape_cast %395 : vector<128xf32> to vector<1x128xf32>
    %cst_155 = arith.constant 1.000000e+00 : f32
    %397 = vector.broadcast %cst_155 : f32 to vector<1x128xf32>
    %398 = arith.cmpf ogt, %396, %397 : vector<1x128xf32>
    %399 = arith.select %398, %390, %386 : vector<1x128xi1>, vector<1x128xf32>
    %400 = arith.select %398, %387, %390 : vector<1x128xi1>, vector<1x128xf32>
    %401 = arith.addf %399, %400 : vector<1x128xf32>
    %cst_156 = arith.constant 5.000000e-01 : f32
    %402 = vector.broadcast %cst_156 : f32 to vector<1x128xf32>
    %403 = arith.mulf %402, %401 : vector<1x128xf32>
    %404 = vector.broadcast %403 : vector<1x128xf32> to vector<16x128xf32>
    %405 = arith.subf %331, %404 : vector<16x128xf32>
    %cst_157 = arith.constant 0.000000e+00 : f32
    %406 = vector.broadcast %cst_157 : f32 to vector<16x128xf32>
    %407 = arith.maximumf %405, %406 : vector<16x128xf32>
    %cst_158 = arith.constant dense<0.000000e+00> : vector<128xf32>
    %408 = vector.multi_reduction <add>, %407, %cst_158 [0] : vector<16x128xf32> to vector<128xf32>
    %409 = vector.shape_cast %408 : vector<128xf32> to vector<1x128xf32>
    %cst_159 = arith.constant 1.000000e+00 : f32
    %410 = vector.broadcast %cst_159 : f32 to vector<1x128xf32>
    %411 = arith.cmpf ogt, %409, %410 : vector<1x128xf32>
    %412 = arith.select %411, %403, %399 : vector<1x128xi1>, vector<1x128xf32>
    %413 = arith.select %411, %400, %403 : vector<1x128xi1>, vector<1x128xf32>
    %414 = arith.addf %412, %413 : vector<1x128xf32>
    %cst_160 = arith.constant 5.000000e-01 : f32
    %415 = vector.broadcast %cst_160 : f32 to vector<1x128xf32>
    %416 = arith.mulf %415, %414 : vector<1x128xf32>
    %417 = vector.broadcast %416 : vector<1x128xf32> to vector<16x128xf32>
    %418 = arith.subf %331, %417 : vector<16x128xf32>
    %cst_161 = arith.constant 0.000000e+00 : f32
    %419 = vector.broadcast %cst_161 : f32 to vector<16x128xf32>
    %420 = arith.maximumf %418, %419 : vector<16x128xf32>
    %cst_162 = arith.constant dense<0.000000e+00> : vector<128xf32>
    %421 = vector.multi_reduction <add>, %420, %cst_162 [0] : vector<16x128xf32> to vector<128xf32>
    %422 = vector.shape_cast %421 : vector<128xf32> to vector<1x128xf32>
    %cst_163 = arith.constant 1.000000e+00 : f32
    %423 = vector.broadcast %cst_163 : f32 to vector<1x128xf32>
    %424 = arith.cmpf ogt, %422, %423 : vector<1x128xf32>
    %425 = arith.select %424, %416, %412 : vector<1x128xi1>, vector<1x128xf32>
    %426 = arith.select %424, %413, %416 : vector<1x128xi1>, vector<1x128xf32>
    %427 = arith.addf %425, %426 : vector<1x128xf32>
    %cst_164 = arith.constant 5.000000e-01 : f32
    %428 = vector.broadcast %cst_164 : f32 to vector<1x128xf32>
    %429 = arith.mulf %428, %427 : vector<1x128xf32>
    %430 = vector.broadcast %429 : vector<1x128xf32> to vector<16x128xf32>
    %431 = arith.subf %331, %430 : vector<16x128xf32>
    %cst_165 = arith.constant 0.000000e+00 : f32
    %432 = vector.broadcast %cst_165 : f32 to vector<16x128xf32>
    %433 = arith.maximumf %431, %432 : vector<16x128xf32>
    %cst_166 = arith.constant dense<0.000000e+00> : vector<128xf32>
    %434 = vector.multi_reduction <add>, %433, %cst_166 [0] : vector<16x128xf32> to vector<128xf32>
    %435 = vector.shape_cast %434 : vector<128xf32> to vector<1x128xf32>
    %cst_167 = arith.constant 1.000000e+00 : f32
    %436 = vector.broadcast %cst_167 : f32 to vector<1x128xf32>
    %437 = arith.cmpf ogt, %435, %436 : vector<1x128xf32>
    %438 = arith.select %437, %429, %425 : vector<1x128xi1>, vector<1x128xf32>
    %439 = arith.select %437, %426, %429 : vector<1x128xi1>, vector<1x128xf32>
    %440 = arith.addf %438, %439 : vector<1x128xf32>
    %cst_168 = arith.constant 5.000000e-01 : f32
    %441 = vector.broadcast %cst_168 : f32 to vector<1x128xf32>
    %442 = arith.mulf %441, %440 : vector<1x128xf32>
    %443 = vector.broadcast %442 : vector<1x128xf32> to vector<16x128xf32>
    %444 = arith.subf %331, %443 : vector<16x128xf32>
    %cst_169 = arith.constant 0.000000e+00 : f32
    %445 = vector.broadcast %cst_169 : f32 to vector<16x128xf32>
    %446 = arith.maximumf %444, %445 : vector<16x128xf32>
    %cst_170 = arith.constant dense<0.000000e+00> : vector<128xf32>
    %447 = vector.multi_reduction <add>, %446, %cst_170 [0] : vector<16x128xf32> to vector<128xf32>
    %448 = vector.shape_cast %447 : vector<128xf32> to vector<1x128xf32>
    %cst_171 = arith.constant 1.000000e+00 : f32
    %449 = vector.broadcast %cst_171 : f32 to vector<1x128xf32>
    %450 = arith.cmpf ogt, %448, %449 : vector<1x128xf32>
    %451 = arith.select %450, %442, %438 : vector<1x128xi1>, vector<1x128xf32>
    %452 = arith.select %450, %439, %442 : vector<1x128xi1>, vector<1x128xf32>
    %453 = arith.addf %451, %452 : vector<1x128xf32>
    %cst_172 = arith.constant 5.000000e-01 : f32
    %454 = vector.broadcast %cst_172 : f32 to vector<1x128xf32>
    %455 = arith.mulf %454, %453 : vector<1x128xf32>
    %456 = vector.broadcast %455 : vector<1x128xf32> to vector<16x128xf32>
    %457 = arith.subf %331, %456 : vector<16x128xf32>
    %cst_173 = arith.constant 0.000000e+00 : f32
    %458 = vector.broadcast %cst_173 : f32 to vector<16x128xf32>
    %459 = arith.maximumf %457, %458 : vector<16x128xf32>
    %cst_174 = arith.constant dense<0.000000e+00> : vector<128xf32>
    %460 = vector.multi_reduction <add>, %459, %cst_174 [0] : vector<16x128xf32> to vector<128xf32>
    %461 = vector.shape_cast %460 : vector<128xf32> to vector<1x128xf32>
    %cst_175 = arith.constant 1.000000e+00 : f32
    %462 = vector.broadcast %cst_175 : f32 to vector<1x128xf32>
    %463 = arith.cmpf ogt, %461, %462 : vector<1x128xf32>
    %464 = arith.select %463, %455, %451 : vector<1x128xi1>, vector<1x128xf32>
    %465 = arith.select %463, %452, %455 : vector<1x128xi1>, vector<1x128xf32>
    %466 = arith.addf %464, %465 : vector<1x128xf32>
    %cst_176 = arith.constant 5.000000e-01 : f32
    %467 = vector.broadcast %cst_176 : f32 to vector<1x128xf32>
    %468 = arith.mulf %467, %466 : vector<1x128xf32>
    %469 = vector.broadcast %468 : vector<1x128xf32> to vector<16x128xf32>
    %470 = arith.cmpf ogt, %331, %469 : vector<16x128xf32>
    %471 = arith.extui %470 : vector<16x128xi1> to vector<16x128xi32>
    %472 = arith.sitofp %471 : vector<16x128xi32> to vector<16x128xf32>
    %cst_177 = arith.constant dense<0.000000e+00> : vector<128xf32>
    %473 = vector.multi_reduction <add>, %472, %cst_177 [0] : vector<16x128xf32> to vector<128xf32>
    %474 = vector.shape_cast %473 : vector<128xf32> to vector<1x128xf32>
    %475 = arith.mulf %331, %472 : vector<16x128xf32>
    %cst_178 = arith.constant dense<0.000000e+00> : vector<128xf32>
    %476 = vector.multi_reduction <add>, %475, %cst_178 [0] : vector<16x128xf32> to vector<128xf32>
    %477 = vector.shape_cast %476 : vector<128xf32> to vector<1x128xf32>
    %cst_179 = arith.constant 1.000000e+00 : f32
    %478 = vector.broadcast %cst_179 : f32 to vector<1x128xf32>
    %479 = arith.subf %477, %478 : vector<1x128xf32>
    %480 = arith.divf %479, %474 : vector<1x128xf32>
    %481 = vector.broadcast %480 : vector<1x128xf32> to vector<16x128xf32>
    %482 = arith.subf %331, %481 : vector<16x128xf32>
    %cst_180 = arith.constant 0.000000e+00 : f32
    %483 = vector.broadcast %cst_180 : f32 to vector<16x128xf32>
    %484 = arith.maximumf %482, %483 : vector<16x128xf32>
    %cst_181 = arith.constant 1.500000e+00 : f32
    %485 = vector.broadcast %cst_181 : f32 to vector<16x128xf32>
    %486 = arith.subf %485, %484 : vector<16x128xf32>
    %487 = arith.mulf %249, %486 : vector<16x128xf32>
    %488 = arith.mulf %484, %14 : vector<16x128xf32>
    %489 = arith.truncf %488 : vector<16x128xf32> to vector<16x128xbf16>
    %cst_182 = arith.constant dense<0.000000e+00> : vector<64x128xf32>
    %490 = tpu.matmul %0, %489, %cst_182 {dimension_numbers = #tpu.dot_dimension_numbers<[1], [0], [0], [1], [0, 0, 1, 1], [], []>} : vector<64x16xbf16>, vector<16x128xbf16>, vector<64x128xf32> -> vector<64x128xf32>
    %491 = arith.addf %490, %4 : vector<64x128xf32>
    %492 = vector.extract_strided_slice %491 {offsets = [0, 0], sizes = [32, 128], strides = [1, 1]} : vector<64x128xf32> to vector<32x128xf32>
    %493 = vector.extract_strided_slice %491 {offsets = [32, 0], sizes = [32, 128], strides = [1, 1]} : vector<64x128xf32> to vector<32x128xf32>
    %cst_183 = arith.constant 0.000000e+00 : f32
    %494 = vector.broadcast %cst_183 : f32 to vector<32x128xf32>
    %495 = arith.subf %494, %493 : vector<32x128xf32>
    %496 = math.exp %495 : vector<32x128xf32>
    %cst_184 = arith.constant 1.000000e+00 : f32
    %497 = vector.broadcast %cst_184 : f32 to vector<32x128xf32>
    %498 = arith.addf %497, %496 : vector<32x128xf32>
    %499 = tpu.reciprocal %498 {approx = true} : vector<32x128xf32> -> vector<32x128xf32>
    %500 = arith.mulf %492, %499 : vector<32x128xf32>
    %501 = arith.truncf %500 : vector<32x128xf32> to vector<32x128xbf16>
    %cst_185 = arith.constant dense<0.000000e+00> : vector<64x128xf32>
    %502 = tpu.matmul %1, %501, %cst_185 {dimension_numbers = #tpu.dot_dimension_numbers<[1], [0], [0], [1], [0, 0, 1, 1], [], []>} : vector<64x32xbf16>, vector<32x128xbf16>, vector<64x128xf32> -> vector<64x128xf32>
    %503 = arith.addf %502, %7 : vector<64x128xf32>
    %504 = vector.extract_strided_slice %503 {offsets = [0, 0], sizes = [32, 128], strides = [1, 1]} : vector<64x128xf32> to vector<32x128xf32>
    %505 = vector.extract_strided_slice %503 {offsets = [32, 0], sizes = [32, 128], strides = [1, 1]} : vector<64x128xf32> to vector<32x128xf32>
    %cst_186 = arith.constant 0.000000e+00 : f32
    %506 = vector.broadcast %cst_186 : f32 to vector<32x128xf32>
    %507 = arith.subf %506, %505 : vector<32x128xf32>
    %508 = math.exp %507 : vector<32x128xf32>
    %cst_187 = arith.constant 1.000000e+00 : f32
    %509 = vector.broadcast %cst_187 : f32 to vector<32x128xf32>
    %510 = arith.addf %509, %508 : vector<32x128xf32>
    %511 = tpu.reciprocal %510 {approx = true} : vector<32x128xf32> -> vector<32x128xf32>
    %512 = arith.mulf %504, %511 : vector<32x128xf32>
    %513 = arith.addf %500, %512 : vector<32x128xf32>
    %cst_188 = arith.constant 0.707106769 : f32
    %514 = vector.broadcast %cst_188 : f32 to vector<32x128xf32>
    %515 = arith.mulf %513, %514 : vector<32x128xf32>
    %c1_189 = arith.constant 1 : index
    %c0_190 = arith.constant 0 : index
    %c0_191 = arith.constant 0 : index
    %c0_192 = arith.constant 0 : index
    %516 = vector.load %arg12[%c1_189, %c0_190, %c0_191, %c0_192] : memref<3x2x64x32xbf16, #tpu.memory_space<vmem>>, vector<1x1x64x32xbf16>
    %517 = vector.shape_cast %516 : vector<1x1x64x32xbf16> to vector<64x32xbf16>
    %c1_193 = arith.constant 1 : index
    %c0_194 = arith.constant 0 : index
    %c0_195 = arith.constant 0 : index
    %c0_196 = arith.constant 0 : index
    %518 = vector.load %arg13[%c1_193, %c0_194, %c0_195, %c0_196] : memref<3x2x64x1xf32, #tpu.memory_space<vmem>>, vector<1x1x64x1xf32>
    %519 = vector.shape_cast %518 : vector<1x1x64x1xf32> to vector<64x1xf32>
    %c1_197 = arith.constant 1 : index
    %c1_198 = arith.constant 1 : index
    %c0_199 = arith.constant 0 : index
    %c0_200 = arith.constant 0 : index
    %520 = vector.load %arg12[%c1_197, %c1_198, %c0_199, %c0_200] : memref<3x2x64x32xbf16, #tpu.memory_space<vmem>>, vector<1x1x64x32xbf16>
    %521 = vector.shape_cast %520 : vector<1x1x64x32xbf16> to vector<64x32xbf16>
    %c1_201 = arith.constant 1 : index
    %c1_202 = arith.constant 1 : index
    %c0_203 = arith.constant 0 : index
    %c0_204 = arith.constant 0 : index
    %522 = vector.load %arg13[%c1_201, %c1_202, %c0_203, %c0_204] : memref<3x2x64x1xf32, #tpu.memory_space<vmem>>, vector<1x1x64x1xf32>
    %523 = vector.shape_cast %522 : vector<1x1x64x1xf32> to vector<64x1xf32>
    %524 = arith.truncf %515 : vector<32x128xf32> to vector<32x128xbf16>
    %cst_205 = arith.constant dense<0.000000e+00> : vector<64x128xf32>
    %525 = tpu.matmul %517, %524, %cst_205 {dimension_numbers = #tpu.dot_dimension_numbers<[1], [0], [0], [1], [0, 0, 1, 1], [], []>} : vector<64x32xbf16>, vector<32x128xbf16>, vector<64x128xf32> -> vector<64x128xf32>
    %526 = vector.broadcast %519 : vector<64x1xf32> to vector<64x128xf32>
    %527 = arith.addf %525, %526 : vector<64x128xf32>
    %528 = vector.extract_strided_slice %527 {offsets = [0, 0], sizes = [32, 128], strides = [1, 1]} : vector<64x128xf32> to vector<32x128xf32>
    %529 = vector.extract_strided_slice %527 {offsets = [32, 0], sizes = [32, 128], strides = [1, 1]} : vector<64x128xf32> to vector<32x128xf32>
    %cst_206 = arith.constant 0.000000e+00 : f32
    %530 = vector.broadcast %cst_206 : f32 to vector<32x128xf32>
    %531 = arith.subf %530, %529 : vector<32x128xf32>
    %532 = math.exp %531 : vector<32x128xf32>
    %cst_207 = arith.constant 1.000000e+00 : f32
    %533 = vector.broadcast %cst_207 : f32 to vector<32x128xf32>
    %534 = arith.addf %533, %532 : vector<32x128xf32>
    %535 = tpu.reciprocal %534 {approx = true} : vector<32x128xf32> -> vector<32x128xf32>
    %536 = arith.mulf %528, %535 : vector<32x128xf32>
    %537 = arith.addf %515, %536 : vector<32x128xf32>
    %cst_208 = arith.constant 0.707106769 : f32
    %538 = vector.broadcast %cst_208 : f32 to vector<32x128xf32>
    %539 = arith.mulf %537, %538 : vector<32x128xf32>
    %540 = arith.truncf %539 : vector<32x128xf32> to vector<32x128xbf16>
    %cst_209 = arith.constant dense<0.000000e+00> : vector<64x128xf32>
    %541 = tpu.matmul %521, %540, %cst_209 {dimension_numbers = #tpu.dot_dimension_numbers<[1], [0], [0], [1], [0, 0, 1, 1], [], []>} : vector<64x32xbf16>, vector<32x128xbf16>, vector<64x128xf32> -> vector<64x128xf32>
    %542 = vector.broadcast %523 : vector<64x1xf32> to vector<64x128xf32>
    %543 = arith.addf %541, %542 : vector<64x128xf32>
    %544 = vector.extract_strided_slice %543 {offsets = [0, 0], sizes = [32, 128], strides = [1, 1]} : vector<64x128xf32> to vector<32x128xf32>
    %545 = vector.extract_strided_slice %543 {offsets = [32, 0], sizes = [32, 128], strides = [1, 1]} : vector<64x128xf32> to vector<32x128xf32>
    %cst_210 = arith.constant 0.000000e+00 : f32
    %546 = vector.broadcast %cst_210 : f32 to vector<32x128xf32>
    %547 = arith.subf %546, %545 : vector<32x128xf32>
    %548 = math.exp %547 : vector<32x128xf32>
    %cst_211 = arith.constant 1.000000e+00 : f32
    %549 = vector.broadcast %cst_211 : f32 to vector<32x128xf32>
    %550 = arith.addf %549, %548 : vector<32x128xf32>
    %551 = tpu.reciprocal %550 {approx = true} : vector<32x128xf32> -> vector<32x128xf32>
    %552 = arith.mulf %544, %551 : vector<32x128xf32>
    %553 = arith.addf %539, %552 : vector<32x128xf32>
    %cst_212 = arith.constant 0.707106769 : f32
    %554 = vector.broadcast %cst_212 : f32 to vector<32x128xf32>
    %555 = arith.mulf %553, %554 : vector<32x128xf32>
    %556 = vector.extract_strided_slice %555 {offsets = [0, 0], sizes = [16, 128], strides = [1, 1]} : vector<32x128xf32> to vector<16x128xf32>
    %cst_213 = arith.constant 0.000000e+00 : f32
    %557 = vector.broadcast %cst_213 : f32 to vector<16x128xf32>
    %558 = arith.maximumf %556, %557 : vector<16x128xf32>
    %559 = arith.addf %321, %558 : vector<16x128xf32>
    %560 = vector.extract_strided_slice %555 {offsets = [16, 0], sizes = [16, 128], strides = [1, 1]} : vector<32x128xf32> to vector<16x128xf32>
    %c2 = arith.constant 2 : index
    %c0_214 = arith.constant 0 : index
    %c0_215 = arith.constant 0 : index
    %561 = vector.load %arg10[%c2, %c0_214, %c0_215] : memref<3x16x16xbf16, #tpu.memory_space<vmem>>, vector<1x16x16xbf16>
    %562 = vector.shape_cast %561 : vector<1x16x16xbf16> to vector<16x16xbf16>
    %563 = arith.truncf %560 : vector<16x128xf32> to vector<16x128xbf16>
    %cst_216 = arith.constant dense<0.000000e+00> : vector<16x128xf32>
    %564 = tpu.matmul %562, %563, %cst_216 {dimension_numbers = #tpu.dot_dimension_numbers<[1], [0], [0], [1], [0, 0, 1, 1], [], []>} : vector<16x16xbf16>, vector<16x128xbf16>, vector<16x128xf32> -> vector<16x128xf32>
    %c2_217 = arith.constant 2 : index
    %c0_218 = arith.constant 0 : index
    %c0_219 = arith.constant 0 : index
    %565 = vector.load %arg11[%c2_217, %c0_218, %c0_219] : memref<3x16x1xf32, #tpu.memory_space<vmem>>, vector<1x16x1xf32>
    %566 = vector.shape_cast %565 : vector<1x16x1xf32> to vector<16x1xf32>
    %567 = vector.broadcast %566 : vector<16x1xf32> to vector<16x128xf32>
    %568 = arith.addf %564, %567 : vector<16x128xf32>
    %569 = arith.mulf %568, %487 : vector<16x128xf32>
    %cst_220 = arith.constant dense<0xFF800000> : vector<128xf32>
    %570 = vector.multi_reduction <maximumf>, %569, %cst_220 [0] : vector<16x128xf32> to vector<128xf32>
    %571 = vector.shape_cast %570 : vector<128xf32> to vector<1x128xf32>
    %cst_221 = arith.constant 1.000000e+00 : f32
    %572 = vector.broadcast %cst_221 : f32 to vector<1x128xf32>
    %573 = arith.subf %571, %572 : vector<1x128xf32>
    %574 = arith.addf %573, %571 : vector<1x128xf32>
    %cst_222 = arith.constant 5.000000e-01 : f32
    %575 = vector.broadcast %cst_222 : f32 to vector<1x128xf32>
    %576 = arith.mulf %575, %574 : vector<1x128xf32>
    %577 = vector.broadcast %576 : vector<1x128xf32> to vector<16x128xf32>
    %578 = arith.subf %569, %577 : vector<16x128xf32>
    %cst_223 = arith.constant 0.000000e+00 : f32
    %579 = vector.broadcast %cst_223 : f32 to vector<16x128xf32>
    %580 = arith.maximumf %578, %579 : vector<16x128xf32>
    %cst_224 = arith.constant dense<0.000000e+00> : vector<128xf32>
    %581 = vector.multi_reduction <add>, %580, %cst_224 [0] : vector<16x128xf32> to vector<128xf32>
    %582 = vector.shape_cast %581 : vector<128xf32> to vector<1x128xf32>
    %cst_225 = arith.constant 1.000000e+00 : f32
    %583 = vector.broadcast %cst_225 : f32 to vector<1x128xf32>
    %584 = arith.cmpf ogt, %582, %583 : vector<1x128xf32>
    %585 = arith.select %584, %576, %573 : vector<1x128xi1>, vector<1x128xf32>
    %586 = arith.select %584, %571, %576 : vector<1x128xi1>, vector<1x128xf32>
    %587 = arith.addf %585, %586 : vector<1x128xf32>
    %cst_226 = arith.constant 5.000000e-01 : f32
    %588 = vector.broadcast %cst_226 : f32 to vector<1x128xf32>
    %589 = arith.mulf %588, %587 : vector<1x128xf32>
    %590 = vector.broadcast %589 : vector<1x128xf32> to vector<16x128xf32>
    %591 = arith.subf %569, %590 : vector<16x128xf32>
    %cst_227 = arith.constant 0.000000e+00 : f32
    %592 = vector.broadcast %cst_227 : f32 to vector<16x128xf32>
    %593 = arith.maximumf %591, %592 : vector<16x128xf32>
    %cst_228 = arith.constant dense<0.000000e+00> : vector<128xf32>
    %594 = vector.multi_reduction <add>, %593, %cst_228 [0] : vector<16x128xf32> to vector<128xf32>
    %595 = vector.shape_cast %594 : vector<128xf32> to vector<1x128xf32>
    %cst_229 = arith.constant 1.000000e+00 : f32
    %596 = vector.broadcast %cst_229 : f32 to vector<1x128xf32>
    %597 = arith.cmpf ogt, %595, %596 : vector<1x128xf32>
    %598 = arith.select %597, %589, %585 : vector<1x128xi1>, vector<1x128xf32>
    %599 = arith.select %597, %586, %589 : vector<1x128xi1>, vector<1x128xf32>
    %600 = arith.addf %598, %599 : vector<1x128xf32>
    %cst_230 = arith.constant 5.000000e-01 : f32
    %601 = vector.broadcast %cst_230 : f32 to vector<1x128xf32>
    %602 = arith.mulf %601, %600 : vector<1x128xf32>
    %603 = vector.broadcast %602 : vector<1x128xf32> to vector<16x128xf32>
    %604 = arith.subf %569, %603 : vector<16x128xf32>
    %cst_231 = arith.constant 0.000000e+00 : f32
    %605 = vector.broadcast %cst_231 : f32 to vector<16x128xf32>
    %606 = arith.maximumf %604, %605 : vector<16x128xf32>
    %cst_232 = arith.constant dense<0.000000e+00> : vector<128xf32>
    %607 = vector.multi_reduction <add>, %606, %cst_232 [0] : vector<16x128xf32> to vector<128xf32>
    %608 = vector.shape_cast %607 : vector<128xf32> to vector<1x128xf32>
    %cst_233 = arith.constant 1.000000e+00 : f32
    %609 = vector.broadcast %cst_233 : f32 to vector<1x128xf32>
    %610 = arith.cmpf ogt, %608, %609 : vector<1x128xf32>
    %611 = arith.select %610, %602, %598 : vector<1x128xi1>, vector<1x128xf32>
    %612 = arith.select %610, %599, %602 : vector<1x128xi1>, vector<1x128xf32>
    %613 = arith.addf %611, %612 : vector<1x128xf32>
    %cst_234 = arith.constant 5.000000e-01 : f32
    %614 = vector.broadcast %cst_234 : f32 to vector<1x128xf32>
    %615 = arith.mulf %614, %613 : vector<1x128xf32>
    %616 = vector.broadcast %615 : vector<1x128xf32> to vector<16x128xf32>
    %617 = arith.subf %569, %616 : vector<16x128xf32>
    %cst_235 = arith.constant 0.000000e+00 : f32
    %618 = vector.broadcast %cst_235 : f32 to vector<16x128xf32>
    %619 = arith.maximumf %617, %618 : vector<16x128xf32>
    %cst_236 = arith.constant dense<0.000000e+00> : vector<128xf32>
    %620 = vector.multi_reduction <add>, %619, %cst_236 [0] : vector<16x128xf32> to vector<128xf32>
    %621 = vector.shape_cast %620 : vector<128xf32> to vector<1x128xf32>
    %cst_237 = arith.constant 1.000000e+00 : f32
    %622 = vector.broadcast %cst_237 : f32 to vector<1x128xf32>
    %623 = arith.cmpf ogt, %621, %622 : vector<1x128xf32>
    %624 = arith.select %623, %615, %611 : vector<1x128xi1>, vector<1x128xf32>
    %625 = arith.select %623, %612, %615 : vector<1x128xi1>, vector<1x128xf32>
    %626 = arith.addf %624, %625 : vector<1x128xf32>
    %cst_238 = arith.constant 5.000000e-01 : f32
    %627 = vector.broadcast %cst_238 : f32 to vector<1x128xf32>
    %628 = arith.mulf %627, %626 : vector<1x128xf32>
    %629 = vector.broadcast %628 : vector<1x128xf32> to vector<16x128xf32>
    %630 = arith.subf %569, %629 : vector<16x128xf32>
    %cst_239 = arith.constant 0.000000e+00 : f32
    %631 = vector.broadcast %cst_239 : f32 to vector<16x128xf32>
    %632 = arith.maximumf %630, %631 : vector<16x128xf32>
    %cst_240 = arith.constant dense<0.000000e+00> : vector<128xf32>
    %633 = vector.multi_reduction <add>, %632, %cst_240 [0] : vector<16x128xf32> to vector<128xf32>
    %634 = vector.shape_cast %633 : vector<128xf32> to vector<1x128xf32>
    %cst_241 = arith.constant 1.000000e+00 : f32
    %635 = vector.broadcast %cst_241 : f32 to vector<1x128xf32>
    %636 = arith.cmpf ogt, %634, %635 : vector<1x128xf32>
    %637 = arith.select %636, %628, %624 : vector<1x128xi1>, vector<1x128xf32>
    %638 = arith.select %636, %625, %628 : vector<1x128xi1>, vector<1x128xf32>
    %639 = arith.addf %637, %638 : vector<1x128xf32>
    %cst_242 = arith.constant 5.000000e-01 : f32
    %640 = vector.broadcast %cst_242 : f32 to vector<1x128xf32>
    %641 = arith.mulf %640, %639 : vector<1x128xf32>
    %642 = vector.broadcast %641 : vector<1x128xf32> to vector<16x128xf32>
    %643 = arith.subf %569, %642 : vector<16x128xf32>
    %cst_243 = arith.constant 0.000000e+00 : f32
    %644 = vector.broadcast %cst_243 : f32 to vector<16x128xf32>
    %645 = arith.maximumf %643, %644 : vector<16x128xf32>
    %cst_244 = arith.constant dense<0.000000e+00> : vector<128xf32>
    %646 = vector.multi_reduction <add>, %645, %cst_244 [0] : vector<16x128xf32> to vector<128xf32>
    %647 = vector.shape_cast %646 : vector<128xf32> to vector<1x128xf32>
    %cst_245 = arith.constant 1.000000e+00 : f32
    %648 = vector.broadcast %cst_245 : f32 to vector<1x128xf32>
    %649 = arith.cmpf ogt, %647, %648 : vector<1x128xf32>
    %650 = arith.select %649, %641, %637 : vector<1x128xi1>, vector<1x128xf32>
    %651 = arith.select %649, %638, %641 : vector<1x128xi1>, vector<1x128xf32>
    %652 = arith.addf %650, %651 : vector<1x128xf32>
    %cst_246 = arith.constant 5.000000e-01 : f32
    %653 = vector.broadcast %cst_246 : f32 to vector<1x128xf32>
    %654 = arith.mulf %653, %652 : vector<1x128xf32>
    %655 = vector.broadcast %654 : vector<1x128xf32> to vector<16x128xf32>
    %656 = arith.subf %569, %655 : vector<16x128xf32>
    %cst_247 = arith.constant 0.000000e+00 : f32
    %657 = vector.broadcast %cst_247 : f32 to vector<16x128xf32>
    %658 = arith.maximumf %656, %657 : vector<16x128xf32>
    %cst_248 = arith.constant dense<0.000000e+00> : vector<128xf32>
    %659 = vector.multi_reduction <add>, %658, %cst_248 [0] : vector<16x128xf32> to vector<128xf32>
    %660 = vector.shape_cast %659 : vector<128xf32> to vector<1x128xf32>
    %cst_249 = arith.constant 1.000000e+00 : f32
    %661 = vector.broadcast %cst_249 : f32 to vector<1x128xf32>
    %662 = arith.cmpf ogt, %660, %661 : vector<1x128xf32>
    %663 = arith.select %662, %654, %650 : vector<1x128xi1>, vector<1x128xf32>
    %664 = arith.select %662, %651, %654 : vector<1x128xi1>, vector<1x128xf32>
    %665 = arith.addf %663, %664 : vector<1x128xf32>
    %cst_250 = arith.constant 5.000000e-01 : f32
    %666 = vector.broadcast %cst_250 : f32 to vector<1x128xf32>
    %667 = arith.mulf %666, %665 : vector<1x128xf32>
    %668 = vector.broadcast %667 : vector<1x128xf32> to vector<16x128xf32>
    %669 = arith.subf %569, %668 : vector<16x128xf32>
    %cst_251 = arith.constant 0.000000e+00 : f32
    %670 = vector.broadcast %cst_251 : f32 to vector<16x128xf32>
    %671 = arith.maximumf %669, %670 : vector<16x128xf32>
    %cst_252 = arith.constant dense<0.000000e+00> : vector<128xf32>
    %672 = vector.multi_reduction <add>, %671, %cst_252 [0] : vector<16x128xf32> to vector<128xf32>
    %673 = vector.shape_cast %672 : vector<128xf32> to vector<1x128xf32>
    %cst_253 = arith.constant 1.000000e+00 : f32
    %674 = vector.broadcast %cst_253 : f32 to vector<1x128xf32>
    %675 = arith.cmpf ogt, %673, %674 : vector<1x128xf32>
    %676 = arith.select %675, %667, %663 : vector<1x128xi1>, vector<1x128xf32>
    %677 = arith.select %675, %664, %667 : vector<1x128xi1>, vector<1x128xf32>
    %678 = arith.addf %676, %677 : vector<1x128xf32>
    %cst_254 = arith.constant 5.000000e-01 : f32
    %679 = vector.broadcast %cst_254 : f32 to vector<1x128xf32>
    %680 = arith.mulf %679, %678 : vector<1x128xf32>
    %681 = vector.broadcast %680 : vector<1x128xf32> to vector<16x128xf32>
    %682 = arith.subf %569, %681 : vector<16x128xf32>
    %cst_255 = arith.constant 0.000000e+00 : f32
    %683 = vector.broadcast %cst_255 : f32 to vector<16x128xf32>
    %684 = arith.maximumf %682, %683 : vector<16x128xf32>
    %cst_256 = arith.constant dense<0.000000e+00> : vector<128xf32>
    %685 = vector.multi_reduction <add>, %684, %cst_256 [0] : vector<16x128xf32> to vector<128xf32>
    %686 = vector.shape_cast %685 : vector<128xf32> to vector<1x128xf32>
    %cst_257 = arith.constant 1.000000e+00 : f32
    %687 = vector.broadcast %cst_257 : f32 to vector<1x128xf32>
    %688 = arith.cmpf ogt, %686, %687 : vector<1x128xf32>
    %689 = arith.select %688, %680, %676 : vector<1x128xi1>, vector<1x128xf32>
    %690 = arith.select %688, %677, %680 : vector<1x128xi1>, vector<1x128xf32>
    %691 = arith.addf %689, %690 : vector<1x128xf32>
    %cst_258 = arith.constant 5.000000e-01 : f32
    %692 = vector.broadcast %cst_258 : f32 to vector<1x128xf32>
    %693 = arith.mulf %692, %691 : vector<1x128xf32>
    %694 = vector.broadcast %693 : vector<1x128xf32> to vector<16x128xf32>
    %695 = arith.subf %569, %694 : vector<16x128xf32>
    %cst_259 = arith.constant 0.000000e+00 : f32
    %696 = vector.broadcast %cst_259 : f32 to vector<16x128xf32>
    %697 = arith.maximumf %695, %696 : vector<16x128xf32>
    %cst_260 = arith.constant dense<0.000000e+00> : vector<128xf32>
    %698 = vector.multi_reduction <add>, %697, %cst_260 [0] : vector<16x128xf32> to vector<128xf32>
    %699 = vector.shape_cast %698 : vector<128xf32> to vector<1x128xf32>
    %cst_261 = arith.constant 1.000000e+00 : f32
    %700 = vector.broadcast %cst_261 : f32 to vector<1x128xf32>
    %701 = arith.cmpf ogt, %699, %700 : vector<1x128xf32>
    %702 = arith.select %701, %693, %689 : vector<1x128xi1>, vector<1x128xf32>
    %703 = arith.select %701, %690, %693 : vector<1x128xi1>, vector<1x128xf32>
    %704 = arith.addf %702, %703 : vector<1x128xf32>
    %cst_262 = arith.constant 5.000000e-01 : f32
    %705 = vector.broadcast %cst_262 : f32 to vector<1x128xf32>
    %706 = arith.mulf %705, %704 : vector<1x128xf32>
    %707 = vector.broadcast %706 : vector<1x128xf32> to vector<16x128xf32>
    %708 = arith.cmpf ogt, %569, %707 : vector<16x128xf32>
    %709 = arith.extui %708 : vector<16x128xi1> to vector<16x128xi32>
    %710 = arith.sitofp %709 : vector<16x128xi32> to vector<16x128xf32>
    %cst_263 = arith.constant dense<0.000000e+00> : vector<128xf32>
    %711 = vector.multi_reduction <add>, %710, %cst_263 [0] : vector<16x128xf32> to vector<128xf32>
    %712 = vector.shape_cast %711 : vector<128xf32> to vector<1x128xf32>
    %713 = arith.mulf %569, %710 : vector<16x128xf32>
    %cst_264 = arith.constant dense<0.000000e+00> : vector<128xf32>
    %714 = vector.multi_reduction <add>, %713, %cst_264 [0] : vector<16x128xf32> to vector<128xf32>
    %715 = vector.shape_cast %714 : vector<128xf32> to vector<1x128xf32>
    %cst_265 = arith.constant 1.000000e+00 : f32
    %716 = vector.broadcast %cst_265 : f32 to vector<1x128xf32>
    %717 = arith.subf %715, %716 : vector<1x128xf32>
    %718 = arith.divf %717, %712 : vector<1x128xf32>
    %719 = vector.broadcast %718 : vector<1x128xf32> to vector<16x128xf32>
    %720 = arith.subf %569, %719 : vector<16x128xf32>
    %cst_266 = arith.constant 0.000000e+00 : f32
    %721 = vector.broadcast %cst_266 : f32 to vector<16x128xf32>
    %722 = arith.maximumf %720, %721 : vector<16x128xf32>
    %723 = arith.mulf %722, %14 : vector<16x128xf32>
    %724 = arith.truncf %723 : vector<16x128xf32> to vector<16x128xbf16>
    %cst_267 = arith.constant dense<0.000000e+00> : vector<64x128xf32>
    %725 = tpu.matmul %0, %724, %cst_267 {dimension_numbers = #tpu.dot_dimension_numbers<[1], [0], [0], [1], [0, 0, 1, 1], [], []>} : vector<64x16xbf16>, vector<16x128xbf16>, vector<64x128xf32> -> vector<64x128xf32>
    %726 = arith.addf %725, %4 : vector<64x128xf32>
    %727 = vector.extract_strided_slice %726 {offsets = [0, 0], sizes = [32, 128], strides = [1, 1]} : vector<64x128xf32> to vector<32x128xf32>
    %728 = vector.extract_strided_slice %726 {offsets = [32, 0], sizes = [32, 128], strides = [1, 1]} : vector<64x128xf32> to vector<32x128xf32>
    %cst_268 = arith.constant 0.000000e+00 : f32
    %729 = vector.broadcast %cst_268 : f32 to vector<32x128xf32>
    %730 = arith.subf %729, %728 : vector<32x128xf32>
    %731 = math.exp %730 : vector<32x128xf32>
    %cst_269 = arith.constant 1.000000e+00 : f32
    %732 = vector.broadcast %cst_269 : f32 to vector<32x128xf32>
    %733 = arith.addf %732, %731 : vector<32x128xf32>
    %734 = tpu.reciprocal %733 {approx = true} : vector<32x128xf32> -> vector<32x128xf32>
    %735 = arith.mulf %727, %734 : vector<32x128xf32>
    %736 = arith.truncf %735 : vector<32x128xf32> to vector<32x128xbf16>
    %cst_270 = arith.constant dense<0.000000e+00> : vector<64x128xf32>
    %737 = tpu.matmul %1, %736, %cst_270 {dimension_numbers = #tpu.dot_dimension_numbers<[1], [0], [0], [1], [0, 0, 1, 1], [], []>} : vector<64x32xbf16>, vector<32x128xbf16>, vector<64x128xf32> -> vector<64x128xf32>
    %738 = arith.addf %737, %7 : vector<64x128xf32>
    %739 = vector.extract_strided_slice %738 {offsets = [0, 0], sizes = [32, 128], strides = [1, 1]} : vector<64x128xf32> to vector<32x128xf32>
    %740 = vector.extract_strided_slice %738 {offsets = [32, 0], sizes = [32, 128], strides = [1, 1]} : vector<64x128xf32> to vector<32x128xf32>
    %cst_271 = arith.constant 0.000000e+00 : f32
    %741 = vector.broadcast %cst_271 : f32 to vector<32x128xf32>
    %742 = arith.subf %741, %740 : vector<32x128xf32>
    %743 = math.exp %742 : vector<32x128xf32>
    %cst_272 = arith.constant 1.000000e+00 : f32
    %744 = vector.broadcast %cst_272 : f32 to vector<32x128xf32>
    %745 = arith.addf %744, %743 : vector<32x128xf32>
    %746 = tpu.reciprocal %745 {approx = true} : vector<32x128xf32> -> vector<32x128xf32>
    %747 = arith.mulf %739, %746 : vector<32x128xf32>
    %748 = arith.addf %735, %747 : vector<32x128xf32>
    %cst_273 = arith.constant 0.707106769 : f32
    %749 = vector.broadcast %cst_273 : f32 to vector<32x128xf32>
    %750 = arith.mulf %748, %749 : vector<32x128xf32>
    %c2_274 = arith.constant 2 : index
    %c0_275 = arith.constant 0 : index
    %c0_276 = arith.constant 0 : index
    %c0_277 = arith.constant 0 : index
    %751 = vector.load %arg12[%c2_274, %c0_275, %c0_276, %c0_277] : memref<3x2x64x32xbf16, #tpu.memory_space<vmem>>, vector<1x1x64x32xbf16>
    %752 = vector.shape_cast %751 : vector<1x1x64x32xbf16> to vector<64x32xbf16>
    %c2_278 = arith.constant 2 : index
    %c0_279 = arith.constant 0 : index
    %c0_280 = arith.constant 0 : index
    %c0_281 = arith.constant 0 : index
    %753 = vector.load %arg13[%c2_278, %c0_279, %c0_280, %c0_281] : memref<3x2x64x1xf32, #tpu.memory_space<vmem>>, vector<1x1x64x1xf32>
    %754 = vector.shape_cast %753 : vector<1x1x64x1xf32> to vector<64x1xf32>
    %c2_282 = arith.constant 2 : index
    %c1_283 = arith.constant 1 : index
    %c0_284 = arith.constant 0 : index
    %c0_285 = arith.constant 0 : index
    %755 = vector.load %arg12[%c2_282, %c1_283, %c0_284, %c0_285] : memref<3x2x64x32xbf16, #tpu.memory_space<vmem>>, vector<1x1x64x32xbf16>
    %756 = vector.shape_cast %755 : vector<1x1x64x32xbf16> to vector<64x32xbf16>
    %c2_286 = arith.constant 2 : index
    %c1_287 = arith.constant 1 : index
    %c0_288 = arith.constant 0 : index
    %c0_289 = arith.constant 0 : index
    %757 = vector.load %arg13[%c2_286, %c1_287, %c0_288, %c0_289] : memref<3x2x64x1xf32, #tpu.memory_space<vmem>>, vector<1x1x64x1xf32>
    %758 = vector.shape_cast %757 : vector<1x1x64x1xf32> to vector<64x1xf32>
    %759 = arith.truncf %750 : vector<32x128xf32> to vector<32x128xbf16>
    %cst_290 = arith.constant dense<0.000000e+00> : vector<64x128xf32>
    %760 = tpu.matmul %752, %759, %cst_290 {dimension_numbers = #tpu.dot_dimension_numbers<[1], [0], [0], [1], [0, 0, 1, 1], [], []>} : vector<64x32xbf16>, vector<32x128xbf16>, vector<64x128xf32> -> vector<64x128xf32>
    %761 = vector.broadcast %754 : vector<64x1xf32> to vector<64x128xf32>
    %762 = arith.addf %760, %761 : vector<64x128xf32>
    %763 = vector.extract_strided_slice %762 {offsets = [0, 0], sizes = [32, 128], strides = [1, 1]} : vector<64x128xf32> to vector<32x128xf32>
    %764 = vector.extract_strided_slice %762 {offsets = [32, 0], sizes = [32, 128], strides = [1, 1]} : vector<64x128xf32> to vector<32x128xf32>
    %cst_291 = arith.constant 0.000000e+00 : f32
    %765 = vector.broadcast %cst_291 : f32 to vector<32x128xf32>
    %766 = arith.subf %765, %764 : vector<32x128xf32>
    %767 = math.exp %766 : vector<32x128xf32>
    %cst_292 = arith.constant 1.000000e+00 : f32
    %768 = vector.broadcast %cst_292 : f32 to vector<32x128xf32>
    %769 = arith.addf %768, %767 : vector<32x128xf32>
    %770 = tpu.reciprocal %769 {approx = true} : vector<32x128xf32> -> vector<32x128xf32>
    %771 = arith.mulf %763, %770 : vector<32x128xf32>
    %772 = arith.addf %750, %771 : vector<32x128xf32>
    %cst_293 = arith.constant 0.707106769 : f32
    %773 = vector.broadcast %cst_293 : f32 to vector<32x128xf32>
    %774 = arith.mulf %772, %773 : vector<32x128xf32>
    %775 = arith.truncf %774 : vector<32x128xf32> to vector<32x128xbf16>
    %cst_294 = arith.constant dense<0.000000e+00> : vector<64x128xf32>
    %776 = tpu.matmul %756, %775, %cst_294 {dimension_numbers = #tpu.dot_dimension_numbers<[1], [0], [0], [1], [0, 0, 1, 1], [], []>} : vector<64x32xbf16>, vector<32x128xbf16>, vector<64x128xf32> -> vector<64x128xf32>
    %777 = vector.broadcast %758 : vector<64x1xf32> to vector<64x128xf32>
    %778 = arith.addf %776, %777 : vector<64x128xf32>
    %779 = vector.extract_strided_slice %778 {offsets = [0, 0], sizes = [32, 128], strides = [1, 1]} : vector<64x128xf32> to vector<32x128xf32>
    %780 = vector.extract_strided_slice %778 {offsets = [32, 0], sizes = [32, 128], strides = [1, 1]} : vector<64x128xf32> to vector<32x128xf32>
    %cst_295 = arith.constant 0.000000e+00 : f32
    %781 = vector.broadcast %cst_295 : f32 to vector<32x128xf32>
    %782 = arith.subf %781, %780 : vector<32x128xf32>
    %783 = math.exp %782 : vector<32x128xf32>
    %cst_296 = arith.constant 1.000000e+00 : f32
    %784 = vector.broadcast %cst_296 : f32 to vector<32x128xf32>
    %785 = arith.addf %784, %783 : vector<32x128xf32>
    %786 = tpu.reciprocal %785 {approx = true} : vector<32x128xf32> -> vector<32x128xf32>
    %787 = arith.mulf %779, %786 : vector<32x128xf32>
    %788 = arith.addf %774, %787 : vector<32x128xf32>
    %cst_297 = arith.constant 0.707106769 : f32
    %789 = vector.broadcast %cst_297 : f32 to vector<32x128xf32>
    %790 = arith.mulf %788, %789 : vector<32x128xf32>
    %791 = vector.extract_strided_slice %790 {offsets = [0, 0], sizes = [16, 128], strides = [1, 1]} : vector<32x128xf32> to vector<16x128xf32>
    %cst_298 = arith.constant 0.000000e+00 : f32
    %792 = vector.broadcast %cst_298 : f32 to vector<16x128xf32>
    %793 = arith.maximumf %791, %792 : vector<16x128xf32>
    %794 = arith.addf %559, %793 : vector<16x128xf32>
    %c0_299 = arith.constant 0 : index
    %c0_300 = arith.constant 0 : index
    %795 = vector.load %arg14[%c0_299, %c0_300] : memref<8x16xf32, #tpu.memory_space<vmem>>, vector<8x16xf32>
    %cst_301 = arith.constant dense<0.000000e+00> : vector<8x128xf32>
    %796 = tpu.matmul %795, %794, %cst_301 {dimension_numbers = #tpu.dot_dimension_numbers<[1], [0], [0], [1], [0, 0, 1, 1], [], []>} : vector<8x16xf32>, vector<16x128xf32>, vector<8x128xf32> -> vector<8x128xf32>
    %c0_302 = arith.constant 0 : index
    %c0_303 = arith.constant 0 : index
    %797 = vector.load %arg15[%c0_302, %c0_303] : memref<8x1xf32, #tpu.memory_space<vmem>>, vector<8x1xf32>
    %798 = vector.broadcast %797 : vector<8x1xf32> to vector<8x128xf32>
    %799 = arith.addf %796, %798 : vector<8x128xf32>
    %c0_304 = arith.constant 0 : index
    %c0_305 = arith.constant 0 : index
    %800 = vector.load %arg16[%c0_304, %c0_305] : memref<8x128xf32, #tpu.memory_space<vmem>>, vector<8x128xf32>
    tpu.vector_store %arg16[%c0_304, %c0_305], %799 {strides = array<i32>} : memref<8x128xf32, #tpu.memory_space<vmem>>, vector<8x128xf32>,
    return
  }
  func.func @transform_0(%arg0: i32) -> (i32, i32) {
    %c0_i32 = arith.constant 0 : i32
    %c0_i32_0 = arith.constant 0 : i32
    return %c0_i32, %arg0 : i32, i32
  }
  func.func @transform_1(%arg0: i32) -> (i32, i32) {
    %c0_i32 = arith.constant 0 : i32
    %c0_i32_0 = arith.constant 0 : i32
    %c0_i32_1 = arith.constant 0 : i32
    return %c0_i32, %c0_i32_0 : i32, i32
  }
  func.func @transform_2(%arg0: i32) -> (i32, i32) {
    %c0_i32 = arith.constant 0 : i32
    %c0_i32_0 = arith.constant 0 : i32
    %c0_i32_1 = arith.constant 0 : i32
    return %c0_i32, %c0_i32_0 : i32, i32
  }
  func.func @transform_3(%arg0: i32) -> (i32, i32) {
    %c0_i32 = arith.constant 0 : i32
    %c0_i32_0 = arith.constant 0 : i32
    %c0_i32_1 = arith.constant 0 : i32
    return %c0_i32, %c0_i32_0 : i32, i32
  }
  func.func @transform_4(%arg0: i32) -> (i32, i32) {
    %c0_i32 = arith.constant 0 : i32
    %c0_i32_0 = arith.constant 0 : i32
    %c0_i32_1 = arith.constant 0 : i32
    return %c0_i32, %c0_i32_0 : i32, i32
  }
  func.func @transform_5(%arg0: i32) -> (i32, i32) {
    %c0_i32 = arith.constant 0 : i32
    %c0_i32_0 = arith.constant 0 : i32
    %c0_i32_1 = arith.constant 0 : i32
    return %c0_i32, %c0_i32_0 : i32, i32
  }
  func.func @transform_6(%arg0: i32) -> (i32, i32) {
    %c0_i32 = arith.constant 0 : i32
    %c0_i32_0 = arith.constant 0 : i32
    %c0_i32_1 = arith.constant 0 : i32
    return %c0_i32, %c0_i32_0 : i32, i32
  }
  func.func @transform_7(%arg0: i32) -> (i32, i32, i32) {
    %c0_i32 = arith.constant 0 : i32
    %c0_i32_0 = arith.constant 0 : i32
    %c0_i32_1 = arith.constant 0 : i32
    %c0_i32_2 = arith.constant 0 : i32
    return %c0_i32, %c0_i32_0, %c0_i32_1 : i32, i32, i32
  }
  func.func @transform_8(%arg0: i32) -> (i32, i32, i32) {
    %c0_i32 = arith.constant 0 : i32
    %c0_i32_0 = arith.constant 0 : i32
    %c0_i32_1 = arith.constant 0 : i32
    %c0_i32_2 = arith.constant 0 : i32
    return %c0_i32, %c0_i32_0, %c0_i32_1 : i32, i32, i32
  }
  func.func @transform_9(%arg0: i32) -> (i32, i32, i32) {
    %c0_i32 = arith.constant 0 : i32
    %c0_i32_0 = arith.constant 0 : i32
    %c0_i32_1 = arith.constant 0 : i32
    %c0_i32_2 = arith.constant 0 : i32
    return %c0_i32, %c0_i32_0, %c0_i32_1 : i32, i32, i32
  }
  func.func @transform_10(%arg0: i32) -> (i32, i32, i32) {
    %c0_i32 = arith.constant 0 : i32
    %c0_i32_0 = arith.constant 0 : i32
    %c0_i32_1 = arith.constant 0 : i32
    %c0_i32_2 = arith.constant 0 : i32
    return %c0_i32, %c0_i32_0, %c0_i32_1 : i32, i32, i32
  }
  func.func @transform_11(%arg0: i32) -> (i32, i32, i32, i32) {
    %c0_i32 = arith.constant 0 : i32
    %c0_i32_0 = arith.constant 0 : i32
    %c0_i32_1 = arith.constant 0 : i32
    %c0_i32_2 = arith.constant 0 : i32
    %c0_i32_3 = arith.constant 0 : i32
    return %c0_i32, %c0_i32_0, %c0_i32_1, %c0_i32_2 : i32, i32, i32, i32
  }
  func.func @transform_12(%arg0: i32) -> (i32, i32, i32, i32) {
    %c0_i32 = arith.constant 0 : i32
    %c0_i32_0 = arith.constant 0 : i32
    %c0_i32_1 = arith.constant 0 : i32
    %c0_i32_2 = arith.constant 0 : i32
    %c0_i32_3 = arith.constant 0 : i32
    return %c0_i32, %c0_i32_0, %c0_i32_1, %c0_i32_2 : i32, i32, i32, i32
  }
  func.func @transform_13(%arg0: i32) -> (i32, i32) {
    %c0_i32 = arith.constant 0 : i32
    %c0_i32_0 = arith.constant 0 : i32
    %c0_i32_1 = arith.constant 0 : i32
    return %c0_i32, %c0_i32_0 : i32, i32
  }
  func.func @transform_14(%arg0: i32) -> (i32, i32) {
    %c0_i32 = arith.constant 0 : i32
    %c0_i32_0 = arith.constant 0 : i32
    %c0_i32_1 = arith.constant 0 : i32
    return %c0_i32, %c0_i32_0 : i32, i32
  }
  func.func @transform_15(%arg0: i32) -> (i32, i32) {
    %c0_i32 = arith.constant 0 : i32
    %c0_i32_0 = arith.constant 0 : i32
    return %c0_i32, %arg0 : i32, i32
  }
}

</mosaic_0001>

<bundles_post_ra>
// kernel: tpu_custom_call.1
= control target key start
LH: loop header
LB: loop body
LE: loop exit
PB: predicated region body
PF: predicated region fallthrough
CT: control target
= control target key end

     0   :  { %s6094_s0 = inlined_call_operand.vmem [shape: f32[16,256], index: 0, kind: input, shape index: {}]   ;;  %s6095_s1 = inlined_call_operand.vmem [shape: f32[16,1], index: 1, kind: input, shape index: {}]   ;;  %s6096_s2 = inlined_call_operand.vmem [shape: f32[16,1], index: 2, kind: input, shape index: {}]   ;;  %s6097_s3 = inlined_call_operand.vmem [shape: bf16[64,16], index: 3, kind: input, shape index: {}]   ;;  %s6098_s4 = inlined_call_operand.vmem [shape: f32[64,1], index: 4, kind: input, shape index: {}]   ;;  %s6099_s5 = inlined_call_operand.vmem [shape: bf16[64,32], index: 5, kind: input, shape index: {}]   ;;  %s6100_s6 = inlined_call_operand.vmem [shape: f32[64,1], index: 6, kind: input, shape index: {}]   ;;  %s6101_s7 = inlined_call_operand.vmem [shape: bf16[2,64,32], index: 7, kind: input, shape index: {}]   ;;  %s6102_s8 = inlined_call_operand.vmem [shape: f32[2,64,1], index: 8, kind: input, shape index: {}]   ;;  %s6103_s9 = inlined_call_operand.vmem [shape: bf16[3,16,16], index: 9, kind: input, shape index: {}]   ;;  %s6104_s10 = inlined_call_operand.vmem [shape: f32[3,16,1], index: 10, kind: input, shape index: {}]   ;;  %s6105_s11 = inlined_call_operand.vmem [shape: bf16[3,2,64,32], index: 11, kind: input, shape index: {}]   ;;  %s6106_s12 = inlined_call_operand.vmem [shape: f32[3,2,64,1], index: 12, kind: input, shape index: {}]   ;;  %s6107_s13 = inlined_call_operand.vmem [shape: f32[8,16], index: 13, kind: input, shape index: {}]   ;;  %s6108_s14 = inlined_call_operand.vmem [shape: f32[8,1], index: 14, kind: input, shape index: {}]   ;;  %s6109_s15 = inlined_call_operand.hbm [shape: f32[8,256], index: 15, kind: output, shape index: {}]  }
   0x1   :  { %6116 = sst [smem:[#allocation14_spill]] %s6094_s0 }
   0x2   :  { %6117 = sst [smem:[#allocation15_spill]] %s6095_s1 }
   0x3   :  { %6118 = sst [smem:[#allocation16_spill]] %s6096_s2 }
   0x4   :  { %20 = vsyncpa [#allocation4], 0 }
   0x5   :  { %22 = vsyncpa [#allocation4 + $0x1], 0  ;;  %s4981_s18 = smov 0   ;;  %s4983_s19 = smov 0  }
   0x6   :  { %s4985_s20 = smov 0   ;;  %s4987_s21 = smov 0  }
   0x7 LB: > { %6119 = sst [smem:[#allocation6_spill]] %s4891_s20  ;;  %s6110_s22 = sadd.s32 4294967295, %s4895_s21   ;;  %s4895_s21 = sphi %s4987_s21, %s6147_s21   ;;  %s4891_s20 = sphi %s4985_s20, %s6146_s20   ;;  %s4887_s19 = sphi %s4983_s19, %s6145_s19   ;;  %s4883_s18 = sphi %s4981_s18, %s6144_s18  }
   0x8   : > { %s3938_s23 = sadd.s32 4294967294, %s4895_s21   ;;  %s5004_s24 = sadd.s32 1, %s4895_s21  }
   0x9   : > { %s35_s25 = sadd.s32 1, %s4891_s20  ;;  %s32_s26 = ssub.s32 %s4895_s21, %s5004_s24 }
   0xa   : > { %p42_p0 = scmp.ne.s32.totalorder %s4891_s20, %s4887_s19  ;;  %p33_p1 = scmp.eq.s32.totalorder %s32_s26, 0 }
   0xb   : > { %p43_p2 = scmp.eq.s32.totalorder %s4895_s21, 0  ;;  %p366_p3 = scmp.eq.s32.totalorder %s6110_s22, 1 }
   0xc   : > { %p371_p4 = scmp.ne.s32.totalorder %s4887_s19, %s4883_s18  ;;  %p372_p7 = scmp.eq.s32.totalorder %s3938_s23, 1 }
   0xd   : > { %s5017_s27 = scalar_select %p33_p1, %s4891_s20, %s35_s25  }
   0xe   : > { %p44_p5 = por %p43_p2, %p42_p0  ;;  %p5019_p6 = por %p366_p3, %p42_p0 }
   0xf   : > { %6120 = sst [smem:[#allocation7_spill]] %s5017_s27  ;;  %p5023_p8 = por %p372_p7, %p371_p4 }
  0x10   : > { %p3940_p9 = scmp.ge.s32.totalorder %s4895_s21, 2 }
  0x12   : > { %430 = sbr.rel (%p3940_p9) target bundleno = 34 (0x22), region = 72 }
  0x17   : > { %433 = sbr.rel (!%p44_p5) target bundleno = 34 (0x22), region = 76  ;;  %s435_s30 = sand.u32 (%p44_p5), 1, %s4891_s20  }
  0x18   : > { %s3942_s16 = sshll.u32 (%p44_p5), %s4895_s21, 3  ;;  %s3941_s17 = sshll.u32 (%p44_p5), %s435_s30, 4 }
  0x19   : > { %s6123_s0 = sld [smem:[#allocation14_spill]] (%p44_p5)  ;;  %s437_s23 = scalar_lea.vmem (%p44_p5), [#allocation2], %s3941_s17 }
  0x1f   : > { %s439_s22 = scalar_lea.vmem %s6123_s0, %s3942_s16 }
  0x20   : > { %v470_v0 = vld [vmem:[%s439_s22] sm:$0xff]  ;;  %v472_v1 = vld [vmem:[%s439_s22 + $0x10] sm:$0xff] }
  0x21   : > { %471 = vst [vmem:[%s437_s23] sm:$0xff] %v470_v0  ;;  %473 = vst [vmem:[%s437_s23 + $0x8] sm:$0xff] %v472_v1 }
  0x22 PF: > { %p3943_p10 = scmp.ge.s32.totalorder %s4895_s21, 1  ;;  %p478_p11 = scmp.lt.s32.totalorder %s4895_s21, 3 }
  0x24   : > { %p479_p12 = pnand %p3943_p10, %p478_p11 }
  0x26   : > { %482 = sbr.rel (%p479_p12) target bundleno = 5990 (0x1766), region = 114 }
  0x2b   : > { %s6124_s2 = sld [smem:[#allocation16_spill]]  ;;  %v4897_v4 = vmov 0   ;;  %v556_v7 = vld [vmem:[%s6098_s4 + $0x38] sm:$0xff]  ;;  %v555_v8 = vld [vmem:[%s6098_s4 + $0x30] sm:$0xff]  ;;  %v554_v9 = vld [vmem:[%s6098_s4 + $0x28] sm:$0xff]  ;;  %vm696_vm0 = vcmask 130048  }
  0x2c   : > { %s6125_s1 = sld [smem:[#allocation15_spill]]  ;;  %4530 = vset.pattern.permute.xlu1 %v4897_v4  ;;  %4529 = vset.pattern.permute.xlu0 %v4897_v4  ;;  %v553_v10 = vld [vmem:[%s6098_s4 + $0x20] sm:$0xff]  ;;  %v552_v11 = vld [vmem:[%s6098_s4 + $0x18] sm:$0xff]  ;;  %v551_v12 = vld [vmem:[%s6098_s4 + $0x10] sm:$0xff]  ;;  %s5225_s0 = sand.u32 1, %s4887_s19   ;;  %vm820_vm1 = vcmask 261120  }
  0x2d   : > { %v550_v13 = vld [vmem:[%s6098_s4 + $0x8] sm:$0xff]  ;;  %v549_v14 = vld [vmem:[%s6098_s4] sm:$0xff]  ;;  %v604_v15 = vld [vmem:[%s6100_s6 + $0x38] sm:$0xff]  ;;  %s3944_s26 = sshll.u32 %s5225_s0, 4  ;;  %vm4899_vm2 = vmmov 0   ;;  %s3945_s20 = sshll.u32 %s5225_s0, 3 }
  0x2e   : > { %v603_v16 = vld [vmem:[%s6100_s6 + $0x30] sm:$0xff]  ;;  %v5082_v17 = vld [vmem:[%s6097_s3] sm:$0xff]   ;;  %v602_v18 = vld [vmem:[%s6100_s6 + $0x28] sm:$0xff]  ;;  %s3860_s16 = scalar_lea.sflag [#allocation4], %s5225_s0 }
  0x2f   : > { %v601_v19 = vld [vmem:[%s6100_s6 + $0x20] sm:$0xff]  ;;  %4280 = vmatprep.mubr.msk.bf16.mxu0 %vm696_vm0, %v5082_v17  ;;  %v600_v20 = vld [vmem:[%s6100_s6 + $0x18] sm:$0xff]  ;;  %v599_v21 = vld [vmem:[%s6100_s6 + $0x10] sm:$0xff] }
  0x30   : > { %v598_v22 = vld [vmem:[%s6100_s6 + $0x8] sm:$0xff]  ;;  %v597_v23 = vld [vmem:[%s6100_s6] sm:$0xff]  ;;  %v945_v24 = vld [vmem:[%s6102_s8 + $0x38] sm:$0xff] }
  0x31   : > { %v661_v2 = vld [vmem:[%s6124_s2] sm:$0xff]  ;;  %v662_v5 = vld [vmem:[%s6124_s2 + $0x8] sm:$0xff]  ;;  %v944_v25 = vld [vmem:[%s6102_s8 + $0x30] sm:$0xff] }
  0x32   : > { %v647_v3 = vld [vmem:[%s6125_s1] sm:$0xff]  ;;  %665 = vperm.xlu1 %4530, %v661_v2   ;;  %v648_v6 = vld [vmem:[%s6125_s1 + $0x8] sm:$0xff]  ;;  %v941_v28 = vld [vmem:[%s6102_s8 + $0x18] sm:$0xff]  ;;  %s487_s1 = scalar_lea.vmem [#allocation2], %s3944_s26  ;;  %s6141_s26 = sadd.s32 4294967295, %s4895_s21  }
  0x33   : > { %651 = vperm.xlu0 %4529, %v647_v3   ;;  %v943_v26 = vld [vmem:[%s6102_s8 + $0x28] sm:$0xff]  ;;  %v942_v27 = vld [vmem:[%s6102_s8 + $0x20] sm:$0xff]  ;;  %v940_v29 = vld [vmem:[%s6102_s8 + $0x10] sm:$0xff]  ;;  %s4174_s27 = sshll.u32 %s6141_s26, 7  ;;  %s4900_s26 = smov [#allocation3]  }
  0x34   : > { %v939_v30 = vld [vmem:[%s6102_s8 + $0x8] sm:$0xff]  ;;  %v938_v31 = vld [vmem:[%s6102_s8] sm:$0xff]  ;;  %v3977_v32 = vld [vmem:[%s6102_s8 + $0x78] sm:$0xff]  ;;  %s6057_s22 = scalar_lea.hbm %s6109_s15, %s4174_s27 }
  0x35   : > { %v3976_v33 = vld [vmem:[%s6102_s8 + $0x70] sm:$0xff]  ;;  %v3973_v34 = vld [vmem:[%s6102_s8 + $0x58] sm:$0xff]  ;;  %v1286_v36 = vld [vmem:[%s6104_s10 + $0x8] sm:$0xff] }
  0x36   : > { %670 = vperm.xlu1 %4530, %v662_v5   ;;  %v3972_v35 = vld [vmem:[%s6102_s8 + $0x50] sm:$0xff]  ;;  %v1285_v37 = vld [vmem:[%s6104_s10] sm:$0xff]  ;;  %v1753_v38 = vld [vmem:[%s6106_s12 + $0x38] sm:$0xff] }
  0x37   : > { %656 = vperm.xlu0 %4529, %v648_v6   ;;  %v1752_v39 = vld [vmem:[%s6106_s12 + $0x30] sm:$0xff]  ;;  %v1751_v40 = vld [vmem:[%s6106_s12 + $0x28] sm:$0xff]  ;;  %v1750_v41 = vld [vmem:[%s6106_s12 + $0x20] sm:$0xff] }
  0x38   : > { %v1749_v42 = vld [vmem:[%s6106_s12 + $0x18] sm:$0xff]  ;;  %v1748_v43 = vld [vmem:[%s6106_s12 + $0x10] sm:$0xff]  ;;  %v1747_v44 = vld [vmem:[%s6106_s12 + $0x8] sm:$0xff] }
  0x39   : > { %v1746_v45 = vld [vmem:[%s6106_s12] sm:$0xff]  ;;  %v4023_v46 = vld [vmem:[%s6106_s12 + $0x78] sm:$0xff]  ;;  %v4022_v47 = vld [vmem:[%s6106_s12 + $0x70] sm:$0xff] }
  0x3a   : > { %594 = vperm.xlu1 %4530, %v556_v7   ;;  %v4019_v48 = vld [vmem:[%s6106_s12 + $0x58] sm:$0xff]  ;;  %v4018_v49 = vld [vmem:[%s6106_s12 + $0x50] sm:$0xff]  ;;  %v4071_v54 = vld [vmem:[%s6106_s12 + $0xa8] sm:$0xff] }
  0x3b   : > { %589 = vperm.xlu0 %4529, %v555_v8   ;;  %v4043_v50 = vld [vmem:[%s6104_s10 + $0x18] sm:$0xff]  ;;  %v4042_v51 = vld [vmem:[%s6104_s10 + $0x10] sm:$0xff]  ;;  %v4070_v55 = vld [vmem:[%s6106_s12 + $0xa0] sm:$0xff] }
  0x3c   : > { %v4073_v52 = vld [vmem:[%s6106_s12 + $0xb8] sm:$0xff]  ;;  %v4072_v53 = vld [vmem:[%s6106_s12 + $0xb0] sm:$0xff]  ;;  %v4067_v58 = vld [vmem:[%s6106_s12 + $0x88] sm:$0xff] }
  0x3d   : > { %v4069_v56 = vld [vmem:[%s6106_s12 + $0x98] sm:$0xff]  ;;  %v4068_v57 = vld [vmem:[%s6106_s12 + $0x90] sm:$0xff]  ;;  %v4066_v59 = vld [vmem:[%s6106_s12 + $0x80] sm:$0xff] }
  0x3e   : > { %584 = vperm.xlu1 %4530, %v554_v9   ;;  %v4089_v60 = vld [vmem:[%s6106_s12 + $0xf8] sm:$0xff]  ;;  %v4088_v61 = vld [vmem:[%s6106_s12 + $0xf0] sm:$0xff]  ;;  %v4109_v0 = vld [vmem:[%s6104_s10 + $0x28] sm:$0xff] }
  0x3f   : > { %579 = vperm.xlu0 %4529, %v553_v10   ;;  %v4085_v62 = vld [vmem:[%s6106_s12 + $0xd8] sm:$0xff]  ;;  %v4084_v63 = vld [vmem:[%s6106_s12 + $0xd0] sm:$0xff]  ;;  %v4108_v1 = vld [vmem:[%s6104_s10 + $0x20] sm:$0xff] }
  0x40   : > { %v4139_v2 = vld [vmem:[%s6106_s12 + $0x138] sm:$0xff]  ;;  %v4138_v3 = vld [vmem:[%s6106_s12 + $0x130] sm:$0xff]  ;;  %v4137_v8 = vld [vmem:[%s6106_s12 + $0x128] sm:$0xff] }
  0x41   : > { %v645_v6 = vld [vmem:[%s487_s1] sm:$0xff]  ;;  %v646_v7 = vld [vmem:[%s487_s1 + $0x8] sm:$0xff]  ;;  %s531_s1 = scalar_lea.vmem [#allocation3], %s3945_s20  ;;  %s4839_s20 = sshll.u32 %s4900_s26, 4  ;;  %s4840_s20 = int_to_ptr.vmem [resolvable:$false] %s4839_s20 }
  0x42   : > { %574 = vperm.xlu1 %4530, %v552_v11   ;;  %v4136_v9 = vld [vmem:[%s6106_s12 + $0x120] sm:$0xff]  ;;  %s3873_s23 = sshll.u32 %s531_s1, 4  ;;  %s4841_s2 = scalar_lea.vmem %s4840_s20, 256  ;;  %s3874_s23 = int_to_ptr.vmem [resolvable:$true] %s3873_s23 }
  0x43   : > { %569 = vperm.xlu0 %4529, %v551_v12   ;;  %s4835_s17 = scalar_lea.vmem %s3874_s23, 128  ;;  %p4842_p2 = scmp.lt.s32.totalorder %s3874_s23, %s4840_s20 }
  0x44   : > { %p4836_p13 = scmp.ne.s32.totalorder %s3874_s23, %s4835_s17  ;;  %p4843_p3 = scmp.lt.s32.totalorder %s4841_s2, %s4835_s17 }
  0x46   : > { %564 = vperm.xlu1 %4530, %v550_v13   ;;  %p4837_p0 = pnand %p4836_p13, %p5019_p6  ;;  %p4844_p4 = por %p4843_p3, %p4842_p2 }
  0x47   : > { %559 = vperm.xlu0 %4529, %v549_v14   ;;  %v4135_v14 = vld [vmem:[%s6106_s12 + $0x118] sm:$0xff] }
  0x48   : > { %p4838_p1 = pneg %p4837_p0 }
  0x4a   : > { %642 = vperm.xlu1 %4530, %v604_v15   ;;  %v4134_v15 = vld [vmem:[%s6106_s12 + $0x110] sm:$0xff]  ;;  %p4845_p5 = pnand %p4844_p4, %p4838_p1 }
  0x4b   : > { %637 = vperm.xlu0 %4529, %v603_v16  }
  0x4e   : > { %632 = vperm.xlu1 %4530, %v602_v18  }
  0x4f   : > { %627 = vperm.xlu0 %4529, %v601_v19  }
  0x52   : > { %622 = vperm.xlu1 %4530, %v600_v20   ;;  %v4133_v20 = vld [vmem:[%s6106_s12 + $0x108] sm:$0xff] }
  0x53   : > { %617 = vperm.xlu0 %4529, %v599_v21   ;;  %v4132_v21 = vld [vmem:[%s6106_s12 + $0x100] sm:$0xff] }
  0x56   : > { %612 = vperm.xlu1 %4530, %v598_v22   ;;  %v4532_v22 = vld [vmem:[%s6097_s3 + $0x8] sm:$0xff]  }
  0x57   : > { %607 = vperm.xlu0 %4529, %v597_v23   ;;  %v4533_v23 = vld [vmem:[%s6097_s3 + $0x10] sm:$0xff]  }
  0x5a   : > { %1003 = vperm.xlu1 %4530, %v945_v24   ;;  %v4087_v24 = vld [vmem:[%s6106_s12 + $0xe8] sm:$0xff] }
  0x5b   : > { %998 = vperm.xlu0 %4529, %v944_v25   ;;  %v4021_v25 = vld [vmem:[%s6106_s12 + $0x68] sm:$0xff] }
  0x5e   : > { %993 = vperm.xlu1 %4530, %v943_v26   ;;  %v4086_v26 = vld [vmem:[%s6106_s12 + $0xe0] sm:$0xff] }
  0x5f   : > { %988 = vperm.xlu0 %4529, %v942_v27   ;;  %v4020_v27 = vld [vmem:[%s6106_s12 + $0x60] sm:$0xff] }
  0x62   : > { %983 = vperm.xlu1 %4530, %v941_v28   ;;  %v5287_v28 = vld [vmem:[%s6097_s3 + $0x18] sm:$0xff]  }
  0x63   : > { %978 = vperm.xlu0 %4529, %v940_v29   ;;  %v4152_v29 = vld [vmem:[%s6106_s12 + $0x160] sm:$0xff] }
  0x66   : > { %973 = vperm.xlu1 %4530, %v939_v30   ;;  %v4153_v30 = vld [vmem:[%s6106_s12 + $0x168] sm:$0xff] }
  0x67   : > { %968 = vperm.xlu0 %4529, %v938_v31   ;;  %v4083_v31 = vld [vmem:[%s6106_s12 + $0xc8] sm:$0xff] }
  0x6a   : > { %1170 = vperm.xlu1 %4530, %v3977_v32   ;;  %v4017_v32 = vld [vmem:[%s6106_s12 + $0x48] sm:$0xff] }
  0x6b   : > { %1165 = vperm.xlu0 %4529, %v3976_v33   ;;  %v4082_v33 = vld [vmem:[%s6106_s12 + $0xc0] sm:$0xff] }
  0x6e   : > { %1152 = vperm.xlu1 %4530, %v3973_v34   ;;  %v4016_v34 = vld [vmem:[%s6106_s12 + $0x40] sm:$0xff] }
  0x6f   : > { %1147 = vperm.xlu0 %4529, %v3972_v35   ;;  %v4148_v35 = vld [vmem:[%s6106_s12 + $0x140] sm:$0xff] }
  0x72   : > { %1294 = vperm.xlu1 %4530, %v1286_v36   ;;  %v4149_v36 = vld [vmem:[%s6106_s12 + $0x148] sm:$0xff] }
  0x73   : > { %1289 = vperm.xlu0 %4529, %v1285_v37   ;;  %v3779_v37 = vld [vmem:[%s6108_s14] sm:$0xff] }
  0x76   : > { %1811 = vperm.xlu1 %4530, %v1753_v38   ;;  %v5321_v38 = vld [vmem:[%s6099_s5] sm:$0xff]  }
  0x77   : > { %1806 = vperm.xlu0 %4529, %v1752_v39   ;;  %4292 = vmatprep.mubr.msk.bf16.mxu1 %vm820_vm1, %v5321_v38 }
  0x7a   : > { %1801 = vperm.xlu1 %4530, %v1751_v40  }
  0x7b   : > { %1796 = vperm.xlu0 %4529, %v1750_v41  }
  0x7e   : > { %1791 = vperm.xlu1 %4530, %v1749_v42  }
  0x7f   : > { %1786 = vperm.xlu0 %4529, %v1748_v43  }
  0x82   : > { %1781 = vperm.xlu1 %4530, %v1747_v44  }
  0x83   : > { %1776 = vperm.xlu0 %4529, %v1746_v45  }
  0x86   : > { %1982 = vperm.xlu1 %4530, %v4023_v46  }
  0x87   : > { %1977 = vperm.xlu0 %4529, %v4022_v47  }
  0x8a   : > { %1962 = vperm.xlu1 %4530, %v4019_v48  }
  0x8b   : > { %1957 = vperm.xlu0 %4529, %v4018_v49  }
  0x8e   : > { %2132 = vperm.xlu1 %4530, %v4043_v50  }
  0x8f   : > { %2127 = vperm.xlu0 %4529, %v4042_v51  }
  0x92   : > { %2655 = vperm.xlu1 %4530, %v4073_v52  }
  0x93   : > { %2650 = vperm.xlu0 %4529, %v4072_v53  }
  0x96   : > { %2645 = vperm.xlu1 %4530, %v4071_v54  }
  0x97   : > { %2640 = vperm.xlu0 %4529, %v4070_v55  }
  0x9a   : > { %2635 = vperm.xlu1 %4530, %v4069_v56  }
  0x9b   : > { %2630 = vperm.xlu0 %4529, %v4068_v57  }
  0x9e   : > { %2625 = vperm.xlu1 %4530, %v4067_v58  }
  0x9f   : > { %2620 = vperm.xlu0 %4529, %v4066_v59  }
  0xa2   : > { %2826 = vperm.xlu1 %4530, %v4089_v60  }
  0xa3   : > { %2821 = vperm.xlu0 %4529, %v4088_v61  }
  0xa6   : > { %2806 = vperm.xlu1 %4530, %v4085_v62  }
  0xa7   : > { %2801 = vperm.xlu0 %4529, %v4084_v63  }
  0xaa   : > { %2976 = vperm.xlu1 %4530, %v4109_v0  }
  0xab   : > { %2971 = vperm.xlu0 %4529, %v4108_v1  }
  0xad   : > { %v666_v4 = vpop.permute.xlu1 %665 }
  0xae   : > { %v652_v5 = vpop.permute.xlu0 %651  ;;  %3495 = vperm.xlu1 %4530, %v4139_v2  }
  0xaf   : > { %3490 = vperm.xlu0 %4529, %v4138_v3   ;;  %v659_v10 = vmul.f32 %v652_v5, %v645_v6 }
  0xb1   : > { %v671_v13 = vpop.permute.xlu1 %670  ;;  %v5252_v16 = vadd.f32 %v666_v4, %v659_v10 }
  0xb2   : > { %v657_v11 = vpop.permute.xlu0 %656  ;;  %3485 = vperm.xlu1 %4530, %v4137_v8  }
  0xb3   : > { %v660_v12 = vmul.f32 %v657_v11, %v646_v7  ;;  %3480 = vperm.xlu0 %4529, %v4136_v9  }
  0xb5   : > { %v5254_v18 = vadd.f32 %v671_v13, %v660_v12  ;;  %v5327_v44 = vpop.permute.xlu1 %594 }
  0xb6   : > { %3475 = vperm.xlu1 %4530, %v4135_v14   ;;  %v5325_v41 = vpop.permute.xlu0 %589 }
  0xb7   : > { %3470 = vperm.xlu0 %4529, %v4134_v15   ;;  %v675_v19 = vpack.c.bf16 %v5254_v18, %v5252_v16 }
  0xb9   : > { %4278 = vmatprep.subr.bf16.mxu0 %v675_v19  ;;  %v5334_v55 = vpop.permute.xlu1 %584 }
  0xba   : > { %4279 = vmatpush3.bf16.msra.mxu0 %v675_v19  ;;  %3465 = vperm.xlu1 %4530, %v4133_v20   ;;  %v5330_v47 = vpop.permute.xlu0 %579 }
  0xbb   : > { %3460 = vperm.xlu0 %4529, %v4132_v21  }
  0xbd   : > { %4281 = vmatmul.mubr.msk.bf16.vlgmr.msra.gmra.mxu0 %vm696_vm0, %v4532_v22  ;;  %v5337_v7 = vpop.permute.xlu1 %574 }
  0xbe   : > { %4284 = vmatprep.mubr.msk.bf16.mxu0 %vm696_vm0, %v4533_v23  ;;  %2816 = vperm.xlu1 %4530, %v4087_v24   ;;  %v5339_v8 = vpop.permute.xlu0 %569 }
  0xbf   : > { %1972 = vperm.xlu0 %4529, %v4021_v25  }
  0xc1   : > { %v5343_v14 = vpop.permute.xlu1 %564 }
  0xc2   : > { %2811 = vperm.xlu1 %4530, %v4086_v26   ;;  %v5345_v15 = vpop.permute.xlu0 %559 }
  0xc3   : > { %1967 = vperm.xlu0 %4529, %v4020_v27  }
  0xc5   : > { %4285 = vmatmul.mubr.msk.bf16.gmra.mxu0 %vm696_vm0, %v5287_v28 }
  0xc6   : > { %3649 = vperm.xlu1 %4530, %v4152_v29   ;;  %v5364_v29 = vld [vmem:[%s6099_s5 + $0x8] sm:$0xff]  }
  0xc7   : > { %3654 = vperm.xlu0 %4529, %v4153_v30   ;;  %v5369_v30 = vld [vmem:[%s6099_s5 + $0x10] sm:$0xff]  }
  0xca   : > { %2796 = vperm.xlu1 %4530, %v4083_v31   ;;  %v5378_v31 = vld [vmem:[%s6099_s5 + $0x18] sm:$0xff]  }
  0xcb   : > { %1952 = vperm.xlu0 %4529, %v4017_v32   ;;  %v4539_v32 = vld [vmem:[%s6101_s7] sm:$0xff]  }
  0xcc   : > { %4304 = vmatprep.mubr.msk.bf16.mxu0 %vm820_vm1, %v4539_v32 }
  0xce   : > { %2791 = vperm.xlu1 %4530, %v4082_v33  }
  0xcf   : > { %1947 = vperm.xlu0 %4529, %v4016_v34  }
  0xd2   : > { %3631 = vperm.xlu1 %4530, %v4148_v35   ;;  %v5386_v35 = vpop.permute.xlu0 %637 }
  0xd3   : > { %3636 = vperm.xlu0 %4529, %v4149_v36  }
  0xd7   : > { %3782 = vperm.xlu0 %4529, %v3779_v37  }
 0x17d   : > { %v4282_v39 = vpop.f32.mrf.mxu0 }
 0x17e   : > { %v752_v11 = vadd.f32 %v4282_v39, %v5339_v8  ;;  %v5388_v39 = vpop.permute.xlu1 %642 }
 0x17f   : > { %v743_v40 = vpop.f32.mrf.mxu0 }
 0x180   : > { %v744_v19 = vadd.f32 %v743_v40, %v5345_v15 }
 0x181   : > { %v4283_v42 = vpop.f32.mrf.mxu0 }
 0x182   : > { %v755_v12 = vadd.f32 %v4283_v42, %v5337_v7 }
 0x183   : > { %v746_v43 = vpop.f32.mrf.mxu0 }
 0x184   : > { %v747_v20 = vadd.f32 %v746_v43, %v5343_v14  ;;  %v5391_v43 = vpop.permute.xlu0 %627 }
 0x185   : > { %v4286_v45 = vpop.f32.mrf.mxu0 }
 0x186   : > { %v768_v46 = vadd.f32 %v4286_v45, %v5325_v41 }
 0x187   : > { %v759_v48 = vpop.f32.mrf.mxu0 }
 0x188   : > { %v776_v49 = vsub.f32 0.0, %v768_v46  ;;  %v760_v50 = vadd.f32 %v759_v48, %v5330_v47 }
 0x189   : > { %v4287_v51 = vpop.f32.mrf.mxu0 }
 0x18a   : > { %v782_v52 = vmul.f32 1.442695, %v776_v49  ;;  %v774_v53 = vsub.f32 0.0, %v760_v50  ;;  %v771_v54 = vadd.f32 %v4287_v51, %v5327_v44 }
 0x18b   : > { %v762_v56 = vpop.f32.mrf.mxu0 }
 0x18c   : > { %4574 = vpow2.f32 %v782_v52  ;;  %v778_v57 = vmul.f32 1.442695, %v774_v53  ;;  %v777_v58 = vsub.f32 0.0, %v771_v54  ;;  %v763_v59 = vadd.f32 %v762_v56, %v5334_v55  ;;  %v5395_v53 = vpop.permute.xlu1 %632 }
 0x18e   : > { %4576 = vpow2.f32 %v778_v57  ;;  %v784_v60 = vmul.f32 1.442695, %v777_v58  ;;  %v775_v61 = vsub.f32 0.0, %v763_v59 }
 0x190   : > { %4578 = vpow2.f32 %v784_v60  ;;  %v780_v62 = vmul.f32 1.442695, %v775_v61 }
 0x192   : > { %4580 = vpow2.f32 %v780_v62 }
 0x199   : > { %v4575_v63 = vpop.eup %4574 }
 0x19a   : > { %v788_v0 = vadd.f32 1.0, %v4575_v63 }
 0x19b   : > { %v4577_v1 = vpop.eup %4576 }
 0x19c   : > { %v786_v2 = vadd.f32 1.0, %v4577_v1  ;;  %4582 = vrcp.f32 %v788_v0 }
 0x19d   : > { %v4579_v3 = vpop.eup %4578 }
 0x19e   : > { %v789_v4 = vadd.f32 1.0, %v4579_v3  ;;  %4584 = vrcp.f32 %v786_v2 }
 0x19f   : > { %v4581_v5 = vpop.eup %4580 }
 0x1a0   : > { %4586 = vrcp.f32 %v789_v4  ;;  %v787_v6 = vadd.f32 1.0, %v4581_v5 }
 0x1a2   : > { %4588 = vrcp.f32 %v787_v6  ;;  %v5398_v6 = vpop.permute.xlu0 %617 }
 0x1a9   : > { %v4583_v9 = vpop.eup %4582 }
 0x1aa   : > { %v5349_v21 = vmul.f32 %v4583_v9, %v752_v11  ;;  %v5400_v9 = vpop.permute.xlu1 %622 }
 0x1ab   : > { %v4585_v10 = vpop.eup %4584 }
 0x1ac   : > { %v5355_v25 = vmul.f32 %v4585_v10, %v744_v19 }
 0x1ad   : > { %v4587_v13 = vpop.eup %4586 }
 0x1ae   : > { %v5351_v22 = vmul.f32 %v4587_v13, %v755_v12  ;;  %v5403_v12 = vpop.permute.xlu0 %607  ;;  %v5407_v32 = vpop.permute.xlu1 %612 }
 0x1af   : > { %v4589_v23 = vpop.eup %4588 }
 0x1b0   : > { %v799_v24 = vpack.c.bf16 %v5351_v22, %v5349_v21  ;;  %v5357_v26 = vmul.f32 %v4589_v23, %v747_v20 }
 0x1b2   : > { %4288 = vmatprep.subr.bf16.mxu1 %v799_v24  ;;  %v798_v27 = vpack.c.bf16 %v5357_v26, %v5355_v25 }
 0x1b3   : > { %4289 = vmatpush3.bf16.msra.mxu1 %v799_v24 }
 0x1b4   : > { %4290 = vmatprep.subr.bf16.mxu1 %v798_v27 }
 0x1b7   : > { %4291 = vmatpush3.bf16.msra.mxu1 %v798_v27 }
 0x1ba   : > { %4293 = vmatmul.mubr.msk.bf16.vlgmr.msra.gmra.mxu1 %vm820_vm1, %v5364_v29 }
 0x1bb   : > { %4296 = vmatprep.mubr.msk.bf16.mxu1 %vm820_vm1, %v5369_v30 }
 0x1c2   : > { %4297 = vmatmul.mubr.msk.bf16.gmra.mxu1 %vm820_vm1, %v5378_v31 }
 0x27a   : > { %v4294_v33 = vpop.f32.mrf.mxu1 }
 0x27b   : > { %v876_v10 = vadd.f32 %v4294_v33, %v5398_v6 }
 0x27c   : > { %v867_v34 = vpop.f32.mrf.mxu1 }
 0x27d   : > { %v868_v13 = vadd.f32 %v867_v34, %v5403_v12 }
 0x27e   : > { %v4295_v36 = vpop.f32.mrf.mxu1 }
 0x27f   : > { %v879_v23 = vadd.f32 %v4295_v36, %v5400_v9 }
 0x280   : > { %v870_v37 = vpop.f32.mrf.mxu1 }
 0x282   : > { %v4298_v40 = vpop.f32.mrf.mxu1 }
 0x283   : > { %v892_v42 = vadd.f32 %v4298_v40, %v5386_v35  ;;  %v871_v40 = vadd.f32 %v870_v37, %v5407_v32 }
 0x284   : > { %v883_v45 = vpop.f32.mrf.mxu1 }
 0x285   : > { %v900_v46 = vsub.f32 0.0, %v892_v42  ;;  %v884_v48 = vadd.f32 %v883_v45, %v5391_v43 }
 0x286   : > { %v4299_v49 = vpop.f32.mrf.mxu1 }
 0x287   : > { %v906_v50 = vmul.f32 1.442695, %v900_v46  ;;  %v898_v51 = vsub.f32 0.0, %v884_v48  ;;  %v895_v52 = vadd.f32 %v4299_v49, %v5388_v39 }
 0x288   : > { %v886_v54 = vpop.f32.mrf.mxu1 }
 0x289   : > { %4590 = vpow2.f32 %v906_v50  ;;  %v902_v56 = vmul.f32 1.442695, %v898_v51  ;;  %v901_v57 = vsub.f32 0.0, %v895_v52  ;;  %v887_v58 = vadd.f32 %v886_v54, %v5395_v53  ;;  %v4543_v54 = vld [vmem:[%s6101_s7 + $0x20] sm:$0xff]  }
 0x28a   : > { %4316 = vmatprep.mubr.msk.bf16.mxu1 %vm820_vm1, %v4543_v54 }
 0x28b   : > { %4592 = vpow2.f32 %v902_v56  ;;  %v908_v59 = vmul.f32 1.442695, %v901_v57  ;;  %v899_v60 = vsub.f32 0.0, %v887_v58  ;;  %v999_v58 = vpop.permute.xlu0 %998 }
 0x28d   : > { %4594 = vpow2.f32 %v908_v59  ;;  %v904_v61 = vmul.f32 1.442695, %v899_v60 }
 0x28f   : > { %4596 = vpow2.f32 %v904_v61  ;;  %v1004_v61 = vpop.permute.xlu1 %1003 }
 0x296   : > { %v4591_v62 = vpop.eup %4590 }
 0x297   : > { %v912_v63 = vadd.f32 1.0, %v4591_v62 }
 0x298   : > { %v4593_v0 = vpop.eup %4592 }
 0x299   : > { %4598 = vrcp.f32 %v912_v63  ;;  %v910_v1 = vadd.f32 1.0, %v4593_v0  ;;  %v989_v0 = vpop.permute.xlu0 %988 }
 0x29a   : > { %v4595_v2 = vpop.eup %4594 }
 0x29b   : > { %4600 = vrcp.f32 %v910_v1  ;;  %v913_v3 = vadd.f32 1.0, %v4595_v2 }
 0x29c   : > { %v4597_v4 = vpop.eup %4596 }
 0x29d   : > { %4602 = vrcp.f32 %v913_v3  ;;  %v911_v5 = vadd.f32 1.0, %v4597_v4 }
 0x29f   : > { %4604 = vrcp.f32 %v911_v5 }
 0x2a6   : > { %v4599_v11 = vpop.eup %4598 }
 0x2a7   : > { %v920_v19 = vmul.f32 %v4599_v11, %v876_v10 }
 0x2a8   : > { %v4601_v20 = vpop.eup %4600 }
 0x2a9   : > { %v918_v24 = vmul.f32 %v4601_v20, %v868_v13  ;;  %v924_v45 = vadd.f32 %v920_v19, %v5349_v21  ;;  %v994_v13 = vpop.permute.xlu1 %993 }
 0x2aa   : > { %v4603_v27 = vpop.eup %4602 }
 0x2ab   : > { %v921_v42 = vmul.f32 %v4603_v27, %v879_v23  ;;  %v922_v49 = vadd.f32 %v918_v24, %v5355_v25  ;;  %v5413_v34 = vmul.f32 0.70710677, %v924_v45  ;;  %v4541_v25 = vld [vmem:[%s6101_s7 + $0x10] sm:$0xff]  }
 0x2ac   : > { %v4605_v46 = vpop.eup %4604 }
 0x2ad   : > { %v925_v33 = vadd.f32 %v921_v42, %v5351_v22  ;;  %v919_v48 = vmul.f32 %v4605_v46, %v871_v40  ;;  %v5420_v52 = vmul.f32 0.70710677, %v922_v49  ;;  %v4540_v22 = vld [vmem:[%s6101_s7 + $0x8] sm:$0xff]  }
 0x2af   : > { %v5415_v50 = vmul.f32 0.70710677, %v925_v33  ;;  %v923_v36 = vadd.f32 %v919_v48, %v5357_v26  ;;  %v4542_v26 = vld [vmem:[%s6101_s7 + $0x18] sm:$0xff]  }
 0x2b1   : > { %v965_v51 = vpack.c.bf16 %v5415_v50, %v5413_v34  ;;  %v5422_v37 = vmul.f32 0.70710677, %v923_v36 }
 0x2b3   : > { %4300 = vmatprep.subr.bf16.mxu0 %v965_v51  ;;  %v964_v21 = vpack.c.bf16 %v5422_v37, %v5420_v52 }
 0x2b4   : > { %4301 = vmatpush3.bf16.msra.mxu0 %v965_v51 }
 0x2b5   : > { %4302 = vmatprep.subr.bf16.mxu0 %v964_v21 }
 0x2b8   : > { %4303 = vmatpush3.bf16.msra.mxu0 %v964_v21 }
 0x2bb   : > { %4305 = vmatmul.mubr.msk.bf16.vlgmr.msra.gmra.mxu0 %vm820_vm1, %v4540_v22  ;;  %v979_v22 = vpop.permute.xlu0 %978 }
 0x2bc   : > { %4308 = vmatprep.mubr.msk.bf16.mxu0 %vm820_vm1, %v4541_v25  ;;  %v984_v25 = vpop.permute.xlu1 %983 }
 0x2c3   : > { %4309 = vmatmul.mubr.msk.bf16.gmra.mxu0 %vm820_vm1, %v4542_v26 }
 0x37b   : > { %v4306_v56 = vpop.f32.mrf.mxu0 }
 0x37c   : > { %v1081_v26 = vadd.f32 %v4306_v56, %v979_v22 }
 0x37d   : > { %v1072_v57 = vpop.f32.mrf.mxu0 }
 0x37f   : > { %v4307_v59 = vpop.f32.mrf.mxu0 }
 0x381   : > { %v1075_v60 = vpop.f32.mrf.mxu0 }
 0x383   : > { %v4310_v62 = vpop.f32.mrf.mxu0 }
 0x384   : > { %v1097_v63 = vadd.f32 %v4310_v62, %v999_v58  ;;  %v969_v58 = vpop.permute.xlu0 %968 }
 0x385   : > { %v1088_v1 = vpop.f32.mrf.mxu0 }
 0x386   : > { %v1105_v2 = vsub.f32 0.0, %v1097_v63  ;;  %v1089_v3 = vadd.f32 %v1088_v1, %v989_v0  ;;  %v1084_v0 = vadd.f32 %v4307_v59, %v984_v25 }
 0x387   : > { %v4311_v4 = vpop.f32.mrf.mxu0 }
 0x388   : > { %v1111_v5 = vmul.f32 1.442695, %v1105_v2  ;;  %v1103_v10 = vsub.f32 0.0, %v1089_v3  ;;  %v1100_v11 = vadd.f32 %v4311_v4, %v1004_v61  ;;  %v1073_v61 = vadd.f32 %v1072_v57, %v969_v58  ;;  %v974_v3 = vpop.permute.xlu1 %973 }
 0x389   : > { %v1091_v19 = vpop.f32.mrf.mxu0  ;;  %v1076_v4 = vadd.f32 %v1075_v60, %v974_v3 }
 0x38a   : > { %4606 = vpow2.f32 %v1111_v5  ;;  %v1107_v20 = vmul.f32 1.442695, %v1103_v10  ;;  %v1106_v23 = vsub.f32 0.0, %v1100_v11  ;;  %v1092_v24 = vadd.f32 %v1091_v19, %v994_v13 }
 0x38c   : > { %4608 = vpow2.f32 %v1107_v20  ;;  %v1113_v27 = vmul.f32 1.442695, %v1106_v23  ;;  %v1104_v40 = vsub.f32 0.0, %v1092_v24 }
 0x38e   : > { %4610 = vpow2.f32 %v1113_v27  ;;  %v1109_v42 = vmul.f32 1.442695, %v1104_v40 }
 0x390   : > { %4612 = vpow2.f32 %v1109_v42 }
 0x397   : > { %v4607_v45 = vpop.eup %4606 }
 0x398   : > { %v1117_v46 = vadd.f32 1.0, %v4607_v45 }
 0x399   : > { %v4609_v33 = vpop.eup %4608 }
 0x39a   : > { %4614 = vrcp.f32 %v1117_v46  ;;  %v1115_v48 = vadd.f32 1.0, %v4609_v33  ;;  %v1166_v33 = vpop.permute.xlu0 %1165 }
 0x39b   : > { %v4611_v49 = vpop.eup %4610 }
 0x39c   : > { %4616 = vrcp.f32 %v1115_v48  ;;  %v1118_v36 = vadd.f32 1.0, %v4611_v49 }
 0x39d   : > { %v4613_v51 = vpop.eup %4612 }
 0x39e   : > { %4618 = vrcp.f32 %v1118_v36  ;;  %v1116_v21 = vadd.f32 1.0, %v4613_v51 }
 0x3a0   : > { %4620 = vrcp.f32 %v1116_v21  ;;  %v1171_v21 = vpop.permute.xlu1 %1170 }
 0x3a7   : > { %v4615_v54 = vpop.eup %4614 }
 0x3a8   : > { %v1125_v62 = vmul.f32 %v4615_v54, %v1081_v26 }
 0x3a9   : > { %v4617_v63 = vpop.eup %4616 }
 0x3aa   : > { %v1123_v1 = vmul.f32 %v4617_v63, %v1073_v61  ;;  %v1129_v10 = vadd.f32 %v1125_v62, %v5413_v34  ;;  %v4544_v34 = vld [vmem:[%s6101_s7 + $0x28] sm:$0xff]  }
 0x3ab   : > { %v4619_v2 = vpop.eup %4618 }
 0x3ac   : > { %v1126_v5 = vmul.f32 %v4619_v2, %v1084_v0  ;;  %v1127_v20 = vadd.f32 %v1123_v1, %v5420_v52  ;;  %v1133_v56 = vmul.f32 0.70710677, %v1129_v10  ;;  %v4546_v52 = vld [vmem:[%s6101_s7 + $0x38] sm:$0xff]   ;;  %v1148_v1 = vpop.permute.xlu0 %1147 }
 0x3ad   : > { %v4621_v11 = vpop.eup %4620 }
 0x3ae   : > { %v1130_v13 = vadd.f32 %v1126_v5, %v5415_v50  ;;  %v1124_v19 = vmul.f32 %v4621_v11, %v1076_v4  ;;  %v1131_v27 = vmul.f32 0.70710677, %v1127_v20  ;;  %v4545_v50 = vld [vmem:[%s6101_s7 + $0x30] sm:$0xff]   ;;  %v1153_v5 = vpop.permute.xlu1 %1152 }
 0x3b0   : > { %v1134_v23 = vmul.f32 0.70710677, %v1130_v13  ;;  %v1128_v57 = vadd.f32 %v1124_v19, %v5422_v37  ;;  %v6112_v37 = vmov 0.0  }
 0x3b1   : > { %4324 = vmatprep.subr.bf16.mxu0 %v6112_v37  ;;  %4326 = vmatprep.mubr.msk.bf16.mxu0 %vm4899_vm2, %v6112_v37 }
 0x3b2   : > { %v1136_v24 = vpack.c.bf16 %v1134_v23, %v1133_v56  ;;  %v1132_v59 = vmul.f32 0.70710677, %v1128_v57 }
 0x3b4   : > { %4312 = vmatprep.subr.bf16.mxu1 %v1136_v24  ;;  %v1135_v40 = vpack.c.bf16 %v1132_v59, %v1131_v27  ;;  %v4547_v59 = vld [vmem:[%s6103_s9] sm:$0xff]  }
 0x3b5   : > { %4313 = vmatpush3.bf16.msra.mxu1 %v1136_v24 }
 0x3b6   : > { %4314 = vmatprep.subr.bf16.mxu1 %v1135_v40 }
 0x3b9   : > { %4315 = vmatpush3.bf16.msra.mxu1 %v1135_v40 }
 0x3bc   : > { %4317 = vmatmul.mubr.msk.bf16.vlgmr.msra.gmra.mxu1 %vm820_vm1, %v4544_v34 }
 0x3bd   : > { %4320 = vmatprep.mubr.msk.bf16.mxu1 %vm820_vm1, %v4545_v50  ;;  %v1295_v50 = vpop.permute.xlu1 %1294 }
 0x3c4   : > { %4321 = vmatmul.mubr.msk.bf16.gmra.mxu1 %vm820_vm1, %v4546_v52  ;;  %v1290_v52 = vpop.permute.xlu0 %1289 }
 0x3c5   : > { %4332 = vmatprep.mubr.msk.bf16.mxu1 %vm696_vm0, %v5082_v17 }
 0x47c   : > { %v4318_v60 = vpop.f32.mrf.mxu1 }
 0x47d   : > { %v1246_v2 = vadd.f32 %v4318_v60, %v1148_v1 }
 0x47e   : > { %v1239_v42 = vpop.f32.mrf.mxu1 }
 0x480   : > { %v4319_v45 = vpop.f32.mrf.mxu1 }
 0x481   : > { %v1249_v10 = vadd.f32 %v4319_v45, %v1153_v5 }
 0x482   : > { %v1241_v46 = vpop.f32.mrf.mxu1 }
 0x484   : > { %v4322_v48 = vpop.f32.mrf.mxu1 }
 0x485   : > { %v1260_v49 = vadd.f32 %v4322_v48, %v1166_v33 }
 0x486   : > { %v1253_v36 = vpop.f32.mrf.mxu1 }
 0x487   : > { %v1266_v51 = vsub.f32 0.0, %v1260_v49 }
 0x488   : > { %v4323_v22 = vpop.f32.mrf.mxu1 }
 0x489   : > { %v1268_v25 = vmul.f32 1.442695, %v1266_v51  ;;  %v1263_v17 = vadd.f32 %v4323_v22, %v1171_v21 }
 0x48a   : > { %v1255_v26 = vpop.f32.mrf.mxu1 }
 0x48b   : > { %4622 = vpow2.f32 %v1268_v25  ;;  %v1267_v54 = vsub.f32 0.0, %v1263_v17 }
 0x48d   : > { %v1270_v58 = vmul.f32 1.442695, %v1267_v54 }
 0x48f   : > { %4624 = vpow2.f32 %v1270_v58 }
 0x498   : > { %v4623_v61 = vpop.eup %4622 }
 0x499   : > { %v1272_v62 = vadd.f32 1.0, %v4623_v61 }
 0x49b   : > { %4626 = vrcp.f32 %v1272_v62 }
 0x49c   : > { %v4625_v63 = vpop.eup %4624 }
 0x49d   : > { %v1273_v0 = vadd.f32 1.0, %v4625_v63 }
 0x49f   : > { %4628 = vrcp.f32 %v1273_v0 }
 0x4a8   : > { %v4627_v3 = vpop.eup %4626 }
 0x4a9   : > { %v1276_v4 = vmul.f32 %v4627_v3, %v1246_v2 }
 0x4ab   : > { %v1278_v19 = vadd.f32 %v1276_v4, %v1133_v56 }
 0x4ac   : > { %v4629_v11 = vpop.eup %4628 }
 0x4ad   : > { %v1277_v13 = vmul.f32 %v4629_v11, %v1249_v10  ;;  %v1280_v57 = vmul.f32 0.70710677, %v1278_v19 }
 0x4af   : > { %v1279_v20 = vadd.f32 %v1277_v13, %v1134_v23 }
 0x4b1   : > { %v1281_v24 = vmul.f32 0.70710677, %v1279_v20 }
 0x4b3   : > { %v1284_v27 = vpack.c.bf16 %v1281_v24, %v1280_v57 }
 0x4b5   : > { %4325 = vmatpush3.bf16.msra.mxu0 %v1284_v27 }
 0x4b8   : > { %4327 = vmatmul.mubr.msk.bf16.vlgmr.msra.gmra.mxu0 %vm696_vm0, %v4547_v59 }
 0x4b9   : > { %4344 = vmatprep.mubr.msk.bf16.mxu0 %vm820_vm1, %v5321_v38 }
 0x578   : > { %v1339_v40 = vpop.f32.mrf.mxu0 }
 0x579   : > { %v5469_v56 = vadd.f32 %v1339_v40, %v1290_v52 }
 0x57a   : > { %v4328_v34 = vpop.f32.mrf.mxu0 }
 0x57c   : > { %v1342_v60 = vpop.f32.mrf.mxu0 }
 0x57d   : > { %v5471_v23 = vadd.f32 %v1342_v60, %v1295_v50 }
 0x57e   : > { %v4329_v42 = vpop.f32.mrf.mxu0 }
 0x57f   : > { %v1346_v45 = vmax.f32 %v5469_v56, %v5471_v23 }
 0x581   : > { %v1347_v46 = vrot.slane %v1346_v45, 4 }
 0x583   : > { %v1348_v33 = vmax.f32 %v1346_v45, %v1347_v46 }
 0x585   : > { %v1349_v48 = vrot.slane %v1348_v33, 2 }
 0x587   : > { %v1350_v49 = vmax.f32 %v1348_v33, %v1349_v48 }
 0x589   : > { %v1351_v36 = vrot.slane %v1350_v49, 1 }
 0x58b   : > { %v1352_v51 = vmax.f32 %v1350_v49, %v1351_v36 }
 0x58d   : > { %v3996_v38 = vadd.f32 -1.0, %v1352_v51 }
 0x58f   : > { %v1354_v21 = vadd.f32 %v3996_v38, %v1352_v51 }
 0x591   : > { %v1355_v22 = vmul.f32 0.5, %v1354_v21 }
 0x593   : > { %v1356_v25 = vsub.f32 %v5469_v56, %v1355_v22  ;;  %v1357_v17 = vsub.f32 %v5471_v23, %v1355_v22 }
 0x595   : > { %v1358_v26 = vmax.f32 %v1356_v25, 0.0  ;;  %v1359_v54 = vmax.f32 %v1357_v17, 0.0 }
 0x597   : > { %v1360_v58 = vadd.f32 %v1359_v54, %v1358_v26 }
 0x599   : > { %v1361_v61 = vrot.slane %v1360_v58, 4 }
 0x59b   : > { %v1362_v62 = vadd.f32 %v1361_v61, %v1360_v58 }
 0x59d   : > { %v1363_v63 = vrot.slane %v1362_v62, 2 }
 0x59f   : > { %v1364_v0 = vadd.f32 %v1363_v63, %v1362_v62 }
 0x5a1   : > { %v1365_v1 = vrot.slane %v1364_v0, 1 }
 0x5a3   : > { %v1366_v2 = vadd.f32 %v1365_v1, %v1364_v0 }
 0x5a5   : > { %vm1367_vm3 = vcmp.gt.f32.partialorder %v1366_v2, 1.0 }
 0x5a6   : > { %v1368_v3 = vsel %vm1367_vm3, %v1355_v22, %v3996_v38  ;;  %v1369_v4 = vsel %vm1367_vm3, %v1352_v51, %v1355_v22 }
 0x5a7   : > { %v1370_v5 = vadd.f32 %v1369_v4, %v1368_v3 }
 0x5a9   : > { %v1371_v10 = vmul.f32 0.5, %v1370_v5 }
 0x5ab   : > { %v1372_v11 = vsub.f32 %v5469_v56, %v1371_v10  ;;  %v1373_v13 = vsub.f32 %v5471_v23, %v1371_v10 }
 0x5ad   : > { %v1374_v19 = vmax.f32 %v1372_v11, 0.0  ;;  %v1375_v20 = vmax.f32 %v1373_v13, 0.0 }
 0x5af   : > { %v1376_v57 = vadd.f32 %v1375_v20, %v1374_v19 }
 0x5b1   : > { %v1377_v24 = vrot.slane %v1376_v57, 4 }
 0x5b3   : > { %v1378_v27 = vadd.f32 %v1377_v24, %v1376_v57 }
 0x5b5   : > { %v1379_v59 = vrot.slane %v1378_v27, 2 }
 0x5b7   : > { %v1380_v40 = vadd.f32 %v1379_v59, %v1378_v27 }
 0x5b9   : > { %v1381_v34 = vrot.slane %v1380_v40, 1 }
 0x5bb   : > { %v1382_v50 = vadd.f32 %v1381_v34, %v1380_v40 }
 0x5bd   : > { %vm1383_vm4 = vcmp.gt.f32.partialorder %v1382_v50, 1.0 }
 0x5be   : > { %v1384_v52 = vsel %vm1383_vm4, %v1371_v10, %v1368_v3  ;;  %v1385_v60 = vsel %vm1383_vm4, %v1369_v4, %v1371_v10 }
 0x5bf   : > { %v1386_v42 = vadd.f32 %v1385_v60, %v1384_v52 }
 0x5c1   : > { %v1387_v45 = vmul.f32 0.5, %v1386_v42 }
 0x5c3   : > { %v1388_v46 = vsub.f32 %v5469_v56, %v1387_v45  ;;  %v1389_v33 = vsub.f32 %v5471_v23, %v1387_v45 }
 0x5c5   : > { %v1390_v48 = vmax.f32 %v1388_v46, 0.0  ;;  %v1391_v49 = vmax.f32 %v1389_v33, 0.0 }
 0x5c7   : > { %v1392_v36 = vadd.f32 %v1391_v49, %v1390_v48 }
 0x5c9   : > { %v1393_v51 = vrot.slane %v1392_v36, 4 }
 0x5cb   : > { %v1394_v38 = vadd.f32 %v1393_v51, %v1392_v36 }
 0x5cd   : > { %v1395_v21 = vrot.slane %v1394_v38, 2 }
 0x5cf   : > { %v1396_v22 = vadd.f32 %v1395_v21, %v1394_v38 }
 0x5d1   : > { %v1397_v25 = vrot.slane %v1396_v22, 1 }
 0x5d3   : > { %v1398_v17 = vadd.f32 %v1397_v25, %v1396_v22 }
 0x5d5   : > { %vm1399_vm5 = vcmp.gt.f32.partialorder %v1398_v17, 1.0 }
 0x5d6   : > { %v1400_v26 = vsel %vm1399_vm5, %v1387_v45, %v1384_v52  ;;  %v1401_v54 = vsel %vm1399_vm5, %v1385_v60, %v1387_v45 }
 0x5d7   : > { %v1402_v58 = vadd.f32 %v1401_v54, %v1400_v26 }
 0x5d9   : > { %v1403_v61 = vmul.f32 0.5, %v1402_v58 }
 0x5db   : > { %v1404_v62 = vsub.f32 %v5469_v56, %v1403_v61  ;;  %v1405_v63 = vsub.f32 %v5471_v23, %v1403_v61 }
 0x5dd   : > { %v1406_v0 = vmax.f32 %v1404_v62, 0.0  ;;  %v1407_v1 = vmax.f32 %v1405_v63, 0.0 }
 0x5df   : > { %v1408_v2 = vadd.f32 %v1407_v1, %v1406_v0 }
 0x5e1   : > { %v1409_v3 = vrot.slane %v1408_v2, 4 }
 0x5e3   : > { %v1410_v4 = vadd.f32 %v1409_v3, %v1408_v2 }
 0x5e5   : > { %v1411_v5 = vrot.slane %v1410_v4, 2 }
 0x5e7   : > { %v1412_v10 = vadd.f32 %v1411_v5, %v1410_v4 }
 0x5e9   : > { %v1413_v11 = vrot.slane %v1412_v10, 1 }
 0x5eb   : > { %v1414_v13 = vadd.f32 %v1413_v11, %v1412_v10 }
 0x5ed   : > { %vm1415_vm6 = vcmp.gt.f32.partialorder %v1414_v13, 1.0 }
 0x5ee   : > { %v1416_v19 = vsel %vm1415_vm6, %v1403_v61, %v1400_v26  ;;  %v1417_v20 = vsel %vm1415_vm6, %v1401_v54, %v1403_v61 }
 0x5ef   : > { %v1418_v57 = vadd.f32 %v1417_v20, %v1416_v19 }
 0x5f1   : > { %v1419_v24 = vmul.f32 0.5, %v1418_v57 }
 0x5f3   : > { %v1420_v27 = vsub.f32 %v5469_v56, %v1419_v24  ;;  %v1421_v59 = vsub.f32 %v5471_v23, %v1419_v24 }
 0x5f5   : > { %v1422_v40 = vmax.f32 %v1420_v27, 0.0  ;;  %v1423_v34 = vmax.f32 %v1421_v59, 0.0 }
 0x5f7   : > { %v1424_v50 = vadd.f32 %v1423_v34, %v1422_v40 }
 0x5f9   : > { %v1425_v52 = vrot.slane %v1424_v50, 4 }
 0x5fb   : > { %v1426_v60 = vadd.f32 %v1425_v52, %v1424_v50 }
 0x5fd   : > { %v1427_v42 = vrot.slane %v1426_v60, 2 }
 0x5ff   : > { %v1428_v45 = vadd.f32 %v1427_v42, %v1426_v60 }
 0x601   : > { %v1429_v46 = vrot.slane %v1428_v45, 1 }
 0x603   : > { %v1430_v33 = vadd.f32 %v1429_v46, %v1428_v45 }
 0x605   : > { %vm1431_vm7 = vcmp.gt.f32.partialorder %v1430_v33, 1.0 }
 0x606   : > { %v1432_v48 = vsel %vm1431_vm7, %v1419_v24, %v1416_v19  ;;  %v1433_v49 = vsel %vm1431_vm7, %v1417_v20, %v1419_v24 }
 0x607   : > { %v1434_v36 = vadd.f32 %v1433_v49, %v1432_v48 }
 0x609   : > { %v1435_v51 = vmul.f32 0.5, %v1434_v36 }
 0x60b   : > { %v1436_v38 = vsub.f32 %v5469_v56, %v1435_v51  ;;  %v1437_v21 = vsub.f32 %v5471_v23, %v1435_v51 }
 0x60d   : > { %v1438_v22 = vmax.f32 %v1436_v38, 0.0  ;;  %v1439_v25 = vmax.f32 %v1437_v21, 0.0 }
 0x60f   : > { %v1440_v17 = vadd.f32 %v1439_v25, %v1438_v22 }
 0x611   : > { %v1441_v26 = vrot.slane %v1440_v17, 4 }
 0x613   : > { %v1442_v54 = vadd.f32 %v1441_v26, %v1440_v17 }
 0x615   : > { %v1443_v58 = vrot.slane %v1442_v54, 2 }
 0x617   : > { %v1444_v61 = vadd.f32 %v1443_v58, %v1442_v54 }
 0x619   : > { %v1445_v62 = vrot.slane %v1444_v61, 1 }
 0x61b   : > { %v1446_v63 = vadd.f32 %v1445_v62, %v1444_v61 }
 0x61d   : > { %vm1447_vm8 = vcmp.gt.f32.partialorder %v1446_v63, 1.0 }
 0x61e   : > { %v1448_v0 = vsel %vm1447_vm8, %v1435_v51, %v1432_v48  ;;  %v1449_v1 = vsel %vm1447_vm8, %v1433_v49, %v1435_v51 }
 0x61f   : > { %v1450_v2 = vadd.f32 %v1449_v1, %v1448_v0 }
 0x621   : > { %v1451_v3 = vmul.f32 0.5, %v1450_v2 }
 0x623   : > { %v1452_v4 = vsub.f32 %v5469_v56, %v1451_v3  ;;  %v1453_v5 = vsub.f32 %v5471_v23, %v1451_v3 }
 0x625   : > { %v1454_v10 = vmax.f32 %v1452_v4, 0.0  ;;  %v1455_v11 = vmax.f32 %v1453_v5, 0.0 }
 0x627   : > { %v1456_v13 = vadd.f32 %v1455_v11, %v1454_v10 }
 0x629   : > { %v1457_v19 = vrot.slane %v1456_v13, 4 }
 0x62b   : > { %v1458_v20 = vadd.f32 %v1457_v19, %v1456_v13 }
 0x62d   : > { %v1459_v57 = vrot.slane %v1458_v20, 2 }
 0x62f   : > { %v1460_v24 = vadd.f32 %v1459_v57, %v1458_v20 }
 0x631   : > { %v1461_v27 = vrot.slane %v1460_v24, 1 }
 0x633   : > { %v1462_v59 = vadd.f32 %v1461_v27, %v1460_v24 }
 0x635   : > { %vm1463_vm9 = vcmp.gt.f32.partialorder %v1462_v59, 1.0 }
 0x636   : > { %v1464_v40 = vsel %vm1463_vm9, %v1451_v3, %v1448_v0  ;;  %v1465_v34 = vsel %vm1463_vm9, %v1449_v1, %v1451_v3 }
 0x637   : > { %v1466_v50 = vadd.f32 %v1465_v34, %v1464_v40 }
 0x639   : > { %v1467_v52 = vmul.f32 0.5, %v1466_v50 }
 0x63b   : > { %v1468_v60 = vsub.f32 %v5469_v56, %v1467_v52  ;;  %v1469_v42 = vsub.f32 %v5471_v23, %v1467_v52 }
 0x63d   : > { %v1470_v45 = vmax.f32 %v1468_v60, 0.0  ;;  %v1471_v46 = vmax.f32 %v1469_v42, 0.0 }
 0x63f   : > { %v1472_v33 = vadd.f32 %v1471_v46, %v1470_v45 }
 0x641   : > { %v1473_v48 = vrot.slane %v1472_v33, 4 }
 0x643   : > { %v1474_v49 = vadd.f32 %v1473_v48, %v1472_v33 }
 0x645   : > { %v1475_v36 = vrot.slane %v1474_v49, 2 }
 0x647   : > { %v1476_v51 = vadd.f32 %v1475_v36, %v1474_v49 }
 0x649   : > { %v1477_v38 = vrot.slane %v1476_v51, 1 }
 0x64b   : > { %v1478_v21 = vadd.f32 %v1477_v38, %v1476_v51 }
 0x64d   : > { %vm1479_vm10 = vcmp.gt.f32.partialorder %v1478_v21, 1.0 }
 0x64e   : > { %v1480_v22 = vsel %vm1479_vm10, %v1467_v52, %v1464_v40  ;;  %v1481_v25 = vsel %vm1479_vm10, %v1465_v34, %v1467_v52 }
 0x64f   : > { %v1482_v17 = vadd.f32 %v1481_v25, %v1480_v22 }
 0x651   : > { %v1483_v26 = vmul.f32 0.5, %v1482_v17 }
 0x653   : > { %v1484_v54 = vsub.f32 %v5469_v56, %v1483_v26  ;;  %v1485_v58 = vsub.f32 %v5471_v23, %v1483_v26 }
 0x655   : > { %v1486_v61 = vmax.f32 %v1484_v54, 0.0  ;;  %v1487_v62 = vmax.f32 %v1485_v58, 0.0 }
 0x657   : > { %v1488_v63 = vadd.f32 %v1487_v62, %v1486_v61 }
 0x659   : > { %v1489_v0 = vrot.slane %v1488_v63, 4 }
 0x65b   : > { %v1490_v1 = vadd.f32 %v1489_v0, %v1488_v63 }
 0x65d   : > { %v1491_v2 = vrot.slane %v1490_v1, 2 }
 0x65f   : > { %v1492_v3 = vadd.f32 %v1491_v2, %v1490_v1 }
 0x661   : > { %v1493_v4 = vrot.slane %v1492_v3, 1 }
 0x663   : > { %v1494_v5 = vadd.f32 %v1493_v4, %v1492_v3 }
 0x665   : > { %vm1495_vm11 = vcmp.gt.f32.partialorder %v1494_v5, 1.0 }
 0x666   : > { %v1496_v10 = vsel %vm1495_vm11, %v1483_v26, %v1480_v22  ;;  %v1497_v11 = vsel %vm1495_vm11, %v1481_v25, %v1483_v26 }
 0x667   : > { %v1498_v13 = vadd.f32 %v1497_v11, %v1496_v10 }
 0x669   : > { %v1499_v19 = vmul.f32 0.5, %v1498_v13 }
 0x66b   : > { %v1500_v20 = vsub.f32 %v5469_v56, %v1499_v19  ;;  %v1501_v57 = vsub.f32 %v5471_v23, %v1499_v19 }
 0x66d   : > { %v1502_v24 = vmax.f32 %v1500_v20, 0.0  ;;  %v1503_v27 = vmax.f32 %v1501_v57, 0.0 }
 0x66f   : > { %v1504_v59 = vadd.f32 %v1503_v27, %v1502_v24 }
 0x671   : > { %v1505_v40 = vrot.slane %v1504_v59, 4 }
 0x673   : > { %v1506_v34 = vadd.f32 %v1505_v40, %v1504_v59  ;;  %v5514_v59 = vld [vmem:[%s6097_s3 + $0x8] sm:$0xff]  }
 0x675   : > { %v1507_v50 = vrot.slane %v1506_v34, 2 }
 0x677   : > { %v1508_v52 = vadd.f32 %v1507_v50, %v1506_v34 }
 0x679   : > { %v1509_v60 = vrot.slane %v1508_v52, 1 }
 0x67b   : > { %v1510_v42 = vadd.f32 %v1509_v60, %v1508_v52 }
 0x67d   : > { %vm1511_vm12 = vcmp.gt.f32.partialorder %v1510_v42, 1.0 }
 0x67e   : > { %v1512_v45 = vsel %vm1511_vm12, %v1499_v19, %v1496_v10  ;;  %v1513_v46 = vsel %vm1511_vm12, %v1497_v11, %v1499_v19 }
 0x67f   : > { %v1514_v33 = vadd.f32 %v1513_v46, %v1512_v45 }
 0x681   : > { %v1515_v48 = vmul.f32 0.5, %v1514_v33 }
 0x683   : > { %vm1516_vm13 = vcmp.gt.f32.partialorder %v5469_v56, %v1515_v48  ;;  %vm1517_vm14 = vcmp.gt.f32.partialorder %v5471_v23, %v1515_v48 }
 0x684   : > { %v3997_v49 = vsel %vm1516_vm13, 1.0, %v6112_v37  ;;  %v3998_v36 = vsel %vm1517_vm14, 1.0, %v6112_v37 }
 0x685   : > { %v1522_v51 = vadd.f32 %v3998_v36, %v3997_v49  ;;  %v1529_v38 = vmul.f32 %v3997_v49, %v5469_v56  ;;  %v1530_v21 = vmul.f32 %v3998_v36, %v5471_v23 }
 0x687   : > { %v1523_v22 = vrot.slane %v1522_v51, 4  ;;  %v1531_v25 = vadd.f32 %v1530_v21, %v1529_v38 }
 0x689   : > { %v1524_v17 = vadd.f32 %v1523_v22, %v1522_v51  ;;  %v1532_v26 = vrot.slane %v1531_v25, 4 }
 0x68b   : > { %v1525_v54 = vrot.slane %v1524_v17, 2  ;;  %v1533_v58 = vadd.f32 %v1532_v26, %v1531_v25 }
 0x68d   : > { %v1526_v61 = vadd.f32 %v1525_v54, %v1524_v17  ;;  %v1534_v63 = vrot.slane %v1533_v58, 2 }
 0x68f   : > { %v1527_v62 = vrot.slane %v1526_v61, 1  ;;  %v1535_v1 = vadd.f32 %v1534_v63, %v1533_v58 }
 0x691   : > { %v1528_v0 = vadd.f32 %v1527_v62, %v1526_v61  ;;  %v1536_v2 = vrot.slane %v1535_v1, 1 }
 0x693   : > { %4630 = vrcp.f32 %v1528_v0  ;;  %v1537_v3 = vadd.f32 %v1536_v2, %v1535_v1 }
 0x695   : > { %v3999_v4 = vadd.f32 -1.0, %v1537_v3 }
 0x6a0   : > { %v4631_v5 = vpop.eup %4630 }
 0x6a1   : > { %v1540_v10 = vmul.f32 %v4631_v5, %v3999_v4 }
 0x6a3   : > { %v1541_v11 = vsub.f32 %v5469_v56, %v1540_v10  ;;  %v1542_v13 = vsub.f32 %v5471_v23, %v1540_v10  ;;  %v5521_v56 = vld [vmem:[%s6097_s3 + $0x10] sm:$0xff]  }
 0x6a5   : > { %v5503_v19 = vmax.f32 %v1541_v11, 0.0  ;;  %v5505_v20 = vmax.f32 %v1542_v13, 0.0 }
 0x6a7   : > { %v1547_v57 = vmul.f32 %v5503_v19, %v5252_v16  ;;  %v1548_v24 = vmul.f32 %v5505_v20, %v5254_v18 }
 0x6a9   : > { %v1549_v27 = vpack.c.bf16 %v1548_v24, %v1547_v57 }
 0x6ab   : > { %4330 = vmatprep.subr.bf16.mxu1 %v1549_v27 }
 0x6ac   : > { %4331 = vmatpush3.bf16.msra.mxu1 %v1549_v27 }
 0x6af   : > { %4333 = vmatmul.mubr.msk.bf16.vlgmr.msra.gmra.mxu1 %vm696_vm0, %v5514_v59 }
 0x6b0   : > { %4336 = vmatprep.mubr.msk.bf16.mxu1 %vm696_vm0, %v5521_v56 }
 0x6b7   : > { %4337 = vmatmul.mubr.msk.bf16.gmra.mxu1 %vm696_vm0, %v5287_v28 }
 0x76f   : > { %v4334_v23 = vpop.f32.mrf.mxu1 }
 0x770   : > { %v1593_v4 = vadd.f32 %v4334_v23, %v5339_v8  ;;  %v4548_v23 = vld [vmem:[%s6105_s11] sm:$0xff]  }
 0x771   : > { %v1584_v40 = vpop.f32.mrf.mxu1  ;;  %4356 = vmatprep.mubr.msk.bf16.mxu1 %vm820_vm1, %v4548_v23 }
 0x772   : > { %v1585_v11 = vadd.f32 %v1584_v40, %v5345_v15 }
 0x773   : > { %v4335_v34 = vpop.f32.mrf.mxu1 }
 0x774   : > { %v1596_v5 = vadd.f32 %v4335_v34, %v5337_v7 }
 0x775   : > { %v1587_v50 = vpop.f32.mrf.mxu1 }
 0x776   : > { %v1588_v13 = vadd.f32 %v1587_v50, %v5343_v14 }
 0x777   : > { %v4338_v52 = vpop.f32.mrf.mxu1 }
 0x778   : > { %v1609_v60 = vadd.f32 %v4338_v52, %v5325_v41 }
 0x779   : > { %v1600_v42 = vpop.f32.mrf.mxu1 }
 0x77a   : > { %v1617_v45 = vsub.f32 0.0, %v1609_v60  ;;  %v1601_v46 = vadd.f32 %v1600_v42, %v5330_v47 }
 0x77b   : > { %v4339_v33 = vpop.f32.mrf.mxu1 }
 0x77c   : > { %v1623_v48 = vmul.f32 1.442695, %v1617_v45  ;;  %v1615_v49 = vsub.f32 0.0, %v1601_v46  ;;  %v1612_v36 = vadd.f32 %v4339_v33, %v5327_v44 }
 0x77d   : > { %v1603_v51 = vpop.f32.mrf.mxu1 }
 0x77e   : > { %4632 = vpow2.f32 %v1623_v48  ;;  %v1619_v38 = vmul.f32 1.442695, %v1615_v49  ;;  %v1618_v28 = vsub.f32 0.0, %v1612_v36  ;;  %v1604_v21 = vadd.f32 %v1603_v51, %v5334_v55 }
 0x780   : > { %4634 = vpow2.f32 %v1619_v38  ;;  %v1625_v22 = vmul.f32 1.442695, %v1618_v28  ;;  %v1616_v25 = vsub.f32 0.0, %v1604_v21 }
 0x782   : > { %4636 = vpow2.f32 %v1625_v22  ;;  %v1621_v17 = vmul.f32 1.442695, %v1616_v25 }
 0x784   : > { %4638 = vpow2.f32 %v1621_v17 }
 0x78b   : > { %v4633_v26 = vpop.eup %4632 }
 0x78c   : > { %v1629_v54 = vadd.f32 1.0, %v4633_v26 }
 0x78d   : > { %v4635_v58 = vpop.eup %4634 }
 0x78e   : > { %v1627_v61 = vadd.f32 1.0, %v4635_v58  ;;  %4640 = vrcp.f32 %v1629_v54 }
 0x78f   : > { %v4637_v62 = vpop.eup %4636 }
 0x790   : > { %v1630_v63 = vadd.f32 1.0, %v4637_v62  ;;  %4642 = vrcp.f32 %v1627_v61 }
 0x791   : > { %v4639_v0 = vpop.eup %4638 }
 0x792   : > { %4644 = vrcp.f32 %v1630_v63  ;;  %v1628_v1 = vadd.f32 1.0, %v4639_v0 }
 0x794   : > { %4646 = vrcp.f32 %v1628_v1 }
 0x79b   : > { %v4641_v2 = vpop.eup %4640 }
 0x79c   : > { %v1637_v57 = vmul.f32 %v4641_v2, %v1593_v4 }
 0x79d   : > { %v4643_v3 = vpop.eup %4642 }
 0x79e   : > { %v1635_v60 = vmul.f32 %v4643_v3, %v1585_v11 }
 0x79f   : > { %v4645_v10 = vpop.eup %4644 }
 0x7a0   : > { %v5535_v24 = vmul.f32 %v4645_v10, %v1596_v5 }
 0x7a1   : > { %v4647_v27 = vpop.eup %4646 }
 0x7a2   : > { %v1640_v52 = vpack.c.bf16 %v5535_v24, %v1637_v57  ;;  %v5538_v42 = vmul.f32 %v4647_v27, %v1588_v13 }
 0x7a4   : > { %4340 = vmatprep.subr.bf16.mxu0 %v1640_v52  ;;  %v1639_v45 = vpack.c.bf16 %v5538_v42, %v1635_v60 }
 0x7a5   : > { %4341 = vmatpush3.bf16.msra.mxu0 %v1640_v52 }
 0x7a6   : > { %4342 = vmatprep.subr.bf16.mxu0 %v1639_v45 }
 0x7a9   : > { %4343 = vmatpush3.bf16.msra.mxu0 %v1639_v45 }
 0x7ac   : > { %4345 = vmatmul.mubr.msk.bf16.vlgmr.msra.gmra.mxu0 %vm820_vm1, %v5364_v29 }
 0x7ad   : > { %4348 = vmatprep.mubr.msk.bf16.mxu0 %vm820_vm1, %v5369_v30 }
 0x7b4   : > { %4349 = vmatmul.mubr.msk.bf16.gmra.mxu0 %vm820_vm1, %v5378_v31 }
 0x86c   : > { %v4346_v40 = vpop.f32.mrf.mxu0 }
 0x86d   : > { %v1684_v4 = vadd.f32 %v4346_v40, %v5398_v6 }
 0x86e   : > { %v1675_v34 = vpop.f32.mrf.mxu0 }
 0x86f   : > { %v1676_v10 = vadd.f32 %v1675_v34, %v5403_v12 }
 0x870   : > { %v4347_v50 = vpop.f32.mrf.mxu0 }
 0x871   : > { %v1687_v27 = vadd.f32 %v4347_v50, %v5400_v9 }
 0x872   : > { %v1678_v46 = vpop.f32.mrf.mxu0 }
 0x873   : > { %v1679_v23 = vadd.f32 %v1678_v46, %v5407_v32  ;;  %v4552_v46 = vld [vmem:[%s6105_s11 + $0x20] sm:$0xff]  }
 0x874   : > { %v4350_v33 = vpop.f32.mrf.mxu0  ;;  %4368 = vmatprep.mubr.msk.bf16.mxu0 %vm820_vm1, %v4552_v46 }
 0x875   : > { %v1700_v48 = vadd.f32 %v4350_v33, %v5386_v35 }
 0x876   : > { %v1691_v29 = vpop.f32.mrf.mxu0 }
 0x877   : > { %v1708_v49 = vsub.f32 0.0, %v1700_v48  ;;  %v1692_v30 = vadd.f32 %v1691_v29, %v5391_v43 }
 0x878   : > { %v4351_v36 = vpop.f32.mrf.mxu0 }
 0x879   : > { %v1714_v51 = vmul.f32 1.442695, %v1708_v49  ;;  %v1706_v31 = vsub.f32 0.0, %v1692_v30  ;;  %v1703_v38 = vadd.f32 %v4351_v36, %v5388_v39 }
 0x87a   : > { %v1694_v28 = vpop.f32.mrf.mxu0 }
 0x87b   : > { %4648 = vpow2.f32 %v1714_v51  ;;  %v1710_v21 = vmul.f32 1.442695, %v1706_v31  ;;  %v1709_v22 = vsub.f32 0.0, %v1703_v38  ;;  %v1695_v25 = vadd.f32 %v1694_v28, %v5395_v53 }
 0x87d   : > { %4650 = vpow2.f32 %v1710_v21  ;;  %v1716_v17 = vmul.f32 1.442695, %v1709_v22  ;;  %v1707_v26 = vsub.f32 0.0, %v1695_v25  ;;  %v1807_v22 = vpop.permute.xlu0 %1806 }
 0x87f   : > { %4652 = vpow2.f32 %v1716_v17  ;;  %v1712_v54 = vmul.f32 1.442695, %v1707_v26  ;;  %v1812_v26 = vpop.permute.xlu1 %1811 }
 0x881   : > { %4654 = vpow2.f32 %v1712_v54 }
 0x888   : > { %v4649_v58 = vpop.eup %4648 }
 0x889   : > { %v1720_v61 = vadd.f32 1.0, %v4649_v58 }
 0x88a   : > { %v4651_v62 = vpop.eup %4650 }
 0x88b   : > { %4656 = vrcp.f32 %v1720_v61  ;;  %v1718_v63 = vadd.f32 1.0, %v4651_v62  ;;  %v1797_v61 = vpop.permute.xlu0 %1796 }
 0x88c   : > { %v4653_v0 = vpop.eup %4652 }
 0x88d   : > { %4658 = vrcp.f32 %v1718_v63  ;;  %v1721_v1 = vadd.f32 1.0, %v4653_v0 }
 0x88e   : > { %v4655_v2 = vpop.eup %4654 }
 0x88f   : > { %4660 = vrcp.f32 %v1721_v1  ;;  %v1719_v3 = vadd.f32 1.0, %v4655_v2 }
 0x891   : > { %4662 = vrcp.f32 %v1719_v3 }
 0x898   : > { %v4657_v5 = vpop.eup %4656 }
 0x899   : > { %v1728_v11 = vmul.f32 %v4657_v5, %v1684_v4  ;;  %v1802_v5 = vpop.permute.xlu1 %1801 }
 0x89a   : > { %v4659_v13 = vpop.eup %4658 }
 0x89b   : > { %v1726_v52 = vmul.f32 %v4659_v13, %v1676_v10  ;;  %v1732_v48 = vadd.f32 %v1728_v11, %v1637_v57 }
 0x89c   : > { %v4661_v45 = vpop.eup %4660 }
 0x89d   : > { %v1729_v33 = vmul.f32 %v4661_v45, %v1687_v27  ;;  %v1730_v36 = vadd.f32 %v1726_v52, %v1635_v60  ;;  %v5560_v51 = vmul.f32 0.70710677, %v1732_v48  ;;  %v4550_v60 = vld [vmem:[%s6105_s11 + $0x10] sm:$0xff]  }
 0x89e   : > { %v4663_v29 = vpop.eup %4662 }
 0x89f   : > { %v1733_v49 = vadd.f32 %v1729_v33, %v5535_v24  ;;  %v1727_v30 = vmul.f32 %v4663_v29, %v1679_v23  ;;  %v5567_v31 = vmul.f32 0.70710677, %v1730_v36  ;;  %v4549_v24 = vld [vmem:[%s6105_s11 + $0x8] sm:$0xff]  }
 0x8a1   : > { %v5562_v40 = vmul.f32 0.70710677, %v1733_v49  ;;  %v1731_v34 = vadd.f32 %v1727_v30, %v5538_v42  ;;  %v4551_v42 = vld [vmem:[%s6105_s11 + $0x18] sm:$0xff]  }
 0x8a3   : > { %v1773_v50 = vpack.c.bf16 %v5562_v40, %v5560_v51  ;;  %v5569_v38 = vmul.f32 0.70710677, %v1731_v34 }
 0x8a5   : > { %4352 = vmatprep.subr.bf16.mxu1 %v1773_v50  ;;  %v1772_v57 = vpack.c.bf16 %v5569_v38, %v5567_v31 }
 0x8a6   : > { %4353 = vmatpush3.bf16.msra.mxu1 %v1773_v50 }
 0x8a7   : > { %4354 = vmatprep.subr.bf16.mxu1 %v1772_v57 }
 0x8aa   : > { %4355 = vmatpush3.bf16.msra.mxu1 %v1772_v57  ;;  %v1787_v57 = vpop.permute.xlu0 %1786 }
 0x8ab   : > { %4376 = vmatprep.subr.bf16.mxu1 %v6112_v37 }
 0x8ad   : > { %4357 = vmatmul.mubr.msk.bf16.vlgmr.msra.gmra.mxu1 %vm820_vm1, %v4549_v24  ;;  %v1792_v24 = vpop.permute.xlu1 %1791 }
 0x8ae   : > { %4360 = vmatprep.mubr.msk.bf16.mxu1 %vm820_vm1, %v4550_v60  ;;  %v1777_v46 = vpop.permute.xlu0 %1776 }
 0x8b5   : > { %4361 = vmatmul.mubr.msk.bf16.gmra.mxu1 %vm820_vm1, %v4551_v42 }
 0x8b6   : > { %4378 = vmatprep.mubr.msk.bf16.mxu1 %vm4899_vm2, %v6112_v37 }
 0x96d   : > { %v4358_v28 = vpop.f32.mrf.mxu1 }
 0x96e   : > { %v1889_v60 = vadd.f32 %v4358_v28, %v1787_v57 }
 0x96f   : > { %v1880_v21 = vpop.f32.mrf.mxu1 }
 0x971   : > { %v4359_v25 = vpop.f32.mrf.mxu1 }
 0x973   : > { %v1883_v17 = vpop.f32.mrf.mxu1 }
 0x975   : > { %v4362_v54 = vpop.f32.mrf.mxu1 }
 0x976   : > { %v1905_v58 = vadd.f32 %v4362_v54, %v1807_v22  ;;  %v1881_v22 = vadd.f32 %v1880_v21, %v1777_v46 }
 0x977   : > { %v1896_v62 = vpop.f32.mrf.mxu1 }
 0x978   : > { %v1913_v63 = vsub.f32 0.0, %v1905_v58  ;;  %v1897_v0 = vadd.f32 %v1896_v62, %v1797_v61  ;;  %v1892_v58 = vadd.f32 %v4359_v25, %v1792_v24 }
 0x979   : > { %v4363_v1 = vpop.f32.mrf.mxu1 }
 0x97a   : > { %v1919_v2 = vmul.f32 1.442695, %v1913_v63  ;;  %v1911_v3 = vsub.f32 0.0, %v1897_v0  ;;  %v1908_v4 = vadd.f32 %v4363_v1, %v1812_v26  ;;  %v1782_v63 = vpop.permute.xlu1 %1781 }
 0x97b   : > { %v1899_v10 = vpop.f32.mrf.mxu1  ;;  %v1884_v0 = vadd.f32 %v1883_v17, %v1782_v63 }
 0x97c   : > { %4664 = vpow2.f32 %v1919_v2  ;;  %v1915_v11 = vmul.f32 1.442695, %v1911_v3  ;;  %v1914_v13 = vsub.f32 0.0, %v1908_v4  ;;  %v1900_v27 = vadd.f32 %v1899_v10, %v1802_v5 }
 0x97e   : > { %4666 = vpow2.f32 %v1915_v11  ;;  %v1921_v52 = vmul.f32 1.442695, %v1914_v13  ;;  %v1912_v45 = vsub.f32 0.0, %v1900_v27  ;;  %v5623_v27 = vld [vmem:[%s6097_s3] sm:$0xff]  }
 0x980   : > { %4668 = vpow2.f32 %v1921_v52  ;;  %v1917_v23 = vmul.f32 1.442695, %v1912_v45  ;;  %v1978_v52 = vpop.permute.xlu0 %1977 }
 0x982   : > { %4670 = vpow2.f32 %v1917_v23 }
 0x984   : > { %v1958_v45 = vpop.permute.xlu0 %1957 }
 0x988   : > { %v5627_v23 = vpop.permute.xlu0 %2127 }
 0x989   : > { %v4665_v33 = vpop.eup %4664 }
 0x98a   : > { %v1925_v48 = vadd.f32 1.0, %v4665_v33 }
 0x98b   : > { %v4667_v29 = vpop.eup %4666 }
 0x98c   : > { %4672 = vrcp.f32 %v1925_v48  ;;  %v1923_v49 = vadd.f32 1.0, %v4667_v29  ;;  %v5629_v33 = vpop.permute.xlu0 %2650 }
 0x98d   : > { %v4669_v30 = vpop.eup %4668 }
 0x98e   : > { %4674 = vrcp.f32 %v1923_v49  ;;  %v1926_v36 = vadd.f32 1.0, %v4669_v30 }
 0x98f   : > { %v4671_v34 = vpop.eup %4670 }
 0x990   : > { %4676 = vrcp.f32 %v1926_v36  ;;  %v1924_v50 = vadd.f32 1.0, %v4671_v34  ;;  %v5631_v48 = vpop.permute.xlu0 %2640 }
 0x992   : > { %4678 = vrcp.f32 %v1924_v50 }
 0x994   : > { %v5633_v29 = vpop.permute.xlu0 %2630 }
 0x998   : > { %v5635_v49 = vpop.permute.xlu0 %2620 }
 0x999   : > { %v4673_v42 = vpop.eup %4672 }
 0x99a   : > { %v1933_v26 = vmul.f32 %v4673_v42, %v1889_v60 }
 0x99b   : > { %v4675_v54 = vpop.eup %4674 }
 0x99c   : > { %v1931_v61 = vmul.f32 %v4675_v54, %v1881_v22  ;;  %v1937_v2 = vadd.f32 %v1933_v26, %v5560_v51  ;;  %v5637_v30 = vpop.permute.xlu0 %2821 }
 0x99d   : > { %v4677_v62 = vpop.eup %4676 }
 0x99e   : > { %v1934_v1 = vmul.f32 %v4677_v62, %v1892_v58  ;;  %v1935_v10 = vadd.f32 %v1931_v61, %v5567_v31  ;;  %v5595_v28 = vmul.f32 0.70710677, %v1937_v2  ;;  %v4554_v31 = vld [vmem:[%s6105_s11 + $0x30] sm:$0xff]   ;;  %v1983_v2 = vpop.permute.xlu1 %1982 }
 0x99f   : > { %v4679_v3 = vpop.eup %4678 }
 0x9a0   : > { %v1938_v4 = vadd.f32 %v1934_v1, %v5562_v40  ;;  %v1932_v5 = vmul.f32 %v4679_v3, %v1884_v0  ;;  %v5602_v13 = vmul.f32 0.70710677, %v1935_v10  ;;  %v4553_v40 = vld [vmem:[%s6105_s11 + $0x28] sm:$0xff]   ;;  %v5639_v36 = vpop.permute.xlu0 %2801 }
 0x9a2   : > { %v5597_v11 = vmul.f32 0.70710677, %v1938_v4  ;;  %v1936_v21 = vadd.f32 %v1932_v5, %v5569_v38  ;;  %v4555_v38 = vld [vmem:[%s6105_s11 + $0x38] sm:$0xff]  }
 0x9a4   : > { %v1944_v25 = vpack.c.bf16 %v5597_v11, %v5595_v28  ;;  %v5604_v17 = vmul.f32 0.70710677, %v1936_v21  ;;  %v5641_v34 = vpop.permute.xlu0 %2971 }
 0x9a6   : > { %4364 = vmatprep.subr.bf16.mxu0 %v1944_v25  ;;  %v1943_v51 = vpack.c.bf16 %v5604_v17, %v5602_v13 }
 0x9a7   : > { %4365 = vmatpush3.bf16.msra.mxu0 %v1944_v25 }
 0x9a8   : > { %4366 = vmatprep.subr.bf16.mxu0 %v1943_v51  ;;  %v5643_v50 = vpop.permute.xlu0 %3490 }
 0x9a9   : > { %6126 = vst [vmem:[#allocation8_spill] sm:$0xff] %v5643_v50 }
 0x9ab   : > { %4367 = vmatpush3.bf16.msra.mxu0 %v1943_v51 }
 0x9ac   : > { %v5645_v57 = vpop.permute.xlu0 %3480 }
 0x9ad   : > { %6127 = vst [vmem:[#allocation9_spill] sm:$0xff] %v5645_v57 }
 0x9ae   : > { %4369 = vmatmul.mubr.msk.bf16.vlgmr.msra.gmra.mxu0 %vm820_vm1, %v4553_v40 }
 0x9af   : > { %4372 = vmatprep.mubr.msk.bf16.mxu0 %vm820_vm1, %v4554_v31 }
 0x9b0   : > { %v5647_v24 = vpop.permute.xlu0 %3470 }
 0x9b1   : > { %6128 = vst [vmem:[#allocation10_spill] sm:$0xff] %v5647_v24 }
 0x9b4   : > { %v5649_v60 = vpop.permute.xlu0 %3460 }
 0x9b5   : > { %6129 = vst [vmem:[#allocation11_spill] sm:$0xff] %v5649_v60 }
 0x9b6   : > { %4373 = vmatmul.mubr.msk.bf16.gmra.mxu0 %vm820_vm1, %v4555_v38 }
 0x9b7   : > { %4384 = vmatprep.mubr.msk.bf16.mxu0 %vm696_vm0, %v5623_v27 }
 0x9b8   : > { %v5651_v22 = vpop.permute.xlu0 %1972 }
 0x9bc   : > { %v1968_v62 = vpop.permute.xlu0 %1967 }
 0x9c0   : > { %v5655_v37 = vpop.permute.xlu0 %3654 }
 0x9c1   : > { %6130 = vst [vmem:[#allocation12_spill] sm:$0xff] %v5655_v37 }
 0xa6e   : > { %v4370_v42 = vpop.f32.mrf.mxu0 }
 0xa70   : > { %v2051_v46 = vpop.f32.mrf.mxu0 }
 0xa72   : > { %v4371_v26 = vpop.f32.mrf.mxu0 }
 0xa74   : > { %v5653_v54 = vpop.f32.mrf.mxu0 }
 0xa76   : > { %v4374_v58 = vpop.f32.mrf.mxu0 }
 0xa77   : > { %v2076_v61 = vadd.f32 %v4374_v58, %v1978_v52 }
 0xa78   : > { %v2067_v63 = vpop.f32.mrf.mxu0 }
 0xa79   : > { %v2084_v0 = vsub.f32 0.0, %v2076_v61  ;;  %v2068_v1 = vadd.f32 %v2067_v63, %v1968_v62  ;;  %v5657_v62 = vpop.permute.xlu0 %1952  ;;  %v2060_v63 = vadd.f32 %v4370_v42, %v1958_v45  ;;  %v4556_v45 = vld [vmem:[%s6103_s9 + $0x8] sm:$0xff]   ;;  %v4823_v42 = vld [vmem:[%s6099_s5] sm:$0xff]  }
 0xa7a   : > { %v4375_v3 = vpop.f32.mrf.mxu0 }
 0xa7b   : > { %v2090_v4 = vmul.f32 1.442695, %v2084_v0  ;;  %v2082_v5 = vsub.f32 0.0, %v2068_v1  ;;  %v2079_v10 = vadd.f32 %v4375_v3, %v1983_v2 }
 0xa7d   : > { %4680 = vpow2.f32 %v2090_v4  ;;  %v2086_v21 = vmul.f32 1.442695, %v2082_v5  ;;  %v2085_v25 = vsub.f32 0.0, %v2079_v10  ;;  %v1948_v1 = vpop.permute.xlu0 %1947  ;;  %v1963_v5 = vpop.permute.xlu1 %1962 }
 0xa7e   : > { %v2052_v2 = vadd.f32 %v2051_v46, %v1948_v1  ;;  %v2063_v10 = vadd.f32 %v4371_v26, %v1963_v5 }
 0xa7f   : > { %4682 = vpow2.f32 %v2086_v21  ;;  %v2092_v51 = vmul.f32 1.442695, %v2085_v25 }
 0xa81   : > { %4684 = vpow2.f32 %v2092_v51  ;;  %v2133_v26 = vpop.permute.xlu1 %2132 }
 0xa8a   : > { %v4681_v40 = vpop.eup %4680 }
 0xa8b   : > { %v2096_v31 = vadd.f32 1.0, %v4681_v40 }
 0xa8c   : > { %v4683_v38 = vpop.eup %4682 }
 0xa8d   : > { %4686 = vrcp.f32 %v2096_v31  ;;  %v2094_v52 = vadd.f32 1.0, %v4683_v38 }
 0xa8e   : > { %v4685_v58 = vpop.eup %4684 }
 0xa8f   : > { %4688 = vrcp.f32 %v2094_v52  ;;  %v2097_v61 = vadd.f32 1.0, %v4685_v58 }
 0xa91   : > { %4690 = vrcp.f32 %v2097_v61 }
 0xa9a   : > { %v4687_v0 = vpop.eup %4686 }
 0xa9b   : > { %v2104_v3 = vmul.f32 %v4687_v0, %v2060_v63  ;;  %v6115_v63 = vsub.f32 1.5, %v5503_v19  ;;  %v6114_v0 = vsub.f32 1.5, %v5505_v20 }
 0xa9c   : > { %v4689_v4 = vpop.eup %4688 }
 0xa9d   : > { %v5659_v21 = vmul.f32 %v4689_v4, %v2052_v2  ;;  %v2108_v40 = vadd.f32 %v2104_v3, %v5595_v28 }
 0xa9e   : > { %v4691_v25 = vpop.eup %4690 }
 0xa9f   : > { %v2105_v51 = vmul.f32 %v4691_v25, %v2063_v10  ;;  %v2112_v38 = vmul.f32 0.70710677, %v2108_v40 }
 0xaa1   : > { %v2109_v31 = vadd.f32 %v2105_v51, %v5597_v11 }
 0xaa3   : > { %v2113_v52 = vmul.f32 0.70710677, %v2109_v31 }
 0xaa5   : > { %v2121_v58 = vpack.c.bf16 %v2113_v52, %v2112_v38 }
 0xaa7   : > { %4377 = vmatpush3.bf16.msra.mxu1 %v2121_v58 }
 0xaaa   : > { %4379 = vmatmul.mubr.msk.bf16.vlgmr.msra.gmra.mxu1 %vm696_vm0, %v4556_v45 }
 0xaab   : > { %4396 = vmatprep.mubr.msk.bf16.mxu1 %vm820_vm1, %v4823_v42 }
 0xb6a   : > { %v2177_v46 = vpop.f32.mrf.mxu1 }
 0xb6b   : > { %v2178_v11 = vadd.f32 %v2177_v46, %v5627_v23 }
 0xb6c   : > { %v4380_v28 = vpop.f32.mrf.mxu1 }
 0xb6d   : > { %v5676_v3 = vmul.f32 %v2178_v11, %v6115_v63 }
 0xb6e   : > { %v2180_v61 = vpop.f32.mrf.mxu1 }
 0xb6f   : > { %v2181_v1 = vadd.f32 %v2180_v61, %v2133_v26 }
 0xb70   : > { %v4381_v2 = vpop.f32.mrf.mxu1 }
 0xb71   : > { %v5680_v4 = vmul.f32 %v2181_v1, %v6114_v0 }
 0xb73   : > { %v2186_v5 = vmax.f32 %v5676_v3, %v5680_v4 }
 0xb75   : > { %v2187_v23 = vrot.slane %v2186_v5, 4 }
 0xb77   : > { %v2188_v10 = vmax.f32 %v2186_v5, %v2187_v23 }
 0xb79   : > { %v2189_v25 = vrot.slane %v2188_v10, 2 }
 0xb7b   : > { %v2190_v51 = vmax.f32 %v2188_v10, %v2189_v25 }
 0xb7d   : > { %v2191_v40 = vrot.slane %v2190_v51, 1 }
 0xb7f   : > { %v2192_v31 = vmax.f32 %v2190_v51, %v2191_v40 }
 0xb81   : > { %v4046_v38 = vadd.f32 -1.0, %v2192_v31 }
 0xb83   : > { %v2194_v52 = vadd.f32 %v4046_v38, %v2192_v31 }
 0xb85   : > { %v2195_v58 = vmul.f32 0.5, %v2194_v52 }
 0xb87   : > { %v2196_v45 = vsub.f32 %v5676_v3, %v2195_v58  ;;  %v2197_v42 = vsub.f32 %v5680_v4, %v2195_v58 }
 0xb89   : > { %v2198_v46 = vmax.f32 %v2196_v45, 0.0  ;;  %v2199_v28 = vmax.f32 %v2197_v42, 0.0 }
 0xb8b   : > { %v2200_v11 = vadd.f32 %v2199_v28, %v2198_v46 }
 0xb8d   : > { %v2201_v26 = vrot.slane %v2200_v11, 4 }
 0xb8f   : > { %v2202_v61 = vadd.f32 %v2201_v26, %v2200_v11 }
 0xb91   : > { %v2203_v1 = vrot.slane %v2202_v61, 2 }
 0xb93   : > { %v2204_v2 = vadd.f32 %v2203_v1, %v2202_v61 }
 0xb95   : > { %v2205_v0 = vrot.slane %v2204_v2, 1 }
 0xb97   : > { %v2206_v5 = vadd.f32 %v2205_v0, %v2204_v2 }
 0xb99   : > { %vm2207_vm15 = vcmp.gt.f32.partialorder %v2206_v5, 1.0 }
 0xb9a   : > { %v2208_v23 = vsel %vm2207_vm15, %v2195_v58, %v4046_v38  ;;  %v2209_v10 = vsel %vm2207_vm15, %v2192_v31, %v2195_v58 }
 0xb9b   : > { %v2210_v25 = vadd.f32 %v2209_v10, %v2208_v23 }
 0xb9d   : > { %v2211_v51 = vmul.f32 0.5, %v2210_v25 }
 0xb9f   : > { %v2212_v40 = vsub.f32 %v5676_v3, %v2211_v51  ;;  %v2213_v52 = vsub.f32 %v5680_v4, %v2211_v51 }
 0xba1   : > { %v2214_v63 = vmax.f32 %v2212_v40, 0.0  ;;  %v2215_v37 = vmax.f32 %v2213_v52, 0.0 }
 0xba3   : > { %v2216_v45 = vadd.f32 %v2215_v37, %v2214_v63 }
 0xba5   : > { %v2217_v42 = vrot.slane %v2216_v45, 4 }
 0xba7   : > { %v2218_v46 = vadd.f32 %v2217_v42, %v2216_v45 }
 0xba9   : > { %v2219_v28 = vrot.slane %v2218_v46, 2 }
 0xbab   : > { %v2220_v11 = vadd.f32 %v2219_v28, %v2218_v46 }
 0xbad   : > { %v2221_v26 = vrot.slane %v2220_v11, 1 }
 0xbaf   : > { %v2222_v61 = vadd.f32 %v2221_v26, %v2220_v11 }
 0xbb1   : > { %vm2223_vm3 = vcmp.gt.f32.partialorder %v2222_v61, 1.0 }
 0xbb2   : > { %v2224_v0 = vsel %vm2223_vm3, %v2211_v51, %v2208_v23  ;;  %v2225_v1 = vsel %vm2223_vm3, %v2209_v10, %v2211_v51 }
 0xbb3   : > { %v2226_v38 = vadd.f32 %v2225_v1, %v2224_v0 }
 0xbb5   : > { %v2227_v31 = vmul.f32 0.5, %v2226_v38 }
 0xbb7   : > { %v2228_v58 = vsub.f32 %v5676_v3, %v2227_v31  ;;  %v2229_v2 = vsub.f32 %v5680_v4, %v2227_v31 }
 0xbb9   : > { %v2230_v5 = vmax.f32 %v2228_v58, 0.0  ;;  %v2231_v25 = vmax.f32 %v2229_v2, 0.0 }
 0xbbb   : > { %v2232_v40 = vadd.f32 %v2231_v25, %v2230_v5 }
 0xbbd   : > { %v2233_v52 = vrot.slane %v2232_v40, 4 }
 0xbbf   : > { %v2234_v37 = vadd.f32 %v2233_v52, %v2232_v40 }
 0xbc1   : > { %v2235_v63 = vrot.slane %v2234_v37, 2 }
 0xbc3   : > { %v2236_v45 = vadd.f32 %v2235_v63, %v2234_v37 }
 0xbc5   : > { %v2237_v42 = vrot.slane %v2236_v45, 1 }
 0xbc7   : > { %v2238_v46 = vadd.f32 %v2237_v42, %v2236_v45 }
 0xbc9   : > { %vm2239_vm4 = vcmp.gt.f32.partialorder %v2238_v46, 1.0 }
 0xbca   : > { %v2240_v28 = vsel %vm2239_vm4, %v2227_v31, %v2224_v0  ;;  %v2241_v11 = vsel %vm2239_vm4, %v2225_v1, %v2227_v31 }
 0xbcb   : > { %v2242_v23 = vadd.f32 %v2241_v11, %v2240_v28 }
 0xbcd   : > { %v2243_v10 = vmul.f32 0.5, %v2242_v23 }
 0xbcf   : > { %v2244_v51 = vsub.f32 %v5676_v3, %v2243_v10  ;;  %v2245_v26 = vsub.f32 %v5680_v4, %v2243_v10 }
 0xbd1   : > { %v2246_v61 = vmax.f32 %v2244_v51, 0.0  ;;  %v2247_v38 = vmax.f32 %v2245_v26, 0.0 }
 0xbd3   : > { %v2248_v58 = vadd.f32 %v2247_v38, %v2246_v61 }
 0xbd5   : > { %v2249_v2 = vrot.slane %v2248_v58, 4 }
 0xbd7   : > { %v2250_v5 = vadd.f32 %v2249_v2, %v2248_v58 }
 0xbd9   : > { %v2251_v25 = vrot.slane %v2250_v5, 2 }
 0xbdb   : > { %v2252_v40 = vadd.f32 %v2251_v25, %v2250_v5 }
 0xbdd   : > { %v2253_v52 = vrot.slane %v2252_v40, 1 }
 0xbdf   : > { %v2254_v37 = vadd.f32 %v2253_v52, %v2252_v40 }
 0xbe1   : > { %vm2255_vm5 = vcmp.gt.f32.partialorder %v2254_v37, 1.0 }
 0xbe2   : > { %v2256_v63 = vsel %vm2255_vm5, %v2243_v10, %v2240_v28  ;;  %v2257_v45 = vsel %vm2255_vm5, %v2241_v11, %v2243_v10 }
 0xbe3   : > { %v2258_v0 = vadd.f32 %v2257_v45, %v2256_v63 }
 0xbe5   : > { %v2259_v1 = vmul.f32 0.5, %v2258_v0 }
 0xbe7   : > { %v2260_v31 = vsub.f32 %v5676_v3, %v2259_v1  ;;  %v2261_v42 = vsub.f32 %v5680_v4, %v2259_v1 }
 0xbe9   : > { %v2262_v46 = vmax.f32 %v2260_v31, 0.0  ;;  %v2263_v23 = vmax.f32 %v2261_v42, 0.0 }
 0xbeb   : > { %v2264_v51 = vadd.f32 %v2263_v23, %v2262_v46 }
 0xbed   : > { %v2265_v26 = vrot.slane %v2264_v51, 4 }
 0xbef   : > { %v2266_v61 = vadd.f32 %v2265_v26, %v2264_v51 }
 0xbf1   : > { %v2267_v38 = vrot.slane %v2266_v61, 2 }
 0xbf3   : > { %v2268_v58 = vadd.f32 %v2267_v38, %v2266_v61 }
 0xbf5   : > { %v2269_v2 = vrot.slane %v2268_v58, 1 }
 0xbf7   : > { %v2270_v5 = vadd.f32 %v2269_v2, %v2268_v58 }
 0xbf9   : > { %vm2271_vm6 = vcmp.gt.f32.partialorder %v2270_v5, 1.0 }
 0xbfa   : > { %v2272_v25 = vsel %vm2271_vm6, %v2259_v1, %v2256_v63  ;;  %v2273_v40 = vsel %vm2271_vm6, %v2257_v45, %v2259_v1 }
 0xbfb   : > { %v2274_v28 = vadd.f32 %v2273_v40, %v2272_v25 }
 0xbfd   : > { %v2275_v11 = vmul.f32 0.5, %v2274_v28 }
 0xbff   : > { %v2276_v10 = vsub.f32 %v5676_v3, %v2275_v11  ;;  %v2277_v52 = vsub.f32 %v5680_v4, %v2275_v11 }
 0xc01   : > { %v2278_v37 = vmax.f32 %v2276_v10, 0.0  ;;  %v2279_v0 = vmax.f32 %v2277_v52, 0.0 }
 0xc03   : > { %v2280_v31 = vadd.f32 %v2279_v0, %v2278_v37 }
 0xc05   : > { %v2281_v42 = vrot.slane %v2280_v31, 4 }
 0xc07   : > { %v2282_v46 = vadd.f32 %v2281_v42, %v2280_v31 }
 0xc09   : > { %v2283_v23 = vrot.slane %v2282_v46, 2 }
 0xc0b   : > { %v2284_v51 = vadd.f32 %v2283_v23, %v2282_v46 }
 0xc0d   : > { %v2285_v26 = vrot.slane %v2284_v51, 1 }
 0xc0f   : > { %v2286_v61 = vadd.f32 %v2285_v26, %v2284_v51 }
 0xc11   : > { %vm2287_vm7 = vcmp.gt.f32.partialorder %v2286_v61, 1.0 }
 0xc12   : > { %v2288_v38 = vsel %vm2287_vm7, %v2275_v11, %v2272_v25  ;;  %v2289_v58 = vsel %vm2287_vm7, %v2273_v40, %v2275_v11 }
 0xc13   : > { %v2290_v63 = vadd.f32 %v2289_v58, %v2288_v38 }
 0xc15   : > { %v2291_v45 = vmul.f32 0.5, %v2290_v63 }
 0xc17   : > { %v2292_v1 = vsub.f32 %v5676_v3, %v2291_v45  ;;  %v2293_v2 = vsub.f32 %v5680_v4, %v2291_v45 }
 0xc19   : > { %v2294_v5 = vmax.f32 %v2292_v1, 0.0  ;;  %v2295_v28 = vmax.f32 %v2293_v2, 0.0 }
 0xc1b   : > { %v2296_v10 = vadd.f32 %v2295_v28, %v2294_v5 }
 0xc1d   : > { %v2297_v52 = vrot.slane %v2296_v10, 4 }
 0xc1f   : > { %v2298_v37 = vadd.f32 %v2297_v52, %v2296_v10 }
 0xc21   : > { %v2299_v0 = vrot.slane %v2298_v37, 2 }
 0xc23   : > { %v2300_v31 = vadd.f32 %v2299_v0, %v2298_v37 }
 0xc25   : > { %v2301_v42 = vrot.slane %v2300_v31, 1 }
 0xc27   : > { %v2302_v46 = vadd.f32 %v2301_v42, %v2300_v31 }
 0xc29   : > { %vm2303_vm8 = vcmp.gt.f32.partialorder %v2302_v46, 1.0 }
 0xc2a   : > { %v2304_v23 = vsel %vm2303_vm8, %v2291_v45, %v2288_v38  ;;  %v2305_v51 = vsel %vm2303_vm8, %v2289_v58, %v2291_v45 }
 0xc2b   : > { %v2306_v25 = vadd.f32 %v2305_v51, %v2304_v23 }
 0xc2d   : > { %v2307_v40 = vmul.f32 0.5, %v2306_v25 }
 0xc2f   : > { %v2308_v11 = vsub.f32 %v5676_v3, %v2307_v40  ;;  %v2309_v26 = vsub.f32 %v5680_v4, %v2307_v40 }
 0xc31   : > { %v2310_v61 = vmax.f32 %v2308_v11, 0.0  ;;  %v2311_v63 = vmax.f32 %v2309_v26, 0.0 }
 0xc33   : > { %v2312_v1 = vadd.f32 %v2311_v63, %v2310_v61 }
 0xc35   : > { %v2313_v2 = vrot.slane %v2312_v1, 4 }
 0xc37   : > { %v2314_v5 = vadd.f32 %v2313_v2, %v2312_v1 }
 0xc39   : > { %v2315_v28 = vrot.slane %v2314_v5, 2 }
 0xc3b   : > { %v2316_v10 = vadd.f32 %v2315_v28, %v2314_v5 }
 0xc3d   : > { %v2317_v52 = vrot.slane %v2316_v10, 1 }
 0xc3f   : > { %v2318_v37 = vadd.f32 %v2317_v52, %v2316_v10 }
 0xc41   : > { %vm2319_vm9 = vcmp.gt.f32.partialorder %v2318_v37, 1.0 }
 0xc42   : > { %v2320_v0 = vsel %vm2319_vm9, %v2307_v40, %v2304_v23  ;;  %v2321_v31 = vsel %vm2319_vm9, %v2305_v51, %v2307_v40 }
 0xc43   : > { %v2322_v38 = vadd.f32 %v2321_v31, %v2320_v0 }
 0xc45   : > { %v2323_v58 = vmul.f32 0.5, %v2322_v38 }
 0xc47   : > { %v2324_v45 = vsub.f32 %v5676_v3, %v2323_v58  ;;  %v2325_v42 = vsub.f32 %v5680_v4, %v2323_v58 }
 0xc49   : > { %v2326_v46 = vmax.f32 %v2324_v45, 0.0  ;;  %v2327_v25 = vmax.f32 %v2325_v42, 0.0 }
 0xc4b   : > { %v2328_v11 = vadd.f32 %v2327_v25, %v2326_v46 }
 0xc4d   : > { %v2329_v26 = vrot.slane %v2328_v11, 4 }
 0xc4f   : > { %v2330_v61 = vadd.f32 %v2329_v26, %v2328_v11 }
 0xc51   : > { %v2331_v63 = vrot.slane %v2330_v61, 2 }
 0xc53   : > { %v2332_v1 = vadd.f32 %v2331_v63, %v2330_v61 }
 0xc55   : > { %v2333_v2 = vrot.slane %v2332_v1, 1 }
 0xc57   : > { %v2334_v5 = vadd.f32 %v2333_v2, %v2332_v1 }
 0xc59   : > { %vm2335_vm10 = vcmp.gt.f32.partialorder %v2334_v5, 1.0 }
 0xc5a   : > { %v2336_v28 = vsel %vm2335_vm10, %v2323_v58, %v2320_v0  ;;  %v2337_v10 = vsel %vm2335_vm10, %v2321_v31, %v2323_v58  ;;  %v6131_v58 = vmov 0.0  }
 0xc5b   : > { %v2338_v23 = vadd.f32 %v2337_v10, %v2336_v28 }
 0xc5d   : > { %v2339_v51 = vmul.f32 0.5, %v2338_v23 }
 0xc5f   : > { %v2340_v40 = vsub.f32 %v5676_v3, %v2339_v51  ;;  %v2341_v52 = vsub.f32 %v5680_v4, %v2339_v51 }
 0xc61   : > { %v2342_v37 = vmax.f32 %v2340_v40, 0.0  ;;  %v2343_v38 = vmax.f32 %v2341_v52, 0.0 }
 0xc63   : > { %v2344_v45 = vadd.f32 %v2343_v38, %v2342_v37 }
 0xc65   : > { %v2345_v42 = vrot.slane %v2344_v45, 4 }
 0xc67   : > { %v2346_v46 = vadd.f32 %v2345_v42, %v2344_v45 }
 0xc69   : > { %v2347_v25 = vrot.slane %v2346_v46, 2 }
 0xc6b   : > { %v2348_v11 = vadd.f32 %v2347_v25, %v2346_v46 }
 0xc6d   : > { %v2349_v26 = vrot.slane %v2348_v11, 1 }
 0xc6f   : > { %v2350_v61 = vadd.f32 %v2349_v26, %v2348_v11 }
 0xc71   : > { %vm2351_vm11 = vcmp.gt.f32.partialorder %v2350_v61, 1.0 }
 0xc72   : > { %v2352_v63 = vsel %vm2351_vm11, %v2339_v51, %v2336_v28  ;;  %v2353_v1 = vsel %vm2351_vm11, %v2337_v10, %v2339_v51 }
 0xc73   : > { %v2354_v0 = vadd.f32 %v2353_v1, %v2352_v63 }
 0xc75   : > { %v2355_v31 = vmul.f32 0.5, %v2354_v0 }
 0xc77   : > { %vm2356_vm12 = vcmp.gt.f32.partialorder %v5676_v3, %v2355_v31  ;;  %vm2357_vm13 = vcmp.gt.f32.partialorder %v5680_v4, %v2355_v31 }
 0xc78   : > { %v4047_v2 = vsel %vm2356_vm12, 1.0, %v6131_v58  ;;  %v4048_v5 = vsel %vm2357_vm13, 1.0, %v6131_v58 }
 0xc79   : > { %v2362_v23 = vadd.f32 %v4048_v5, %v4047_v2  ;;  %v2369_v40 = vmul.f32 %v4047_v2, %v5676_v3  ;;  %v2370_v52 = vmul.f32 %v4048_v5, %v5680_v4 }
 0xc7b   : > { %v2363_v37 = vrot.slane %v2362_v23, 4  ;;  %v2371_v38 = vadd.f32 %v2370_v52, %v2369_v40 }
 0xc7d   : > { %v2364_v45 = vadd.f32 %v2363_v37, %v2362_v23  ;;  %v2372_v28 = vrot.slane %v2371_v38, 4 }
 0xc7f   : > { %v2365_v10 = vrot.slane %v2364_v45, 2  ;;  %v2373_v51 = vadd.f32 %v2372_v28, %v2371_v38 }
 0xc81   : > { %v2366_v42 = vadd.f32 %v2365_v10, %v2364_v45  ;;  %v2374_v25 = vrot.slane %v2373_v51, 2 }
 0xc83   : > { %v2367_v46 = vrot.slane %v2366_v42, 1  ;;  %v2375_v26 = vadd.f32 %v2374_v25, %v2373_v51 }
 0xc85   : > { %v2368_v11 = vadd.f32 %v2367_v46, %v2366_v42  ;;  %v2376_v61 = vrot.slane %v2375_v26, 1 }
 0xc87   : > { %4692 = vrcp.f32 %v2368_v11  ;;  %v2377_v63 = vadd.f32 %v2376_v61, %v2375_v26 }
 0xc89   : > { %v4049_v1 = vadd.f32 -1.0, %v2377_v63 }
 0xc94   : > { %v4693_v0 = vpop.eup %4692 }
 0xc95   : > { %v2380_v31 = vmul.f32 %v4693_v0, %v4049_v1 }
 0xc97   : > { %v2381_v2 = vsub.f32 %v5676_v3, %v2380_v31  ;;  %v2382_v5 = vsub.f32 %v5680_v4, %v2380_v31  ;;  %v4824_v3 = vld [vmem:[%s6097_s3 + $0x18] sm:$0xff]   ;;  %v5728_v4 = vpop.f32.mrf.mxu0 }
 0xc99   : > { %v5712_v40 = vmax.f32 %v2381_v2, 0.0  ;;  %v5714_v23 = vmax.f32 %v2382_v5, 0.0 }
 0xc9b   : > { %v2389_v52 = vmul.f32 %v5712_v40, %v5252_v16  ;;  %v2390_v37 = vmul.f32 %v5714_v23, %v5254_v18 }
 0xc9d   : > { %v2391_v38 = vpack.c.bf16 %v2390_v37, %v2389_v52 }
 0xc9f   : > { %4382 = vmatprep.subr.bf16.mxu0 %v2391_v38 }
 0xca0   : > { %4383 = vmatpush3.bf16.msra.mxu0 %v2391_v38 }
 0xca3   : > { %4385 = vmatmul.mubr.msk.bf16.vlgmr.msra.gmra.mxu0 %vm696_vm0, %v5514_v59 }
 0xca4   : > { %4388 = vmatprep.mubr.msk.bf16.mxu0 %vm696_vm0, %v5521_v56 }
 0xcab   : > { %4389 = vmatmul.mubr.msk.bf16.gmra.mxu0 %vm696_vm0, %v4824_v3 }
 0xd63   : > { %v4386_v45 = vpop.f32.mrf.mxu0 }
 0xd65   : > { %v2426_v28 = vpop.f32.mrf.mxu0 }
 0xd67   : > { %v4387_v10 = vpop.f32.mrf.mxu0 }
 0xd69   : > { %v2429_v51 = vpop.f32.mrf.mxu0 }
 0xd6b   : > { %v4390_v42 = vpop.f32.mrf.mxu0 }
 0xd6c   : > { %v2451_v46 = vadd.f32 %v4390_v42, %v5325_v41 }
 0xd6d   : > { %v2442_v25 = vpop.f32.mrf.mxu0 }
 0xd6e   : > { %v2459_v59 = vsub.f32 0.0, %v2451_v46  ;;  %v2443_v11 = vadd.f32 %v2442_v25, %v5330_v47 }
 0xd6f   : > { %v4391_v56 = vpop.f32.mrf.mxu0 }
 0xd70   : > { %v2465_v26 = vmul.f32 1.442695, %v2459_v59  ;;  %v2457_v61 = vsub.f32 0.0, %v2443_v11  ;;  %v2454_v63 = vadd.f32 %v4391_v56, %v5327_v44 }
 0xd71   : > { %v2445_v1 = vpop.f32.mrf.mxu0 }
 0xd72   : > { %4694 = vpow2.f32 %v2465_v26  ;;  %v2461_v0 = vmul.f32 1.442695, %v2457_v61  ;;  %v2460_v31 = vsub.f32 0.0, %v2454_v63  ;;  %v2446_v2 = vadd.f32 %v2445_v1, %v5334_v55 }
 0xd73   : > { %v2435_v63 = vadd.f32 %v4386_v45, %v5339_v8  ;;  %v2438_v1 = vadd.f32 %v4387_v10, %v5337_v7  ;;  %v4826_v10 = vld [vmem:[%s6099_s5 + $0x10] sm:$0xff]  }
 0xd74   : > { %4696 = vpow2.f32 %v2461_v0  ;;  %v2467_v5 = vmul.f32 1.442695, %v2460_v31  ;;  %v2458_v52 = vsub.f32 0.0, %v2446_v2  ;;  %v2427_v31 = vadd.f32 %v2426_v28, %v5345_v15  ;;  %v4825_v28 = vld [vmem:[%s6099_s5 + $0x8] sm:$0xff]  }
 0xd75   : > { %v2430_v2 = vadd.f32 %v2429_v51, %v5343_v14  ;;  %v4827_v51 = vld [vmem:[%s6099_s5 + $0x18] sm:$0xff]  }
 0xd76   : > { %4698 = vpow2.f32 %v2467_v5  ;;  %v2463_v37 = vmul.f32 1.442695, %v2458_v52 }
 0xd78   : > { %4700 = vpow2.f32 %v2463_v37 }
 0xd7f   : > { %v4695_v38 = vpop.eup %4694 }
 0xd80   : > { %v2471_v3 = vadd.f32 1.0, %v4695_v38 }
 0xd81   : > { %v4697_v42 = vpop.eup %4696 }
 0xd82   : > { %v2469_v46 = vadd.f32 1.0, %v4697_v42  ;;  %4702 = vrcp.f32 %v2471_v3 }
 0xd83   : > { %v4699_v25 = vpop.eup %4698 }
 0xd84   : > { %v2472_v59 = vadd.f32 1.0, %v4699_v25  ;;  %4704 = vrcp.f32 %v2469_v46  ;;  %v4557_v46 = vld [vmem:[%s6105_s11 + $0x40] sm:$0xff]  }
 0xd85   : > { %v4701_v11 = vpop.eup %4700  ;;  %4408 = vmatprep.mubr.msk.bf16.mxu0 %vm820_vm1, %v4557_v46 }
 0xd86   : > { %4706 = vrcp.f32 %v2472_v59  ;;  %v2470_v56 = vadd.f32 1.0, %v4701_v11 }
 0xd88   : > { %4708 = vrcp.f32 %v2470_v56 }
 0xd8f   : > { %v4703_v26 = vpop.eup %4702 }
 0xd90   : > { %v5738_v5 = vmul.f32 %v4703_v26, %v2435_v63 }
 0xd91   : > { %v4705_v61 = vpop.eup %4704 }
 0xd92   : > { %v5744_v3 = vmul.f32 %v4705_v61, %v2427_v31 }
 0xd93   : > { %v4707_v0 = vpop.eup %4706 }
 0xd94   : > { %v5740_v52 = vmul.f32 %v4707_v0, %v2438_v1 }
 0xd95   : > { %v4709_v37 = vpop.eup %4708 }
 0xd96   : > { %v2482_v38 = vpack.c.bf16 %v5740_v52, %v5738_v5  ;;  %v5746_v42 = vmul.f32 %v4709_v37, %v2430_v2 }
 0xd98   : > { %4392 = vmatprep.subr.bf16.mxu1 %v2482_v38  ;;  %v2481_v45 = vpack.c.bf16 %v5746_v42, %v5744_v3 }
 0xd99   : > { %4393 = vmatpush3.bf16.msra.mxu1 %v2482_v38 }
 0xd9a   : > { %4394 = vmatprep.subr.bf16.mxu1 %v2481_v45 }
 0xd9d   : > { %4395 = vmatpush3.bf16.msra.mxu1 %v2481_v45 }
 0xda0   : > { %4397 = vmatmul.mubr.msk.bf16.vlgmr.msra.gmra.mxu1 %vm820_vm1, %v4825_v28 }
 0xda1   : > { %4400 = vmatprep.mubr.msk.bf16.mxu1 %vm820_vm1, %v4826_v10 }
 0xda8   : > { %4401 = vmatmul.mubr.msk.bf16.gmra.mxu1 %vm820_vm1, %v4827_v51 }
 0xe60   : > { %v4398_v25 = vpop.f32.mrf.mxu1 }
 0xe62   : > { %v2517_v59 = vpop.f32.mrf.mxu1 }
 0xe64   : > { %v4399_v11 = vpop.f32.mrf.mxu1 }
 0xe66   : > { %v2520_v56 = vpop.f32.mrf.mxu1 }
 0xe68   : > { %v4402_v26 = vpop.f32.mrf.mxu1 }
 0xe69   : > { %v2542_v61 = vadd.f32 %v4402_v26, %v5386_v35 }
 0xe6a   : > { %v2533_v63 = vpop.f32.mrf.mxu1 }
 0xe6b   : > { %v2550_v1 = vsub.f32 0.0, %v2542_v61  ;;  %v2534_v0 = vadd.f32 %v2533_v63, %v5391_v43 }
 0xe6c   : > { %v4403_v31 = vpop.f32.mrf.mxu1 }
 0xe6d   : > { %v2556_v2 = vmul.f32 1.442695, %v2550_v1  ;;  %v2548_v37 = vsub.f32 0.0, %v2534_v0  ;;  %v2545_v38 = vadd.f32 %v4403_v31, %v5388_v39 }
 0xe6e   : > { %v2536_v45 = vpop.f32.mrf.mxu1 }
 0xe6f   : > { %4710 = vpow2.f32 %v2556_v2  ;;  %v2552_v28 = vmul.f32 1.442695, %v2548_v37  ;;  %v2551_v10 = vsub.f32 0.0, %v2545_v38  ;;  %v2537_v51 = vadd.f32 %v2536_v45, %v5395_v53 }
 0xe70   : > { %v2526_v37 = vadd.f32 %v4398_v25, %v5398_v6  ;;  %v2518_v45 = vadd.f32 %v2517_v59, %v5403_v12 }
 0xe71   : > { %4712 = vpow2.f32 %v2552_v28  ;;  %v2558_v46 = vmul.f32 1.442695, %v2551_v10  ;;  %v2549_v60 = vsub.f32 0.0, %v2537_v51  ;;  %v2529_v10 = vadd.f32 %v4399_v11, %v5400_v9 }
 0xe73   : > { %4714 = vpow2.f32 %v2558_v46  ;;  %v2554_v26 = vmul.f32 1.442695, %v2549_v60 }
 0xe75   : > { %4716 = vpow2.f32 %v2554_v26 }
 0xe7c   : > { %v4711_v61 = vpop.eup %4710 }
 0xe7d   : > { %v2562_v24 = vadd.f32 1.0, %v4711_v61 }
 0xe7e   : > { %v4713_v63 = vpop.eup %4712 }
 0xe7f   : > { %4718 = vrcp.f32 %v2562_v24  ;;  %v2560_v1 = vadd.f32 1.0, %v4713_v63  ;;  %v2521_v24 = vadd.f32 %v2520_v56, %v5407_v32 }
 0xe80   : > { %v4715_v0 = vpop.eup %4714 }
 0xe81   : > { %4720 = vrcp.f32 %v2560_v1  ;;  %v2563_v31 = vadd.f32 1.0, %v4715_v0 }
 0xe82   : > { %v4717_v57 = vpop.eup %4716 }
 0xe83   : > { %4722 = vrcp.f32 %v2563_v31  ;;  %v2561_v2 = vadd.f32 1.0, %v4717_v57 }
 0xe85   : > { %4724 = vrcp.f32 %v2561_v2 }
 0xe8c   : > { %v4719_v38 = vpop.eup %4718 }
 0xe8d   : > { %v2570_v28 = vmul.f32 %v4719_v38, %v2526_v37  ;;  %v4561_v37 = vld [vmem:[%s6105_s11 + $0x60] sm:$0xff]  }
 0xe8e   : > { %v4721_v60 = vpop.eup %4720  ;;  %4420 = vmatprep.mubr.msk.bf16.mxu1 %vm820_vm1, %v4561_v37 }
 0xe8f   : > { %v2568_v51 = vmul.f32 %v4721_v60, %v2518_v45  ;;  %v2574_v61 = vadd.f32 %v2570_v28, %v5738_v5 }
 0xe90   : > { %v4723_v46 = vpop.eup %4722 }
 0xe91   : > { %v2571_v26 = vmul.f32 %v4723_v46, %v2529_v10  ;;  %v2572_v25 = vadd.f32 %v2568_v51, %v5744_v3  ;;  %v5777_v0 = vmul.f32 0.70710677, %v2574_v61  ;;  %v4559_v3 = vld [vmem:[%s6105_s11 + $0x50] sm:$0xff]   ;;  %v2656_v10 = vpop.permute.xlu1 %2655 }
 0xe92   : > { %v4725_v63 = vpop.eup %4724 }
 0xe93   : > { %v2575_v57 = vadd.f32 %v2571_v26, %v5740_v52  ;;  %v2569_v1 = vmul.f32 %v4725_v63, %v2521_v24  ;;  %v5784_v2 = vmul.f32 0.70710677, %v2572_v25  ;;  %v4558_v52 = vld [vmem:[%s6105_s11 + $0x48] sm:$0xff]  }
 0xe95   : > { %v5779_v59 = vmul.f32 0.70710677, %v2575_v57  ;;  %v2573_v31 = vadd.f32 %v2569_v1, %v5746_v42  ;;  %v4560_v42 = vld [vmem:[%s6105_s11 + $0x58] sm:$0xff]  }
 0xe97   : > { %v2617_v11 = vpack.c.bf16 %v5779_v59, %v5777_v0  ;;  %v5786_v56 = vmul.f32 0.70710677, %v2573_v31  ;;  %v2646_v31 = vpop.permute.xlu1 %2645 }
 0xe99   : > { %4404 = vmatprep.subr.bf16.mxu0 %v2617_v11  ;;  %v2616_v5 = vpack.c.bf16 %v5786_v56, %v5784_v2 }
 0xe9a   : > { %4405 = vmatpush3.bf16.msra.mxu0 %v2617_v11 }
 0xe9b   : > { %4406 = vmatprep.subr.bf16.mxu0 %v2616_v5 }
 0xe9e   : > { %4407 = vmatpush3.bf16.msra.mxu0 %v2616_v5 }
 0xe9f   : > { %4428 = vmatprep.subr.bf16.mxu0 %v6131_v58 }
 0xea1   : > { %4409 = vmatmul.mubr.msk.bf16.vlgmr.msra.gmra.mxu0 %vm820_vm1, %v4558_v52 }
 0xea2   : > { %4412 = vmatprep.mubr.msk.bf16.mxu0 %vm820_vm1, %v4559_v3 }
 0xea9   : > { %4413 = vmatmul.mubr.msk.bf16.gmra.mxu0 %vm820_vm1, %v4560_v42 }
 0xeaa   : > { %4430 = vmatprep.mubr.msk.bf16.mxu0 %vm4899_vm2, %v6131_v58 }
 0xf61   : > { %v4410_v38 = vpop.f32.mrf.mxu0 }
 0xf63   : > { %v2724_v45 = vpop.f32.mrf.mxu0 }
 0xf65   : > { %v4411_v28 = vpop.f32.mrf.mxu0 }
 0xf67   : > { %v2727_v60 = vpop.f32.mrf.mxu0 }
 0xf69   : > { %v4414_v51 = vpop.f32.mrf.mxu0 }
 0xf6a   : > { %v2749_v46 = vadd.f32 %v4414_v51, %v5629_v33 }
 0xf6b   : > { %v2740_v24 = vpop.f32.mrf.mxu0 }
 0xf6c   : > { %v2757_v26 = vsub.f32 0.0, %v2749_v46  ;;  %v2741_v61 = vadd.f32 %v2740_v24, %v5631_v48 }
 0xf6d   : > { %v4415_v63 = vpop.f32.mrf.mxu0 }
 0xf6e   : > { %v2763_v57 = vmul.f32 1.442695, %v2757_v26  ;;  %v2755_v1 = vsub.f32 0.0, %v2741_v61  ;;  %v2752_v25 = vadd.f32 %v4415_v63, %v2656_v10  ;;  %v2636_v63 = vpop.permute.xlu1 %2635 }
 0xf6f   : > { %v2743_v11 = vpop.f32.mrf.mxu0 }
 0xf70   : > { %4726 = vpow2.f32 %v2763_v57  ;;  %v2759_v5 = vmul.f32 1.442695, %v2755_v1  ;;  %v2758_v52 = vsub.f32 0.0, %v2752_v25  ;;  %v2744_v3 = vadd.f32 %v2743_v11, %v2646_v31 }
 0xf71   : > { %v2733_v57 = vadd.f32 %v4410_v38, %v5633_v29  ;;  %v2725_v25 = vadd.f32 %v2724_v45, %v5635_v49  ;;  %v2736_v11 = vadd.f32 %v4411_v28, %v2636_v63 }
 0xf72   : > { %4728 = vpow2.f32 %v2759_v5  ;;  %v2765_v42 = vmul.f32 1.442695, %v2758_v52  ;;  %v2756_v37 = vsub.f32 0.0, %v2744_v3  ;;  %v2626_v3 = vpop.permute.xlu1 %2625 }
 0xf74   : > { %4730 = vpow2.f32 %v2765_v42  ;;  %v2761_v50 = vmul.f32 1.442695, %v2756_v37  ;;  %v2728_v42 = vadd.f32 %v2727_v60, %v2626_v3 }
 0xf76   : > { %4732 = vpow2.f32 %v2761_v50 }
 0xf7d   : > { %v4727_v33 = vpop.eup %4726 }
 0xf7e   : > { %v2769_v51 = vadd.f32 1.0, %v4727_v33 }
 0xf7f   : > { %v4729_v46 = vpop.eup %4728 }
 0xf80   : > { %4734 = vrcp.f32 %v2769_v51  ;;  %v2767_v48 = vadd.f32 1.0, %v4729_v46 }
 0xf81   : > { %v4731_v24 = vpop.eup %4730 }
 0xf82   : > { %4736 = vrcp.f32 %v2767_v48  ;;  %v2770_v10 = vadd.f32 1.0, %v4731_v24 }
 0xf83   : > { %v4733_v26 = vpop.eup %4732 }
 0xf84   : > { %4738 = vrcp.f32 %v2770_v10  ;;  %v2768_v61 = vadd.f32 1.0, %v4733_v26  ;;  %v2827_v10 = vpop.permute.xlu1 %2826 }
 0xf86   : > { %4740 = vrcp.f32 %v2768_v61 }
 0xf88   : > { %v5843_v26 = vpop.permute.xlu1 %2806 }
 0xf8c   : > { %v5845_v61 = vpop.permute.xlu1 %2976 }
 0xf8d   : > { %v4735_v1 = vpop.eup %4734 }
 0xf8e   : > { %v2777_v31 = vmul.f32 %v4735_v1, %v2733_v57 }
 0xf8f   : > { %v4737_v50 = vpop.eup %4736 }
 0xf90   : > { %v2775_v5 = vmul.f32 %v4737_v50, %v2725_v25  ;;  %v2781_v33 = vadd.f32 %v2777_v31, %v5777_v0  ;;  %v5847_v63 = vpop.permute.xlu1 %3495  ;;  %v2071_v25 = vadd.f32 %v5728_v4, %v5651_v22 }
 0xf91   : > { %v4739_v52 = vpop.eup %4738 }
 0xf92   : > { %v2778_v37 = vmul.f32 %v4739_v52, %v2736_v11  ;;  %v2779_v24 = vadd.f32 %v2775_v5, %v5784_v2  ;;  %v5816_v29 = vmul.f32 0.70710677, %v2781_v33  ;;  %v4563_v2 = vld [vmem:[%s6105_s11 + $0x70] sm:$0xff]   ;;  %v2083_v50 = vsub.f32 0.0, %v2071_v25 }
 0xf93   : > { %v4741_v51 = vpop.eup %4740 }
 0xf94   : > { %v2782_v46 = vadd.f32 %v2778_v37, %v5779_v59  ;;  %v2776_v48 = vmul.f32 %v4741_v51, %v2728_v42  ;;  %v5823_v28 = vmul.f32 0.70710677, %v2779_v24  ;;  %v4562_v59 = vld [vmem:[%s6105_s11 + $0x68] sm:$0xff]   ;;  %v5849_v57 = vpop.permute.xlu1 %3485  ;;  %v2088_v52 = vmul.f32 1.442695, %v2083_v50 }
 0xf96   : > { %v5818_v38 = vmul.f32 0.70710677, %v2782_v46  ;;  %v2780_v49 = vadd.f32 %v2776_v48, %v5786_v56  ;;  %v4564_v56 = vld [vmem:[%s6105_s11 + $0x78] sm:$0xff]   ;;  %4742 = vpow2.f32 %v2088_v52 }
 0xf98   : > { %v2788_v45 = vpack.c.bf16 %v5818_v38, %v5816_v29  ;;  %v5825_v60 = vmul.f32 0.70710677, %v2780_v49  ;;  %v5851_v1 = vpop.permute.xlu1 %3475 }
 0xf9a   : > { %4416 = vmatprep.subr.bf16.mxu1 %v2788_v45  ;;  %v2787_v0 = vpack.c.bf16 %v5825_v60, %v5823_v28 }
 0xf9b   : > { %4417 = vmatpush3.bf16.msra.mxu1 %v2788_v45 }
 0xf9c   : > { %4418 = vmatprep.subr.bf16.mxu1 %v2787_v0  ;;  %v5855_v31 = vpop.permute.xlu1 %3465 }
 0xf9d   : > { %6132 = vst [vmem:[#allocation13_spill] sm:$0xff] %v5855_v31 }
 0xf9f   : > { %4419 = vmatpush3.bf16.msra.mxu1 %v2787_v0 }
 0xfa2   : > { %4421 = vmatmul.mubr.msk.bf16.vlgmr.msra.gmra.mxu1 %vm820_vm1, %v4562_v59 }
 0xfa3   : > { %4424 = vmatprep.mubr.msk.bf16.mxu1 %vm820_vm1, %v4563_v2  ;;  %v4743_v31 = vpop.eup %4742 }
 0xfaa   : > { %4425 = vmatmul.mubr.msk.bf16.gmra.mxu1 %vm820_vm1, %v4564_v56 }
 0xfab   : > { %4436 = vmatprep.mubr.msk.bf16.mxu1 %vm696_vm0, %v5623_v27  ;;  %v2817_v27 = vpop.permute.xlu1 %2816 }
 0xfaf   : > { %v2812_v51 = vpop.permute.xlu1 %2811 }
0x1062   : > { %v4422_v11 = vpop.f32.mrf.mxu1 }
0x1064   : > { %v2895_v5 = vpop.f32.mrf.mxu1 }
0x1066   : > { %v4423_v3 = vpop.f32.mrf.mxu1 }
0x1068   : > { %v2898_v42 = vpop.f32.mrf.mxu1 }
0x106a   : > { %v4426_v37 = vpop.f32.mrf.mxu1 }
0x106b   : > { %v2920_v33 = vadd.f32 %v4426_v37, %v5637_v30  ;;  %v2095_v30 = vadd.f32 1.0, %v4743_v31  ;;  %v2055_v31 = vadd.f32 %v5653_v54, %v5657_v62 }
0x106c   : > { %v2911_v46 = vpop.f32.mrf.mxu1 }
0x106d   : > { %v2928_v48 = vsub.f32 0.0, %v2920_v33  ;;  %v2912_v24 = vadd.f32 %v2911_v46, %v2812_v51 }
0x106e   : > { %v4427_v49 = vpop.f32.mrf.mxu1 }
0x106f   : > { %v2934_v45 = vmul.f32 1.442695, %v2928_v48  ;;  %v2926_v22 = vsub.f32 0.0, %v2912_v24  ;;  %v2923_v4 = vadd.f32 %v4427_v49, %v2827_v10  ;;  %v5858_v48 = vpop.permute.xlu1 %3649 }
0x1070   : > { %v2914_v0 = vpop.f32.mrf.mxu1 }
0x1071   : > { %4744 = vpow2.f32 %v2934_v45  ;;  %v2930_v59 = vmul.f32 1.442695, %v2926_v22  ;;  %v2929_v2 = vsub.f32 0.0, %v2923_v4  ;;  %v2915_v56 = vadd.f32 %v2914_v0, %v2817_v27 }
0x1072   : > { %v2904_v4 = vadd.f32 %v4422_v11, %v5639_v36 }
0x1073   : > { %4746 = vpow2.f32 %v2930_v59  ;;  %v2936_v25 = vmul.f32 1.442695, %v2929_v2  ;;  %v2927_v50 = vsub.f32 0.0, %v2915_v56  ;;  %v2797_v45 = vpop.permute.xlu1 %2796  ;;  %v2106_v56 = vadd.f32 %v5659_v21, %v5602_v13 }
0x1075   : > { %4748 = vpow2.f32 %v2936_v25  ;;  %v2932_v52 = vmul.f32 1.442695, %v2927_v50 }
0x1077   : > { %4750 = vpow2.f32 %v2932_v52  ;;  %v2792_v59 = vpop.permute.xlu1 %2791 }
0x1078   : > { %4752 = vrcp.f32 %v2095_v30  ;;  %v2896_v25 = vadd.f32 %v2895_v5, %v2792_v59  ;;  %v2907_v30 = vadd.f32 %v4423_v3, %v5843_v26  ;;  %v2386_v59 = vsub.f32 1.5, %v5714_v23 }
0x107e   : > { %v4745_v37 = vpop.eup %4744 }
0x107f   : > { %v2940_v33 = vadd.f32 1.0, %v4745_v37 }
0x1080   : > { %v4747_v51 = vpop.eup %4746 }
0x1081   : > { %4754 = vrcp.f32 %v2940_v33  ;;  %v2938_v46 = vadd.f32 1.0, %v4747_v51 }
0x1082   : > { %v4749_v10 = vpop.eup %4748 }
0x1083   : > { %4756 = vrcp.f32 %v2938_v46  ;;  %v2941_v24 = vadd.f32 1.0, %v4749_v10  ;;  %v2110_v46 = vmul.f32 0.70710677, %v2106_v56  ;;  %v2899_v10 = vadd.f32 %v2898_v42, %v2797_v45 }
0x1084   : > { %v4751_v27 = vpop.eup %4750 }
0x1085   : > { %4758 = vrcp.f32 %v2941_v24  ;;  %v2939_v49 = vadd.f32 1.0, %v4751_v27  ;;  %v4753_v22 = vpop.eup %4752  ;;  %v2114_v27 = vmax.f32 %v2110_v46, 0.0 }
0x1086   : > { %v2103_v2 = vmul.f32 %v4753_v22, %v2055_v31 }
0x1087   : > { %4760 = vrcp.f32 %v2939_v49 }
0x1088   : > { %v2107_v51 = vadd.f32 %v2103_v2, %v5604_v17 }
0x108a   : > { %v2111_v5 = vmul.f32 0.70710677, %v2107_v51 }
0x108e   : > { %v4755_v0 = vpop.eup %4754 }
0x108f   : > { %v2948_v50 = vmul.f32 %v4755_v0, %v2904_v4  ;;  %v2385_v0 = vsub.f32 1.5, %v5712_v40 }
0x1090   : > { %v4757_v52 = vpop.eup %4756 }
0x1091   : > { %v2946_v37 = vmul.f32 %v4757_v52, %v2896_v25  ;;  %v2952_v36 = vadd.f32 %v2948_v50, %v5816_v29  ;;  %v4565_v29 = vld [vmem:[%s6103_s9 + $0x10] sm:$0xff]   ;;  %v6133_v50 = vsub.f32 1.5, %v5503_v19 }
0x1092   : > { %v4759_v33 = vpop.eup %4758 }
0x1093   : > { %v2949_v54 = vmul.f32 %v4759_v33, %v2907_v30  ;;  %v2950_v62 = vadd.f32 %v2946_v37, %v5823_v28  ;;  %v2956_v49 = vmul.f32 0.70710677, %v2952_v36  ;;  %v2115_v28 = vmax.f32 %v2111_v5, 0.0 }
0x1094   : > { %v4761_v11 = vpop.eup %4760  ;;  %v2387_v52 = vmul.f32 %v2385_v0, %v6133_v50  ;;  %v6134_v30 = vsub.f32 1.5, %v5505_v20 }
0x1095   : > { %v2953_v24 = vadd.f32 %v2949_v54, %v5818_v38  ;;  %v2947_v13 = vmul.f32 %v4761_v11, %v2899_v10  ;;  %v2954_v21 = vmul.f32 0.70710677, %v2950_v62 }
0x1096   : > { %v2388_v37 = vmul.f32 %v2386_v59, %v6134_v30 }
0x1097   : > { %v2957_v26 = vmul.f32 0.70710677, %v2953_v24  ;;  %v2951_v3 = vadd.f32 %v2947_v13, %v5825_v60  ;;  %v2958_v22 = vmax.f32 %v2954_v21, 0.0  ;;  %v4828_v60 = vld [vmem:[%s6099_s5] sm:$0xff]  }
0x1099   : > { %v2965_v17 = vpack.c.bf16 %v2957_v26, %v2956_v49  ;;  %v2955_v31 = vmul.f32 0.70710677, %v2951_v3  ;;  %v5871_v42 = vadd.f32 %v2958_v22, %v2114_v27 }
0x109b   : > { %4429 = vmatpush3.bf16.msra.mxu0 %v2965_v17  ;;  %v2959_v38 = vmax.f32 %v2955_v31, 0.0 }
0x109d   : > { %v5876_v45 = vadd.f32 %v2959_v38, %v2115_v28 }
0x109e   : > { %4431 = vmatmul.mubr.msk.bf16.vlgmr.msra.gmra.mxu0 %vm696_vm0, %v4565_v29 }
0x109f   : > { %4448 = vmatprep.mubr.msk.bf16.mxu0 %vm820_vm1, %v4828_v60 }
0x115e   : > { %v3021_v4 = vpop.f32.mrf.mxu0 }
0x115f   : > { %v3022_v56 = vadd.f32 %v3021_v4, %v5641_v34 }
0x1160   : > { %v4432_v2 = vpop.f32.mrf.mxu0 }
0x1161   : > { %v5891_v46 = vmul.f32 %v3022_v56, %v2387_v52 }
0x1162   : > { %v3024_v25 = vpop.f32.mrf.mxu0 }
0x1163   : > { %v3025_v33 = vadd.f32 %v3024_v25, %v5845_v61 }
0x1164   : > { %v4433_v51 = vpop.f32.mrf.mxu0 }
0x1165   : > { %v5893_v10 = vmul.f32 %v3025_v33, %v2388_v37 }
0x1167   : > { %v3030_v40 = vmax.f32 %v5891_v46, %v5893_v10 }
0x1169   : > { %v3031_v23 = vrot.slane %v3030_v40, 4 }
0x116b   : > { %v3032_v54 = vmax.f32 %v3030_v40, %v3031_v23 }
0x116d   : > { %v3033_v34 = vrot.slane %v3032_v54, 2 }
0x116f   : > { %v3034_v36 = vmax.f32 %v3032_v54, %v3033_v34 }
0x1171   : > { %v3035_v62 = vrot.slane %v3034_v36, 1 }
0x1173   : > { %v3036_v19 = vmax.f32 %v3034_v36, %v3035_v62 }
0x1175   : > { %v4112_v11 = vadd.f32 -1.0, %v3036_v19 }
0x1177   : > { %v3038_v24 = vadd.f32 %v4112_v11, %v3036_v19 }
0x1179   : > { %v3039_v20 = vmul.f32 0.5, %v3038_v24 }
0x117b   : > { %v3040_v13 = vsub.f32 %v5891_v46, %v3039_v20  ;;  %v3041_v61 = vsub.f32 %v5893_v10, %v3039_v20 }
0x117d   : > { %v3042_v21 = vmax.f32 %v3040_v13, 0.0  ;;  %v3043_v5 = vmax.f32 %v3041_v61, 0.0 }
0x117f   : > { %v3044_v27 = vadd.f32 %v3043_v5, %v3042_v21 }
0x1181   : > { %v3045_v49 = vrot.slane %v3044_v27, 4 }
0x1183   : > { %v3046_v26 = vadd.f32 %v3045_v49, %v3044_v27 }
0x1185   : > { %v3047_v3 = vrot.slane %v3046_v26, 2 }
0x1187   : > { %v3048_v22 = vadd.f32 %v3047_v3, %v3046_v26 }
0x1189   : > { %v3049_v17 = vrot.slane %v3048_v22, 1 }
0x118b   : > { %v3050_v31 = vadd.f32 %v3049_v17, %v3048_v22 }
0x118d   : > { %vm3051_vm14 = vcmp.gt.f32.partialorder %v3050_v31, 1.0 }
0x118e   : > { %v3052_v29 = vsel %vm3051_vm14, %v3039_v20, %v4112_v11  ;;  %v3053_v28 = vsel %vm3051_vm14, %v3036_v19, %v3039_v20 }
0x118f   : > { %v3054_v38 = vadd.f32 %v3053_v28, %v3052_v29 }
0x1191   : > { %v3055_v60 = vmul.f32 0.5, %v3054_v38 }
0x1193   : > { %v3056_v4 = vsub.f32 %v5891_v46, %v3055_v60  ;;  %v3057_v0 = vsub.f32 %v5893_v10, %v3055_v60 }
0x1195   : > { %v3058_v59 = vmax.f32 %v3056_v4, 0.0  ;;  %v3059_v2 = vmax.f32 %v3057_v0, 0.0 }
0x1197   : > { %v3060_v56 = vadd.f32 %v3059_v2, %v3058_v59 }
0x1199   : > { %v3061_v25 = vrot.slane %v3060_v56, 4 }
0x119b   : > { %v3062_v50 = vadd.f32 %v3061_v25, %v3060_v56 }
0x119d   : > { %v3063_v52 = vrot.slane %v3062_v50, 2 }
0x119f   : > { %v3064_v30 = vadd.f32 %v3063_v52, %v3062_v50 }
0x11a1   : > { %v3065_v37 = vrot.slane %v3064_v30, 1 }
0x11a3   : > { %v3066_v33 = vadd.f32 %v3065_v37, %v3064_v30 }
0x11a5   : > { %vm3067_vm15 = vcmp.gt.f32.partialorder %v3066_v33, 1.0 }
0x11a6   : > { %v3068_v51 = vsel %vm3067_vm15, %v3055_v60, %v3052_v29  ;;  %v3069_v40 = vsel %vm3067_vm15, %v3053_v28, %v3055_v60 }
0x11a7   : > { %v3070_v23 = vadd.f32 %v3069_v40, %v3068_v51 }
0x11a9   : > { %v3071_v54 = vmul.f32 0.5, %v3070_v23 }
0x11ab   : > { %v3072_v34 = vsub.f32 %v5891_v46, %v3071_v54  ;;  %v3073_v36 = vsub.f32 %v5893_v10, %v3071_v54 }
0x11ad   : > { %v3074_v62 = vmax.f32 %v3072_v34, 0.0  ;;  %v3075_v19 = vmax.f32 %v3073_v36, 0.0 }
0x11af   : > { %v3076_v11 = vadd.f32 %v3075_v19, %v3074_v62 }
0x11b1   : > { %v3077_v24 = vrot.slane %v3076_v11, 4 }
0x11b3   : > { %v3078_v20 = vadd.f32 %v3077_v24, %v3076_v11 }
0x11b5   : > { %v3079_v13 = vrot.slane %v3078_v20, 2 }
0x11b7   : > { %v3080_v61 = vadd.f32 %v3079_v13, %v3078_v20 }
0x11b9   : > { %v3081_v21 = vrot.slane %v3080_v61, 1 }
0x11bb   : > { %v3082_v5 = vadd.f32 %v3081_v21, %v3080_v61 }
0x11bd   : > { %vm3083_vm3 = vcmp.gt.f32.partialorder %v3082_v5, 1.0 }
0x11be   : > { %v3084_v27 = vsel %vm3083_vm3, %v3071_v54, %v3068_v51  ;;  %v3085_v49 = vsel %vm3083_vm3, %v3069_v40, %v3071_v54 }
0x11bf   : > { %v3086_v26 = vadd.f32 %v3085_v49, %v3084_v27 }
0x11c1   : > { %v3087_v3 = vmul.f32 0.5, %v3086_v26 }
0x11c3   : > { %v3088_v22 = vsub.f32 %v5891_v46, %v3087_v3  ;;  %v3089_v17 = vsub.f32 %v5893_v10, %v3087_v3 }
0x11c5   : > { %v3090_v31 = vmax.f32 %v3088_v22, 0.0  ;;  %v3091_v29 = vmax.f32 %v3089_v17, 0.0 }
0x11c7   : > { %v3092_v28 = vadd.f32 %v3091_v29, %v3090_v31 }
0x11c9   : > { %v3093_v38 = vrot.slane %v3092_v28, 4 }
0x11cb   : > { %v3094_v60 = vadd.f32 %v3093_v38, %v3092_v28 }
0x11cd   : > { %v3095_v4 = vrot.slane %v3094_v60, 2 }
0x11cf   : > { %v3096_v0 = vadd.f32 %v3095_v4, %v3094_v60 }
0x11d1   : > { %v3097_v59 = vrot.slane %v3096_v0, 1 }
0x11d3   : > { %v3098_v2 = vadd.f32 %v3097_v59, %v3096_v0 }
0x11d5   : > { %vm3099_vm4 = vcmp.gt.f32.partialorder %v3098_v2, 1.0 }
0x11d6   : > { %v3100_v56 = vsel %vm3099_vm4, %v3087_v3, %v3084_v27  ;;  %v3101_v25 = vsel %vm3099_vm4, %v3085_v49, %v3087_v3 }
0x11d7   : > { %v3102_v50 = vadd.f32 %v3101_v25, %v3100_v56 }
0x11d9   : > { %v3103_v52 = vmul.f32 0.5, %v3102_v50 }
0x11db   : > { %v3104_v30 = vsub.f32 %v5891_v46, %v3103_v52  ;;  %v3105_v37 = vsub.f32 %v5893_v10, %v3103_v52 }
0x11dd   : > { %v3106_v33 = vmax.f32 %v3104_v30, 0.0  ;;  %v3107_v51 = vmax.f32 %v3105_v37, 0.0 }
0x11df   : > { %v3108_v40 = vadd.f32 %v3107_v51, %v3106_v33 }
0x11e1   : > { %v3109_v23 = vrot.slane %v3108_v40, 4 }
0x11e3   : > { %v3110_v54 = vadd.f32 %v3109_v23, %v3108_v40 }
0x11e5   : > { %v3111_v34 = vrot.slane %v3110_v54, 2 }
0x11e7   : > { %v3112_v36 = vadd.f32 %v3111_v34, %v3110_v54 }
0x11e9   : > { %v3113_v62 = vrot.slane %v3112_v36, 1 }
0x11eb   : > { %v3114_v19 = vadd.f32 %v3113_v62, %v3112_v36 }
0x11ed   : > { %vm3115_vm5 = vcmp.gt.f32.partialorder %v3114_v19, 1.0 }
0x11ee   : > { %v3116_v11 = vsel %vm3115_vm5, %v3103_v52, %v3100_v56  ;;  %v3117_v24 = vsel %vm3115_vm5, %v3101_v25, %v3103_v52 }
0x11ef   : > { %v3118_v20 = vadd.f32 %v3117_v24, %v3116_v11 }
0x11f1   : > { %v3119_v13 = vmul.f32 0.5, %v3118_v20 }
0x11f3   : > { %v3120_v61 = vsub.f32 %v5891_v46, %v3119_v13  ;;  %v3121_v21 = vsub.f32 %v5893_v10, %v3119_v13 }
0x11f5   : > { %v3122_v5 = vmax.f32 %v3120_v61, 0.0  ;;  %v3123_v27 = vmax.f32 %v3121_v21, 0.0 }
0x11f7   : > { %v3124_v49 = vadd.f32 %v3123_v27, %v3122_v5 }
0x11f9   : > { %v3125_v26 = vrot.slane %v3124_v49, 4 }
0x11fb   : > { %v3126_v3 = vadd.f32 %v3125_v26, %v3124_v49 }
0x11fd   : > { %v3127_v22 = vrot.slane %v3126_v3, 2 }
0x11ff   : > { %v3128_v17 = vadd.f32 %v3127_v22, %v3126_v3 }
0x1201   : > { %v3129_v31 = vrot.slane %v3128_v17, 1 }
0x1203   : > { %v3130_v29 = vadd.f32 %v3129_v31, %v3128_v17 }
0x1205   : > { %vm3131_vm6 = vcmp.gt.f32.partialorder %v3130_v29, 1.0 }
0x1206   : > { %v3132_v28 = vsel %vm3131_vm6, %v3119_v13, %v3116_v11  ;;  %v3133_v38 = vsel %vm3131_vm6, %v3117_v24, %v3119_v13 }
0x1207   : > { %v3134_v60 = vadd.f32 %v3133_v38, %v3132_v28 }
0x1209   : > { %v3135_v4 = vmul.f32 0.5, %v3134_v60 }
0x120b   : > { %v3136_v0 = vsub.f32 %v5891_v46, %v3135_v4  ;;  %v3137_v59 = vsub.f32 %v5893_v10, %v3135_v4 }
0x120d   : > { %v3138_v2 = vmax.f32 %v3136_v0, 0.0  ;;  %v3139_v56 = vmax.f32 %v3137_v59, 0.0 }
0x120f   : > { %v3140_v25 = vadd.f32 %v3139_v56, %v3138_v2 }
0x1211   : > { %v3141_v50 = vrot.slane %v3140_v25, 4 }
0x1213   : > { %v3142_v52 = vadd.f32 %v3141_v50, %v3140_v25 }
0x1215   : > { %v3143_v30 = vrot.slane %v3142_v52, 2 }
0x1217   : > { %v3144_v37 = vadd.f32 %v3143_v30, %v3142_v52 }
0x1219   : > { %v3145_v33 = vrot.slane %v3144_v37, 1 }
0x121b   : > { %v3146_v51 = vadd.f32 %v3145_v33, %v3144_v37 }
0x121d   : > { %vm3147_vm7 = vcmp.gt.f32.partialorder %v3146_v51, 1.0 }
0x121e   : > { %v3148_v40 = vsel %vm3147_vm7, %v3135_v4, %v3132_v28  ;;  %v3149_v23 = vsel %vm3147_vm7, %v3133_v38, %v3135_v4 }
0x121f   : > { %v3150_v54 = vadd.f32 %v3149_v23, %v3148_v40 }
0x1221   : > { %v3151_v34 = vmul.f32 0.5, %v3150_v54 }
0x1223   : > { %v3152_v36 = vsub.f32 %v5891_v46, %v3151_v34  ;;  %v3153_v62 = vsub.f32 %v5893_v10, %v3151_v34 }
0x1225   : > { %v3154_v19 = vmax.f32 %v3152_v36, 0.0  ;;  %v3155_v11 = vmax.f32 %v3153_v62, 0.0 }
0x1227   : > { %v3156_v24 = vadd.f32 %v3155_v11, %v3154_v19 }
0x1229   : > { %v3157_v20 = vrot.slane %v3156_v24, 4 }
0x122b   : > { %v3158_v13 = vadd.f32 %v3157_v20, %v3156_v24 }
0x122d   : > { %v3159_v61 = vrot.slane %v3158_v13, 2 }
0x122f   : > { %v3160_v21 = vadd.f32 %v3159_v61, %v3158_v13 }
0x1231   : > { %v3161_v5 = vrot.slane %v3160_v21, 1 }
0x1233   : > { %v3162_v27 = vadd.f32 %v3161_v5, %v3160_v21 }
0x1235   : > { %vm3163_vm8 = vcmp.gt.f32.partialorder %v3162_v27, 1.0 }
0x1236   : > { %v3164_v49 = vsel %vm3163_vm8, %v3151_v34, %v3148_v40  ;;  %v3165_v26 = vsel %vm3163_vm8, %v3149_v23, %v3151_v34 }
0x1237   : > { %v3166_v3 = vadd.f32 %v3165_v26, %v3164_v49 }
0x1239   : > { %v3167_v22 = vmul.f32 0.5, %v3166_v3 }
0x123b   : > { %v3168_v17 = vsub.f32 %v5891_v46, %v3167_v22  ;;  %v3169_v31 = vsub.f32 %v5893_v10, %v3167_v22 }
0x123d   : > { %v3170_v29 = vmax.f32 %v3168_v17, 0.0  ;;  %v3171_v28 = vmax.f32 %v3169_v31, 0.0 }
0x123f   : > { %v3172_v38 = vadd.f32 %v3171_v28, %v3170_v29 }
0x1241   : > { %v3173_v60 = vrot.slane %v3172_v38, 4 }
0x1243   : > { %v3174_v4 = vadd.f32 %v3173_v60, %v3172_v38 }
0x1245   : > { %v3175_v0 = vrot.slane %v3174_v4, 2 }
0x1247   : > { %v3176_v59 = vadd.f32 %v3175_v0, %v3174_v4 }
0x1249   : > { %v3177_v2 = vrot.slane %v3176_v59, 1 }
0x124b   : > { %v3178_v56 = vadd.f32 %v3177_v2, %v3176_v59 }
0x124d   : > { %vm3179_vm9 = vcmp.gt.f32.partialorder %v3178_v56, 1.0 }
0x124e   : > { %v3180_v25 = vsel %vm3179_vm9, %v3167_v22, %v3164_v49  ;;  %v3181_v50 = vsel %vm3179_vm9, %v3165_v26, %v3167_v22 }
0x124f   : > { %v3182_v52 = vadd.f32 %v3181_v50, %v3180_v25 }
0x1251   : > { %v3183_v30 = vmul.f32 0.5, %v3182_v52 }
0x1253   : > { %v3184_v37 = vsub.f32 %v5891_v46, %v3183_v30  ;;  %v3185_v33 = vsub.f32 %v5893_v10, %v3183_v30 }
0x1255   : > { %v3186_v51 = vmax.f32 %v3184_v37, 0.0  ;;  %v3187_v40 = vmax.f32 %v3185_v33, 0.0 }
0x1257   : > { %v3188_v23 = vadd.f32 %v3187_v40, %v3186_v51 }
0x1259   : > { %v3189_v54 = vrot.slane %v3188_v23, 4 }
0x125b   : > { %v3190_v34 = vadd.f32 %v3189_v54, %v3188_v23 }
0x125d   : > { %v3191_v36 = vrot.slane %v3190_v34, 2 }
0x125f   : > { %v3192_v62 = vadd.f32 %v3191_v36, %v3190_v34  ;;  %v4829_v34 = vld [vmem:[%s6097_s3 + $0x8] sm:$0xff]  }
0x1261   : > { %v3193_v19 = vrot.slane %v3192_v62, 1 }
0x1263   : > { %v3194_v11 = vadd.f32 %v3193_v19, %v3192_v62 }
0x1265   : > { %vm3195_vm10 = vcmp.gt.f32.partialorder %v3194_v11, 1.0 }
0x1266   : > { %v3196_v24 = vsel %vm3195_vm10, %v3183_v30, %v3180_v25  ;;  %v3197_v20 = vsel %vm3195_vm10, %v3181_v50, %v3183_v30 }
0x1267   : > { %v3198_v13 = vadd.f32 %v3197_v20, %v3196_v24 }
0x1269   : > { %v3199_v61 = vmul.f32 0.5, %v3198_v13 }
0x126b   : > { %vm3200_vm11 = vcmp.gt.f32.partialorder %v5891_v46, %v3199_v61  ;;  %vm3201_vm12 = vcmp.gt.f32.partialorder %v5893_v10, %v3199_v61 }
0x126c   : > { %v4113_v21 = vsel %vm3200_vm11, 1.0, %v6131_v58  ;;  %v4114_v5 = vsel %vm3201_vm12, 1.0, %v6131_v58 }
0x126d   : > { %v3206_v27 = vadd.f32 %v4114_v5, %v4113_v21  ;;  %v3213_v49 = vmul.f32 %v4113_v21, %v5891_v46  ;;  %v3214_v26 = vmul.f32 %v4114_v5, %v5893_v10 }
0x126f   : > { %v3207_v3 = vrot.slane %v3206_v27, 4  ;;  %v3215_v22 = vadd.f32 %v3214_v26, %v3213_v49 }
0x1271   : > { %v3208_v17 = vadd.f32 %v3207_v3, %v3206_v27  ;;  %v3216_v31 = vrot.slane %v3215_v22, 4 }
0x1273   : > { %v3209_v29 = vrot.slane %v3208_v17, 2  ;;  %v3217_v28 = vadd.f32 %v3216_v31, %v3215_v22 }
0x1275   : > { %v3210_v38 = vadd.f32 %v3209_v29, %v3208_v17  ;;  %v3218_v4 = vrot.slane %v3217_v28, 2 }
0x1277   : > { %v3211_v60 = vrot.slane %v3210_v38, 1  ;;  %v3219_v59 = vadd.f32 %v3218_v4, %v3217_v28 }
0x1279   : > { %v3212_v0 = vadd.f32 %v3211_v60, %v3210_v38  ;;  %v3220_v2 = vrot.slane %v3219_v59, 1 }
0x127b   : > { %4762 = vrcp.f32 %v3212_v0  ;;  %v3221_v56 = vadd.f32 %v3220_v2, %v3219_v59 }
0x127d   : > { %v4115_v25 = vadd.f32 -1.0, %v3221_v56 }
0x1288   : > { %v4763_v50 = vpop.eup %4762 }
0x1289   : > { %v3224_v52 = vmul.f32 %v4763_v50, %v4115_v25 }
0x128b   : > { %v3225_v30 = vsub.f32 %v5891_v46, %v3224_v52  ;;  %v3226_v37 = vsub.f32 %v5893_v10, %v3224_v52  ;;  %v4830_v46 = vld [vmem:[%s6097_s3 + $0x10] sm:$0xff]  }
0x128d   : > { %v3227_v33 = vmax.f32 %v3225_v30, 0.0  ;;  %v3228_v51 = vmax.f32 %v3226_v37, 0.0 }
0x128f   : > { %v3229_v40 = vmul.f32 %v3227_v33, %v5252_v16  ;;  %v3230_v23 = vmul.f32 %v3228_v51, %v5254_v18  ;;  %v4831_v16 = vld [vmem:[%s6097_s3 + $0x18] sm:$0xff]  }
0x1291   : > { %v3231_v54 = vpack.c.bf16 %v3230_v23, %v3229_v40 }
0x1293   : > { %4434 = vmatprep.subr.bf16.mxu1 %v3231_v54 }
0x1294   : > { %4435 = vmatpush3.bf16.msra.mxu1 %v3231_v54  ;;  %v4566_v54 = vld [vmem:[%s6105_s11 + $0x80] sm:$0xff]  }
0x1297   : > { %4437 = vmatmul.mubr.msk.bf16.vlgmr.msra.gmra.mxu1 %vm696_vm0, %v4829_v34 }
0x1298   : > { %4440 = vmatprep.mubr.msk.bf16.mxu1 %vm696_vm0, %v4830_v46 }
0x129f   : > { %4441 = vmatmul.mubr.msk.bf16.gmra.mxu1 %vm696_vm0, %v4831_v16 }
0x12a0   : > { %4460 = vmatprep.mubr.msk.bf16.mxu1 %vm820_vm1, %v4566_v54 }
0x1357   : > { %v4438_v18 = vpop.f32.mrf.mxu1 }
0x1358   : > { %v3275_v2 = vadd.f32 %v4438_v18, %v5339_v8  ;;  %v4832_v8 = vld [vmem:[%s6099_s5 + $0x8] sm:$0xff]  }
0x1359   : > { %v3266_v10 = vpop.f32.mrf.mxu1 }
0x135a   : > { %v3267_v50 = vadd.f32 %v3266_v10, %v5345_v15  ;;  %v4834_v15 = vld [vmem:[%s6099_s5 + $0x18] sm:$0xff]  }
0x135b   : > { %v4439_v36 = vpop.f32.mrf.mxu1 }
0x135c   : > { %v3278_v56 = vadd.f32 %v4439_v36, %v5337_v7 }
0x135d   : > { %v3269_v62 = vpop.f32.mrf.mxu1 }
0x135e   : > { %v3270_v52 = vadd.f32 %v3269_v62, %v5343_v14  ;;  %v4833_v14 = vld [vmem:[%s6099_s5 + $0x10] sm:$0xff]  }
0x135f   : > { %v4442_v19 = vpop.f32.mrf.mxu1 }
0x1360   : > { %v3291_v11 = vadd.f32 %v4442_v19, %v5325_v41 }
0x1361   : > { %v3282_v24 = vpop.f32.mrf.mxu1 }
0x1362   : > { %v3299_v20 = vsub.f32 0.0, %v3291_v11  ;;  %v3283_v13 = vadd.f32 %v3282_v24, %v5330_v47 }
0x1363   : > { %v4443_v61 = vpop.f32.mrf.mxu1 }
0x1364   : > { %v3305_v21 = vmul.f32 1.442695, %v3299_v20  ;;  %v3297_v5 = vsub.f32 0.0, %v3283_v13  ;;  %v3294_v27 = vadd.f32 %v4443_v61, %v5327_v44 }
0x1365   : > { %v3285_v49 = vpop.f32.mrf.mxu1 }
0x1366   : > { %4764 = vpow2.f32 %v3305_v21  ;;  %v3301_v26 = vmul.f32 1.442695, %v3297_v5  ;;  %v3300_v3 = vsub.f32 0.0, %v3294_v27  ;;  %v3286_v22 = vadd.f32 %v3285_v49, %v5334_v55 }
0x1368   : > { %4766 = vpow2.f32 %v3301_v26  ;;  %v3307_v17 = vmul.f32 1.442695, %v3300_v3  ;;  %v3298_v31 = vsub.f32 0.0, %v3286_v22 }
0x136a   : > { %4768 = vpow2.f32 %v3307_v17  ;;  %v3303_v41 = vmul.f32 1.442695, %v3298_v31 }
0x136c   : > { %4770 = vpow2.f32 %v3303_v41 }
0x1373   : > { %v4765_v29 = vpop.eup %4764 }
0x1374   : > { %v3311_v28 = vadd.f32 1.0, %v4765_v29 }
0x1375   : > { %v4767_v47 = vpop.eup %4766 }
0x1376   : > { %v3309_v38 = vadd.f32 1.0, %v4767_v47  ;;  %4772 = vrcp.f32 %v3311_v28 }
0x1377   : > { %v4769_v60 = vpop.eup %4768 }
0x1378   : > { %v3312_v4 = vadd.f32 1.0, %v4769_v60  ;;  %4774 = vrcp.f32 %v3309_v38 }
0x1379   : > { %v4771_v44 = vpop.eup %4770 }
0x137a   : > { %4776 = vrcp.f32 %v3312_v4  ;;  %v3310_v0 = vadd.f32 1.0, %v4771_v44 }
0x137c   : > { %4778 = vrcp.f32 %v3310_v0 }
0x1383   : > { %v4773_v59 = vpop.eup %4772 }
0x1384   : > { %v5947_v30 = vmul.f32 %v4773_v59, %v3275_v2 }
0x1385   : > { %v4775_v55 = vpop.eup %4774 }
0x1386   : > { %v5953_v40 = vmul.f32 %v4775_v55, %v3267_v50 }
0x1387   : > { %v4777_v25 = vpop.eup %4776 }
0x1388   : > { %v5949_v37 = vmul.f32 %v4777_v25, %v3278_v56 }
0x1389   : > { %v4779_v33 = vpop.eup %4778 }
0x138a   : > { %v3322_v51 = vpack.c.bf16 %v5949_v37, %v5947_v30  ;;  %v5955_v23 = vmul.f32 %v4779_v33, %v3270_v52 }
0x138c   : > { %4444 = vmatprep.subr.bf16.mxu0 %v3322_v51  ;;  %v3321_v7 = vpack.c.bf16 %v5955_v23, %v5953_v40 }
0x138d   : > { %4445 = vmatpush3.bf16.msra.mxu0 %v3322_v51 }
0x138e   : > { %4446 = vmatprep.subr.bf16.mxu0 %v3321_v7 }
0x1391   : > { %4447 = vmatpush3.bf16.msra.mxu0 %v3321_v7 }
0x1394   : > { %4449 = vmatmul.mubr.msk.bf16.vlgmr.msra.gmra.mxu0 %vm820_vm1, %v4832_v8  ;;  %v4570_v8 = vld [vmem:[%s6105_s11 + $0xa0] sm:$0xff]  }
0x1395   : > { %4452 = vmatprep.mubr.msk.bf16.mxu0 %vm820_vm1, %v4833_v14 }
0x139c   : > { %4453 = vmatmul.mubr.msk.bf16.gmra.mxu0 %vm820_vm1, %v4834_v15 }
0x139d   : > { %4472 = vmatprep.mubr.msk.bf16.mxu0 %vm820_vm1, %v4570_v8 }
0x1454   : > { %v4450_v34 = vpop.f32.mrf.mxu0 }
0x1456   : > { %v3357_v46 = vpop.f32.mrf.mxu0 }
0x1457   : > { %v3358_v38 = vadd.f32 %v3357_v46, %v5403_v12 }
0x1458   : > { %v4451_v16 = vpop.f32.mrf.mxu0 }
0x1459   : > { %v3369_v44 = vadd.f32 %v4451_v16, %v5400_v9  ;;  %v6135_v16 = vld [vmem:[#allocation8_spill] sm:$0xff] }
0x145a   : > { %v3360_v18 = vpop.f32.mrf.mxu0 }
0x145b   : > { %v3361_v55 = vadd.f32 %v3360_v18, %v5407_v32 }
0x145c   : > { %v4454_v10 = vpop.f32.mrf.mxu0 }
0x145d   : > { %v3382_v36 = vadd.f32 %v4454_v10, %v5386_v35 }
0x145e   : > { %v3373_v62 = vpop.f32.mrf.mxu0 }
0x145f   : > { %v3390_v19 = vsub.f32 0.0, %v3382_v36  ;;  %v3374_v11 = vadd.f32 %v3373_v62, %v5391_v43  ;;  %v6136_v62 = vld [vmem:[#allocation9_spill] sm:$0xff] }
0x1460   : > { %v4455_v24 = vpop.f32.mrf.mxu0 }
0x1461   : > { %v3396_v20 = vmul.f32 1.442695, %v3390_v19  ;;  %v3388_v13 = vsub.f32 0.0, %v3374_v11  ;;  %v3385_v61 = vadd.f32 %v4455_v24, %v5388_v39 }
0x1462   : > { %v3376_v21 = vpop.f32.mrf.mxu0 }
0x1463   : > { %4780 = vpow2.f32 %v3396_v20  ;;  %v3392_v5 = vmul.f32 1.442695, %v3388_v13  ;;  %v3391_v27 = vsub.f32 0.0, %v3385_v61  ;;  %v3377_v49 = vadd.f32 %v3376_v21, %v5395_v53 }
0x1464   : > { %v3366_v53 = vadd.f32 %v4450_v34, %v5398_v6 }
0x1465   : > { %4782 = vpow2.f32 %v3392_v5  ;;  %v3398_v26 = vmul.f32 1.442695, %v3391_v27  ;;  %v3389_v3 = vsub.f32 0.0, %v3377_v49 }
0x1467   : > { %4784 = vpow2.f32 %v3398_v26  ;;  %v3394_v35 = vmul.f32 1.442695, %v3389_v3 }
0x1469   : > { %4786 = vpow2.f32 %v3394_v35 }
0x1470   : > { %v4781_v22 = vpop.eup %4780 }
0x1471   : > { %v3402_v17 = vadd.f32 1.0, %v4781_v22 }
0x1472   : > { %v4783_v43 = vpop.eup %4782 }
0x1473   : > { %4788 = vrcp.f32 %v3402_v17  ;;  %v3400_v31 = vadd.f32 1.0, %v4783_v43 }
0x1474   : > { %v4785_v41 = vpop.eup %4784 }
0x1475   : > { %4790 = vrcp.f32 %v3400_v31  ;;  %v3403_v39 = vadd.f32 1.0, %v4785_v41 }
0x1476   : > { %v4787_v29 = vpop.eup %4786 }
0x1477   : > { %4792 = vrcp.f32 %v3403_v39  ;;  %v3401_v28 = vadd.f32 1.0, %v4787_v29  ;;  %v6137_v29 = vld [vmem:[#allocation10_spill] sm:$0xff] }
0x1479   : > { %4794 = vrcp.f32 %v3401_v28 }
0x1480   : > { %v4789_v47 = vpop.eup %4788 }
0x1481   : > { %v3410_v60 = vmul.f32 %v4789_v47, %v3366_v53  ;;  %v6138_v53 = vld [vmem:[#allocation11_spill] sm:$0xff] }
0x1482   : > { %v4791_v4 = vpop.eup %4790 }
0x1483   : > { %v3408_v0 = vmul.f32 %v4791_v4, %v3358_v38  ;;  %v3414_v56 = vadd.f32 %v3410_v60, %v5947_v30 }
0x1484   : > { %v4793_v59 = vpop.eup %4792 }
0x1485   : > { %v3411_v2 = vmul.f32 %v4793_v59, %v3369_v44  ;;  %v3412_v6 = vadd.f32 %v3408_v0, %v5953_v40  ;;  %v5986_v33 = vmul.f32 0.70710677, %v3414_v56  ;;  %v4568_v40 = vld [vmem:[%s6105_s11 + $0x90] sm:$0xff]   ;;  %v6139_v59 = vld [vmem:[#allocation13_spill] sm:$0xff] }
0x1486   : > { %v4795_v25 = vpop.eup %4794 }
0x1487   : > { %v3415_v50 = vadd.f32 %v3411_v2, %v5949_v37  ;;  %v3409_v52 = vmul.f32 %v4795_v25, %v3361_v55  ;;  %v5993_v7 = vmul.f32 0.70710677, %v3412_v6  ;;  %v4567_v37 = vld [vmem:[%s6105_s11 + $0x88] sm:$0xff]  }
0x1489   : > { %v5988_v12 = vmul.f32 0.70710677, %v3415_v50  ;;  %v3413_v51 = vadd.f32 %v3409_v52, %v5955_v23  ;;  %v4569_v23 = vld [vmem:[%s6105_s11 + $0x98] sm:$0xff]  }
0x148b   : > { %v3457_v9 = vpack.c.bf16 %v5988_v12, %v5986_v33  ;;  %v5995_v32 = vmul.f32 0.70710677, %v3413_v51 }
0x148d   : > { %4456 = vmatprep.subr.bf16.mxu1 %v3457_v9  ;;  %v3456_v30 = vpack.c.bf16 %v5995_v32, %v5993_v7 }
0x148e   : > { %4457 = vmatpush3.bf16.msra.mxu1 %v3457_v9 }
0x148f   : > { %4458 = vmatprep.subr.bf16.mxu1 %v3456_v30 }
0x1492   : > { %4459 = vmatpush3.bf16.msra.mxu1 %v3456_v30 }
0x1493   : > { %4480 = vmatprep.subr.mxu1 %v6131_v58 }
0x1495   : > { %4461 = vmatmul.mubr.msk.bf16.vlgmr.msra.gmra.mxu1 %vm820_vm1, %v4567_v37 }
0x1496   : > { %4464 = vmatprep.mubr.msk.bf16.mxu1 %vm820_vm1, %v4568_v40 }
0x149d   : > { %4465 = vmatmul.mubr.msk.bf16.gmra.mxu1 %vm820_vm1, %v4569_v23 }
0x149e   : > { %4484 = vmatprep.mubr.msk.f32.mxu1 %vm4899_vm2, %v6131_v58 }
0x1555   : > { %v4462_v14 = vpop.f32.mrf.mxu1 }
0x1557   : > { %v3564_v15 = vpop.f32.mrf.mxu1 }
0x1558   : > { %v3565_v47 = vadd.f32 %v3564_v15, %v6138_v53 }
0x1559   : > { %v4463_v54 = vpop.f32.mrf.mxu1 }
0x155a   : > { %v3576_v4 = vadd.f32 %v4463_v54, %v5851_v1 }
0x155b   : > { %v3567_v34 = vpop.f32.mrf.mxu1 }
0x155c   : > { %v3568_v55 = vadd.f32 %v3567_v34, %v6139_v59 }
0x155d   : > { %v4466_v46 = vpop.f32.mrf.mxu1 }
0x155e   : > { %v3589_v18 = vadd.f32 %v4466_v46, %v6135_v16 }
0x155f   : > { %v3580_v10 = vpop.f32.mrf.mxu1 }
0x1560   : > { %v3597_v36 = vsub.f32 0.0, %v3589_v18  ;;  %v3581_v19 = vadd.f32 %v3580_v10, %v6136_v62  ;;  %v6140_v62 = vld [vmem:[#allocation12_spill] sm:$0xff] }
0x1561   : > { %v4467_v11 = vpop.f32.mrf.mxu1 }
0x1562   : > { %v3603_v24 = vmul.f32 1.442695, %v3597_v36  ;;  %v3595_v20 = vsub.f32 0.0, %v3581_v19  ;;  %v3592_v13 = vadd.f32 %v4467_v11, %v5847_v63 }
0x1563   : > { %v3583_v61 = vpop.f32.mrf.mxu1 }
0x1564   : > { %4796 = vpow2.f32 %v3603_v24  ;;  %v3599_v21 = vmul.f32 1.442695, %v3595_v20  ;;  %v3598_v5 = vsub.f32 0.0, %v3592_v13  ;;  %v3584_v27 = vadd.f32 %v3583_v61, %v5849_v57 }
0x1565   : > { %v3573_v57 = vadd.f32 %v4462_v14, %v6137_v29 }
0x1566   : > { %4798 = vpow2.f32 %v3599_v21  ;;  %v3605_v49 = vmul.f32 1.442695, %v3598_v5  ;;  %v3596_v26 = vsub.f32 0.0, %v3584_v27  ;;  %v3632_v5 = vpop.permute.xlu1 %3631 }
0x1568   : > { %4800 = vpow2.f32 %v3605_v49  ;;  %v3601_v3 = vmul.f32 1.442695, %v3596_v26  ;;  %v3637_v26 = vpop.permute.xlu0 %3636 }
0x156a   : > { %4802 = vpow2.f32 %v3601_v3 }
0x1571   : > { %v4797_v35 = vpop.eup %4796 }
0x1572   : > { %v3609_v22 = vadd.f32 1.0, %v4797_v35 }
0x1573   : > { %v4799_v17 = vpop.eup %4798 }
0x1574   : > { %4804 = vrcp.f32 %v3609_v22  ;;  %v3607_v43 = vadd.f32 1.0, %v4799_v17 }
0x1575   : > { %v4801_v31 = vpop.eup %4800 }
0x1576   : > { %4806 = vrcp.f32 %v3607_v43  ;;  %v3610_v63 = vadd.f32 1.0, %v4801_v31 }
0x1577   : > { %v4803_v41 = vpop.eup %4802 }
0x1578   : > { %4808 = vrcp.f32 %v3610_v63  ;;  %v3608_v39 = vadd.f32 1.0, %v4803_v41 }
0x157a   : > { %4810 = vrcp.f32 %v3608_v39 }
0x1581   : > { %v4805_v28 = vpop.eup %4804 }
0x1582   : > { %v3617_v38 = vmul.f32 %v4805_v28, %v3573_v57  ;;  %v3778_v28 = vld [vmem:[%s6107_s13] sm:$0xff] }
0x1583   : > { %v4807_v60 = vpop.eup %4806 }
0x1584   : > { %v3615_v44 = vmul.f32 %v4807_v60, %v3565_v47  ;;  %v3621_v56 = vadd.f32 %v3617_v38, %v5986_v33  ;;  %v4571_v33 = vld [vmem:[%s6105_s11 + $0xa8] sm:$0xff]  }
0x1585   : > { %v4809_v0 = vpop.eup %4808 }
0x1586   : > { %v3618_v2 = vmul.f32 %v4809_v0, %v3576_v4  ;;  %v3619_v6 = vadd.f32 %v3615_v44, %v5993_v7  ;;  %v3625_v51 = vmul.f32 0.70710677, %v3621_v56  ;;  %v4573_v7 = vld [vmem:[%s6105_s11 + $0xb8] sm:$0xff]  }
0x1587   : > { %v4811_v25 = vpop.eup %4810 }
0x1588   : > { %v3622_v50 = vadd.f32 %v3618_v2, %v5988_v12  ;;  %v3616_v52 = vmul.f32 %v4811_v25, %v3568_v55  ;;  %v3623_v40 = vmul.f32 0.70710677, %v3619_v6  ;;  %v4572_v12 = vld [vmem:[%s6105_s11 + $0xb0] sm:$0xff]  }
0x158a   : > { %v3626_v9 = vmul.f32 0.70710677, %v3622_v50  ;;  %v3620_v30 = vadd.f32 %v3616_v52, %v5995_v32 }
0x158c   : > { %v3628_v37 = vpack.c.bf16 %v3626_v9, %v3625_v51  ;;  %v3624_v1 = vmul.f32 0.70710677, %v3620_v30 }
0x158e   : > { %4468 = vmatprep.subr.bf16.mxu0 %v3628_v37  ;;  %v3627_v23 = vpack.c.bf16 %v3624_v1, %v3623_v40 }
0x158f   : > { %4469 = vmatpush3.bf16.msra.mxu0 %v3628_v37 }
0x1590   : > { %4470 = vmatprep.subr.bf16.mxu0 %v3627_v23 }
0x1593   : > { %4471 = vmatpush3.bf16.msra.mxu0 %v3627_v23 }
0x1596   : > { %4473 = vmatmul.mubr.msk.bf16.vlgmr.msra.gmra.mxu0 %vm820_vm1, %v4571_v33 }
0x1597   : > { %4476 = vmatprep.mubr.msk.bf16.mxu0 %vm820_vm1, %v4572_v12 }
0x159e   : > { %4477 = vmatmul.mubr.msk.bf16.gmra.mxu0 %vm820_vm1, %v4573_v7 }
0x1656   : > { %v4474_v32 = vpop.f32.mrf.mxu0 }
0x1658   : > { %v3731_v8 = vpop.f32.mrf.mxu0 }
0x1659   : > { %v3732_v27 = vadd.f32 %v3731_v8, %v3632_v5 }
0x165a   : > { %v4475_v14 = vpop.f32.mrf.mxu0 }
0x165c   : > { %v3734_v15 = vpop.f32.mrf.mxu0 }
0x165d   : > { %v3735_v3 = vadd.f32 %v3734_v15, %v3637_v26 }
0x165e   : > { %v4478_v54 = vpop.f32.mrf.mxu0 }
0x1660   : > { %v3745_v34 = vpop.f32.mrf.mxu0 }
0x1661   : > { %v3746_v46 = vadd.f32 %v3745_v34, %v5858_v48 }
0x1662   : > { %v4479_v16 = vpop.f32.mrf.mxu0 }
0x1663   : > { %v3758_v18 = vsub.f32 0.0, %v3746_v46 }
0x1664   : > { %v3748_v10 = vpop.f32.mrf.mxu0 }
0x1665   : > { %v3760_v36 = vmul.f32 1.442695, %v3758_v18  ;;  %v3749_v19 = vadd.f32 %v3748_v10, %v6140_v62 }
0x1667   : > { %4812 = vpow2.f32 %v3760_v36  ;;  %v3759_v11 = vsub.f32 0.0, %v3749_v19 }
0x1669   : > { %v3762_v24 = vmul.f32 1.442695, %v3759_v11 }
0x166b   : > { %4814 = vpow2.f32 %v3762_v24 }
0x1674   : > { %v4813_v20 = vpop.eup %4812 }
0x1675   : > { %v3764_v13 = vadd.f32 1.0, %v4813_v20 }
0x1677   : > { %4816 = vrcp.f32 %v3764_v13 }
0x1678   : > { %v4815_v61 = vpop.eup %4814 }
0x1679   : > { %v3765_v21 = vadd.f32 1.0, %v4815_v61 }
0x167b   : > { %4818 = vrcp.f32 %v3765_v21 }
0x1684   : > { %v4817_v49 = vpop.eup %4816 }
0x1685   : > { %v3768_v48 = vmul.f32 %v4817_v49, %v3732_v27 }
0x1687   : > { %v3770_v35 = vadd.f32 %v3768_v48, %v3623_v40 }
0x1688   : > { %v4819_v22 = vpop.eup %4818 }
0x1689   : > { %v3769_v17 = vmul.f32 %v4819_v22, %v3735_v3  ;;  %v3772_v31 = vmul.f32 0.70710677, %v3770_v35 }
0x168b   : > { %v3771_v43 = vadd.f32 %v3769_v17, %v3624_v1  ;;  %v3774_v39 = vmax.f32 %v3772_v31, 0.0 }
0x168d   : > { %v3773_v63 = vmul.f32 0.70710677, %v3771_v43  ;;  %v3776_v57 = vadd.f32 %v3774_v39, %v5871_v42 }
0x168f   : > { %v3775_v41 = vmax.f32 %v3773_v63, 0.0 }
0x1691   : > { %v3777_v29 = vadd.f32 %v3775_v41, %v5876_v45  ;;  %v3783_v45 = vpop.permute.xlu0 %3782 }
0x1693   : > { %4481 = vmatpush3.msra.mxu1 %v3777_v29 }
0x1694   : > { %4482 = vmatprep.subr.mxu1 %v6131_v58 }
0x1695   : > { %4483 = vmatpush3.msra.mxu1 %v3776_v57 }
0x1696   : > { %4485 = vmatmul.mubr.msk.f32.vlgmr.msra.gmra.mxu1 %vm696_vm0, %v3778_v28 }
0x1756   : > { %v3854_v53 = vpop.f32.mrf.mxu1 }
0x1757   : > { %v3855_v47 = vadd.f32 %v3854_v53, %v3783_v45 }
0x1758   : > { %v4486_v42 = vpop.f32.mrf.mxu1 }
0x1759   : > { %3858 = vst [vmem:[%s531_s1] sm:$0xff] %v3855_v47 }
0x175a   : > { %4848 = shalt.err (!%p4845_p5)
}
0x175b   : > { %s4849_s27 = scalar_lea.hbm %s6057_s22, 128  ;;  %s4853_s30 = scalar_lea.hbm %s6109_s15, 256 }
0x175c   : > { %p4850_p7 = scmp.ne.s32.totalorder %s6057_s22, %s4849_s27  ;;  %p4854_p12 = scmp.lt.s32.totalorder %s6057_s22, %s6109_s15 }
0x175d   : > { %p4855_p13 = scmp.lt.s32.totalorder %s4853_s30, %s4849_s27 }
0x175e   : > { %p4851_p10 = pnand %p4850_p7, %p5019_p6 }
0x175f   : > { %p4856_p0 = por %p4855_p13, %p4854_p12 }
0x1760   : > { %p4852_p11 = pneg %p4851_p10 }
0x1762   : > { %p4857_p1 = pnand %p4856_p0, %p4852_p11 }
0x1764   : > { %4860 = shalt.err (!%p4857_p1)
}
0x1765   : > { %4487 = dma.vmem_to_hbm [thread:$0]  (%p5019_p6), %s3874_s23, 128, %s6057_s22, %s3860_s16  }
0x1766 PF: > { %s3885_s2 = sand.u32 1, %s4883_s18   ;;  %p4490_p2 = pnand %p3940_p9, %p5023_p8 }
0x1767   : > { %s3886_s17 = scalar_lea.sflag [#allocation4], %s3885_s2 }
0x1768   : > { %p4491_p3 = pneg %p4490_p2 }
0x176a   : > { %4878 = dma.done.wait (%p4491_p3), %s3886_s17, 128  }
0x176b   : > { %4880 = vsyncadd (%p4491_p3), %s3886_s17, 4294967168  ;;  %s6142_s20 = sld [smem:[#allocation6_spill]]  ;;  %p25_p4 = scmp.ge.s32.totalorder %s5004_s24, 4  }
0x176c   : > { %s6143_s27 = sld [smem:[#allocation7_spill]]  ;;  %s6144_s18 = smov %s4887_s19 }
0x176d   : > { %s6147_s21 = smov %s5004_s24 }
0x176e   :  { %27 = sbr.rel (!%p25_p4) target bundleno = 7 (0x7), region = 174 }
0x1771   : > { %s6145_s19 = smov %s6142_s20 }
0x1772   : > { %s6146_s20 = smov %s6143_s27 }
0x1773   :  { %3891 = vsyncpa [#allocation4], 1 }
0x1774   :  { %3893 = vsyncpa [#allocation4 + $0x1], 1 }

</bundles_post_ra>
